<compile_context>
chip_gen: v6e
topology: v6e:2x2x1
jax: 0.10.0
libtpu: 0.0.40
codegen_flags: <defaults>
</compile_context>

<pallas_src>
import functools

import jax
import jax.numpy as jnp
from jax.experimental import pallas as pl
from jax.experimental.pallas import tpu as pltpu

BN_EPS = 1e-5


def _decoder_block_kernel(x_ref, w1_ref, g1_ref, beta1_ref,
                          w2_ref, g2_ref, beta2_ref,
                          mask_ref, up_ref, o_ref, y1e_ref, *,
                          wp, p, margin, m, hpwp):
    """Fused DecoderBlock forward.

    x_ref     : (C_in,  Pext)     zero-padded, margin-extended flat input
    w1_ref    : (9, C_mid, C_in)  conv1 taps, tap k = i*3 + j
    g1/beta1  : (C_mid, 1)        BN1 affine
    w2_ref    : (9, C_out, C_mid) conv2 taps
    g2/beta2  : (C_out, 1)        BN2 affine
    mask_ref  : (1, P)            1.0 at interior (valid) positions, else 0.0
    up_ref    : (Hp*Wp, 4*H*W)    bilinear(align_corners=True) matrix
    o_ref     : (N, C_out, 4*H*W) output (NCHW order, flattened spatial)
    y1e_ref   : (C_mid, Pext)     scratch: margin-extended conv1 activations
    """
    mask = mask_ref[...]                         # (1, P)
    inv_m = 1.0 / float(m)

    def conv_bn_relu(read_window, w_ref, gamma_ref, beta_ref, oc):
        # 3x3 conv as 9 shifted (OC, C) @ (C, P) GEMMs, f32 accumulation.
        acc = jnp.zeros((oc, p), jnp.float32)
        for i in range(3):
            for j in range(3):
                off = (i - 1) * wp + (j - 1)
                win = read_window(margin + off)          # (C, P) static lane slice
                acc = acc + jnp.dot(w_ref[i * 3 + j], win,
                                    preferred_element_type=jnp.float32)
        # Train-mode BatchNorm over the N*H*W interior positions (masked lane
        # reductions go to the XLU), then affine + ReLU.  Border is forced back
        # to zero so it doubles as the next conv's zero padding.
        mean = jnp.sum(acc * mask, axis=-1, keepdims=True) * inv_m
        cen = acc - mean
        var = jnp.sum(cen * cen * mask, axis=-1, keepdims=True) * inv_m
        y = cen * jax.lax.rsqrt(var + BN_EPS)
        y = y * gamma_ref[...] + beta_ref[...]
        return jnp.maximum(y, 0.0) * mask

    # ---- ConvBlock 1 (conv bias omitted: cancelled exactly by the BN mean) ----
    c_mid = y1e_ref.shape[0]
    y1 = conv_bn_relu(lambda s: x_ref[:, s:s + p], w1_ref, g1_ref, beta1_ref, c_mid)

    # Stage into the margin-extended scratch so conv2 can reuse static lane slices.
    y1e_ref[...] = jnp.zeros_like(y1e_ref)
    y1e_ref[:, margin:margin + p] = y1

    # ---- ConvBlock 2 ----
    c_out = o_ref.shape[1]
    y2 = conv_bn_relu(lambda s: y1e_ref[:, s:s + p], w2_ref, g2_ref, beta2_ref, c_out)

    # ---- Bilinear x2 upsample (align_corners=True): one GEMM per image ----
    up = up_ref[...]                                     # (Hp*Wp, 4*H*W)
    for n in range(o_ref.shape[0]):
        img = y2[:, n * hpwp:(n + 1) * hpwp]             # (C_out, Hp*Wp)
        o_ref[n] = jnp.dot(img, up,
                           preferred_element_type=jnp.float32).astype(o_ref.dtype)


def _src_coords(l_in, l_out):
    # PyTorch nn.Upsample(scale_factor=2, mode='bilinear', align_corners=True).
    return jnp.arange(l_out, dtype=jnp.float32) * (float(l_in - 1) / float(l_out - 1))


def _bilinear_matrix(l_in, l_out):
    """(l_out, l_in) 1-D bilinear interpolation matrix, align_corners=True."""
    src = _src_coords(l_in, l_out)
    i0 = jnp.clip(jnp.floor(src).astype(jnp.int32), 0, l_in - 2)
    w_hi = src - i0.astype(jnp.float32)
    w_lo = 1.0 - w_hi
    rows = jnp.arange(l_out)
    a = jnp.zeros((l_out, l_in), jnp.float32)
    a = a.at[rows, i0].add(w_lo)
    a = a.at[rows, i0 + 1].add(w_hi)
    return a


@jax.jit
def decoder_block(x, w1, b1, g1, beta1, w2, b2, g2, beta2):
    """DecoderBlock.forward (train-mode BN).  x: (N, C_in, H, W) f32.
    Conv biases b1/b2 are accepted for API parity with nn.Conv2d but unused:
    train-mode BatchNorm subtracts the per-channel mean, cancelling them exactly."""
    del b1, b2
    n, c_in, h, w = x.shape
    c_mid, c_out = w1.shape[0], w2.shape[0]
    hp, wp = h + 2, w + 2
    p = n * hp * wp
    margin = wp + 1
    pext = p + 2 * margin
    m = n * h * w
    oh, ow = 2 * h, 2 * w

    # Input: NCHW -> (C, N, Hp, Wp) zero-padded -> flat (C, P) -> margins on lanes.
    xc = jnp.transpose(x, (1, 0, 2, 3))
    xpad = jnp.pad(xc, ((0, 0), (0, 0), (1, 1), (1, 1)))
    xext = jnp.pad(xpad.reshape(c_in, p), ((0, 0), (margin, margin)))

    # Conv taps as (9, OC, C): tap k = i*3 + j  <->  weight[:, :, i, j].
    w1m = jnp.transpose(w1, (2, 3, 0, 1)).reshape(9, c_mid, c_in)
    w2m = jnp.transpose(w2, (2, 3, 0, 1)).reshape(9, c_out, c_mid)

    # Interior (valid output) mask in the flat padded layout.
    ry = (jnp.arange(hp) >= 1) & (jnp.arange(hp) <= h)
    rx = (jnp.arange(wp) >= 1) & (jnp.arange(wp) <= w)
    m2d = ry[:, None] & rx[None, :]
    mask = jnp.broadcast_to(m2d[None], (n, hp, wp)).astype(jnp.float32).reshape(1, p)

    # Bilinear x2 (align_corners=True) as a (Hp*Wp, OH*OW) matrix; zero columns at
    # the padded border double as the interior extraction.
    ah = jnp.pad(_bilinear_matrix(h, oh), ((0, 0), (1, 1)))     # (OH, Hp)
    aw = jnp.pad(_bilinear_matrix(w, ow), ((0, 0), (1, 1)))     # (OW, Wp)
    up = jnp.einsum('ay,bx->yxab', ah, aw).reshape(hp * wp, oh * ow)

    vmem = pl.BlockSpec(memory_space=pltpu.MemorySpace.VMEM)
    kernel = functools.partial(_decoder_block_kernel,
                               wp=wp, p=p, margin=margin, m=m, hpwp=hp * wp)
    out_flat = pl.pallas_call(
        kernel,
        out_shape=jax.ShapeDtypeStruct((n, c_out, oh * ow), jnp.float32),
        in_specs=[vmem] * 9,
        out_specs=vmem,
        scratch_shapes=[pltpu.VMEM((c_mid, pext), jnp.float32)],
    )(xext, w1m, g1.reshape(c_mid, 1), beta1.reshape(c_mid, 1),
      w2m, g2.reshape(c_out, 1), beta2.reshape(c_out, 1), mask, up)

    # Contiguous (free) reshape only -- no wrapper-side output transpose.
    return out_flat.reshape(n, c_out, oh, ow)


# ----------------------------- pure-JAX reference -----------------------------

def _conv_bn_relu_ref(x, w, b, gamma, beta):
    y = jax.lax.conv_general_dilated(
        x, w, window_strides=(1, 1), padding=[(1, 1), (1, 1)],
        dimension_numbers=("NCHW", "OIHW", "NCHW"))
    y = y + b.reshape(1, -1, 1, 1)
    mean = jnp.mean(y, axis=(0, 2, 3), keepdims=True)
    var = jnp.mean((y - mean) ** 2, axis=(0, 2, 3), keepdims=True)
    y = (y - mean) * jax.lax.rsqrt(var + BN_EPS)
    y = y * gamma.reshape(1, -1, 1, 1) + beta.reshape(1, -1, 1, 1)
    return jnp.maximum(y, 0.0)


def _upsample_bilinear_ref(x):
    n, c, h, w = x.shape
    oh, ow = 2 * h, 2 * w
    sy, sx = _src_coords(h, oh), _src_coords(w, ow)
    y0 = jnp.clip(jnp.floor(sy).astype(jnp.int32), 0, h - 2)
    x0 = jnp.clip(jnp.floor(sx).astype(jnp.int32), 0, w - 2)
    wy = (sy - y0.astype(jnp.float32))[None, None, :, None]
    wx = (sx - x0.astype(jnp.float32))[None, None, None, :]
    rows = x[:, :, y0, :] * (1.0 - wy) + x[:, :, y0 + 1, :] * wy
    return rows[:, :, :, x0] * (1.0 - wx) + rows[:, :, :, x0 + 1] * wx


def _reference(x, w1, b1, g1, beta1, w2, b2, g2, beta2):
    y = _conv_bn_relu_ref(x, w1, b1, g1, beta1)
    y = _conv_bn_relu_ref(y, w2, b2, g2, beta2)
    return _upsample_bilinear_ref(y)


if __name__ == "__main__":
    # DecoderBlock(in_channels=16, out_channels=8): conv1 16->4, conv2 4->8, upsample x2.
    N, C_IN, H, W = 2, 16, 16, 16
    C_MID, C_OUT, K = C_IN // 4, 8, 3

    key = jax.random.PRNGKey(0)
    ks = jax.random.split(key, 9)
    x = jax.random.normal(ks[0], (N, C_IN, H, W), dtype=jnp.float32)
    w1 = 0.2 * jax.random.normal(ks[1], (C_MID, C_IN, K, K), dtype=jnp.float32)
    b1 = 0.1 * jax.random.normal(ks[2], (C_MID,), dtype=jnp.float32)
    g1 = 1.0 + 0.1 * jax.random.normal(ks[3], (C_MID,), dtype=jnp.float32)
    beta1 = 0.1 * jax.random.normal(ks[4], (C_MID,), dtype=jnp.float32)
    w2 = 0.2 * jax.random.normal(ks[5], (C_OUT, C_MID, K, K), dtype=jnp.float32)
    b2 = 0.1 * jax.random.normal(ks[6], (C_OUT,), dtype=jnp.float32)
    g2 = 1.0 + 0.1 * jax.random.normal(ks[7], (C_OUT,), dtype=jnp.float32)
    beta2 = 0.1 * jax.random.normal(ks[8], (C_OUT,), dtype=jnp.float32)

    out = decoder_block(x, w1, b1, g1, beta1, w2, b2, g2, beta2)
    out = jax.block_until_ready(out)

    ref = _reference(x, w1, b1, g1, beta1, w2, b2, g2, beta2)
    assert out.shape == (N, C_OUT, 2 * H, 2 * W), out.shape
    max_err = jnp.max(jnp.abs(out - ref))
    assert jnp.allclose(out, ref, atol=1e-4, rtol=1e-4), \
        f"mismatch vs reference, max|err|={max_err}"
    print("KERNEL_OK")
</pallas_src>

<mosaic_0001>
module attributes {stable_mosaic.version = 11 : i64} {
  func.func private @main(%arg0: i32) attributes {dimension_semantics = [#tpu.dimension_semantics<core_parallel>], iteration_bounds = array<i64: 2>, tpu.core_type = #tpu.core_type<sc_scalar_subcore>, window_params = []} {
    return
  }
}

module attributes {stable_mosaic.version = 11 : i64} {
  func.func private @main(%arg0: i32) attributes {dimension_semantics = [#tpu.dimension_semantics<core_parallel>], iteration_bounds = array<i64: 2>, tpu.core_type = #tpu.core_type<sc_scalar_subcore>, window_params = []} {
    return
  }
}

module attributes {stable_mosaic.version = 11 : i64} {
  func.func @_decoder_block_kernel(%arg0: memref<16x686xf32, #tpu.memory_space<vmem>>, %arg1: memref<9x4x16xf32, #tpu.memory_space<vmem>>, %arg2: memref<4x1xf32, #tpu.memory_space<vmem>>, %arg3: memref<4x1xf32, #tpu.memory_space<vmem>>, %arg4: memref<9x8x4xf32, #tpu.memory_space<vmem>>, %arg5: memref<8x1xf32, #tpu.memory_space<vmem>>, %arg6: memref<8x1xf32, #tpu.memory_space<vmem>>, %arg7: memref<1x648xf32, #tpu.memory_space<vmem>>, %arg8: memref<324x1024xf32, #tpu.memory_space<vmem>>, %arg9: memref<2x8x1024xf32, #tpu.memory_space<vmem>>, %arg10: memref<4x686xf32, #tpu.memory_space<vmem>>) attributes {dimension_semantics = [], scalar_prefetch = 0 : i64, scratch_operands = 1 : i64, tpu.core_type = #tpu.core_type<tc>} {
    %c0 = arith.constant 0 : index
    %c0_0 = arith.constant 0 : index
    %0 = vector.load %arg7[%c0, %c0_0] : memref<1x648xf32, #tpu.memory_space<vmem>>, vector<1x648xf32>
    %cst = arith.constant 0.000000e+00 : f32
    %1 = vector.broadcast %cst : f32 to vector<4x648xf32>
    %c0_1 = arith.constant 0 : index
    %c0_2 = arith.constant 0 : index
    %2 = vector.load %arg0[%c0_1, %c0_2] : memref<16x686xf32, #tpu.memory_space<vmem>>, vector<16x648xf32>
    %c0_3 = arith.constant 0 : index
    %c0_4 = arith.constant 0 : index
    %c0_5 = arith.constant 0 : index
    %3 = vector.load %arg1[%c0_3, %c0_4, %c0_5] : memref<9x4x16xf32, #tpu.memory_space<vmem>>, vector<1x4x16xf32>
    %4 = vector.shape_cast %3 : vector<1x4x16xf32> to vector<4x16xf32>
    %cst_6 = arith.constant dense<0.000000e+00> : vector<4x648xf32>
    %5 = tpu.matmul %4, %2, %cst_6 {dimension_numbers = #tpu.dot_dimension_numbers<[1], [0], [0], [1], [0, 0, 1, 1], [], []>} : vector<4x16xf32>, vector<16x648xf32>, vector<4x648xf32> -> vector<4x648xf32>
    %6 = arith.addf %1, %5 : vector<4x648xf32>
    %c0_7 = arith.constant 0 : index
    %c1 = arith.constant 1 : index
    %7 = vector.load %arg0[%c0_7, %c1] : memref<16x686xf32, #tpu.memory_space<vmem>>, vector<16x648xf32>
    %c1_8 = arith.constant 1 : index
    %c0_9 = arith.constant 0 : index
    %c0_10 = arith.constant 0 : index
    %8 = vector.load %arg1[%c1_8, %c0_9, %c0_10] : memref<9x4x16xf32, #tpu.memory_space<vmem>>, vector<1x4x16xf32>
    %9 = vector.shape_cast %8 : vector<1x4x16xf32> to vector<4x16xf32>
    %cst_11 = arith.constant dense<0.000000e+00> : vector<4x648xf32>
    %10 = tpu.matmul %9, %7, %cst_11 {dimension_numbers = #tpu.dot_dimension_numbers<[1], [0], [0], [1], [0, 0, 1, 1], [], []>} : vector<4x16xf32>, vector<16x648xf32>, vector<4x648xf32> -> vector<4x648xf32>
    %11 = arith.addf %6, %10 : vector<4x648xf32>
    %c0_12 = arith.constant 0 : index
    %c2 = arith.constant 2 : index
    %12 = vector.load %arg0[%c0_12, %c2] : memref<16x686xf32, #tpu.memory_space<vmem>>, vector<16x648xf32>
    %c2_13 = arith.constant 2 : index
    %c0_14 = arith.constant 0 : index
    %c0_15 = arith.constant 0 : index
    %13 = vector.load %arg1[%c2_13, %c0_14, %c0_15] : memref<9x4x16xf32, #tpu.memory_space<vmem>>, vector<1x4x16xf32>
    %14 = vector.shape_cast %13 : vector<1x4x16xf32> to vector<4x16xf32>
    %cst_16 = arith.constant dense<0.000000e+00> : vector<4x648xf32>
    %15 = tpu.matmul %14, %12, %cst_16 {dimension_numbers = #tpu.dot_dimension_numbers<[1], [0], [0], [1], [0, 0, 1, 1], [], []>} : vector<4x16xf32>, vector<16x648xf32>, vector<4x648xf32> -> vector<4x648xf32>
    %16 = arith.addf %11, %15 : vector<4x648xf32>
    %c0_17 = arith.constant 0 : index
    %c18 = arith.constant 18 : index
    %17 = vector.load %arg0[%c0_17, %c18] : memref<16x686xf32, #tpu.memory_space<vmem>>, vector<16x648xf32>
    %c3 = arith.constant 3 : index
    %c0_18 = arith.constant 0 : index
    %c0_19 = arith.constant 0 : index
    %18 = vector.load %arg1[%c3, %c0_18, %c0_19] : memref<9x4x16xf32, #tpu.memory_space<vmem>>, vector<1x4x16xf32>
    %19 = vector.shape_cast %18 : vector<1x4x16xf32> to vector<4x16xf32>
    %cst_20 = arith.constant dense<0.000000e+00> : vector<4x648xf32>
    %20 = tpu.matmul %19, %17, %cst_20 {dimension_numbers = #tpu.dot_dimension_numbers<[1], [0], [0], [1], [0, 0, 1, 1], [], []>} : vector<4x16xf32>, vector<16x648xf32>, vector<4x648xf32> -> vector<4x648xf32>
    %21 = arith.addf %16, %20 : vector<4x648xf32>
    %c0_21 = arith.constant 0 : index
    %c19 = arith.constant 19 : index
    %22 = vector.load %arg0[%c0_21, %c19] : memref<16x686xf32, #tpu.memory_space<vmem>>, vector<16x648xf32>
    %c4 = arith.constant 4 : index
    %c0_22 = arith.constant 0 : index
    %c0_23 = arith.constant 0 : index
    %23 = vector.load %arg1[%c4, %c0_22, %c0_23] : memref<9x4x16xf32, #tpu.memory_space<vmem>>, vector<1x4x16xf32>
    %24 = vector.shape_cast %23 : vector<1x4x16xf32> to vector<4x16xf32>
    %cst_24 = arith.constant dense<0.000000e+00> : vector<4x648xf32>
    %25 = tpu.matmul %24, %22, %cst_24 {dimension_numbers = #tpu.dot_dimension_numbers<[1], [0], [0], [1], [0, 0, 1, 1], [], []>} : vector<4x16xf32>, vector<16x648xf32>, vector<4x648xf32> -> vector<4x648xf32>
    %26 = arith.addf %21, %25 : vector<4x648xf32>
    %c0_25 = arith.constant 0 : index
    %c20 = arith.constant 20 : index
    %27 = vector.load %arg0[%c0_25, %c20] : memref<16x686xf32, #tpu.memory_space<vmem>>, vector<16x648xf32>
    %c5 = arith.constant 5 : index
    %c0_26 = arith.constant 0 : index
    %c0_27 = arith.constant 0 : index
    %28 = vector.load %arg1[%c5, %c0_26, %c0_27] : memref<9x4x16xf32, #tpu.memory_space<vmem>>, vector<1x4x16xf32>
    %29 = vector.shape_cast %28 : vector<1x4x16xf32> to vector<4x16xf32>
    %cst_28 = arith.constant dense<0.000000e+00> : vector<4x648xf32>
    %30 = tpu.matmul %29, %27, %cst_28 {dimension_numbers = #tpu.dot_dimension_numbers<[1], [0], [0], [1], [0, 0, 1, 1], [], []>} : vector<4x16xf32>, vector<16x648xf32>, vector<4x648xf32> -> vector<4x648xf32>
    %31 = arith.addf %26, %30 : vector<4x648xf32>
    %c0_29 = arith.constant 0 : index
    %c36 = arith.constant 36 : index
    %32 = vector.load %arg0[%c0_29, %c36] : memref<16x686xf32, #tpu.memory_space<vmem>>, vector<16x648xf32>
    %c6 = arith.constant 6 : index
    %c0_30 = arith.constant 0 : index
    %c0_31 = arith.constant 0 : index
    %33 = vector.load %arg1[%c6, %c0_30, %c0_31] : memref<9x4x16xf32, #tpu.memory_space<vmem>>, vector<1x4x16xf32>
    %34 = vector.shape_cast %33 : vector<1x4x16xf32> to vector<4x16xf32>
    %cst_32 = arith.constant dense<0.000000e+00> : vector<4x648xf32>
    %35 = tpu.matmul %34, %32, %cst_32 {dimension_numbers = #tpu.dot_dimension_numbers<[1], [0], [0], [1], [0, 0, 1, 1], [], []>} : vector<4x16xf32>, vector<16x648xf32>, vector<4x648xf32> -> vector<4x648xf32>
    %36 = arith.addf %31, %35 : vector<4x648xf32>
    %c0_33 = arith.constant 0 : index
    %c37 = arith.constant 37 : index
    %37 = vector.load %arg0[%c0_33, %c37] : memref<16x686xf32, #tpu.memory_space<vmem>>, vector<16x648xf32>
    %c7 = arith.constant 7 : index
    %c0_34 = arith.constant 0 : index
    %c0_35 = arith.constant 0 : index
    %38 = vector.load %arg1[%c7, %c0_34, %c0_35] : memref<9x4x16xf32, #tpu.memory_space<vmem>>, vector<1x4x16xf32>
    %39 = vector.shape_cast %38 : vector<1x4x16xf32> to vector<4x16xf32>
    %cst_36 = arith.constant dense<0.000000e+00> : vector<4x648xf32>
    %40 = tpu.matmul %39, %37, %cst_36 {dimension_numbers = #tpu.dot_dimension_numbers<[1], [0], [0], [1], [0, 0, 1, 1], [], []>} : vector<4x16xf32>, vector<16x648xf32>, vector<4x648xf32> -> vector<4x648xf32>
    %41 = arith.addf %36, %40 : vector<4x648xf32>
    %c0_37 = arith.constant 0 : index
    %c38 = arith.constant 38 : index
    %42 = vector.load %arg0[%c0_37, %c38] : memref<16x686xf32, #tpu.memory_space<vmem>>, vector<16x648xf32>
    %c8 = arith.constant 8 : index
    %c0_38 = arith.constant 0 : index
    %c0_39 = arith.constant 0 : index
    %43 = vector.load %arg1[%c8, %c0_38, %c0_39] : memref<9x4x16xf32, #tpu.memory_space<vmem>>, vector<1x4x16xf32>
    %44 = vector.shape_cast %43 : vector<1x4x16xf32> to vector<4x16xf32>
    %cst_40 = arith.constant dense<0.000000e+00> : vector<4x648xf32>
    %45 = tpu.matmul %44, %42, %cst_40 {dimension_numbers = #tpu.dot_dimension_numbers<[1], [0], [0], [1], [0, 0, 1, 1], [], []>} : vector<4x16xf32>, vector<16x648xf32>, vector<4x648xf32> -> vector<4x648xf32>
    %46 = arith.addf %41, %45 : vector<4x648xf32>
    %47 = vector.broadcast %0 : vector<1x648xf32> to vector<4x648xf32>
    %48 = arith.mulf %46, %47 : vector<4x648xf32>
    %cst_41 = arith.constant dense<0.000000e+00> : vector<4xf32>
    %49 = vector.multi_reduction <add>, %48, %cst_41 [1] : vector<4x648xf32> to vector<4xf32>
    %50 = vector.shape_cast %49 : vector<4xf32> to vector<4x1xf32>
    %cst_42 = arith.constant 0.001953125 : f32
    %51 = vector.broadcast %cst_42 : f32 to vector<4x1xf32>
    %52 = arith.mulf %50, %51 : vector<4x1xf32>
    %53 = vector.broadcast %52 : vector<4x1xf32> to vector<4x648xf32>
    %54 = arith.subf %46, %53 : vector<4x648xf32>
    %55 = arith.mulf %54, %54 : vector<4x648xf32>
    %56 = vector.broadcast %0 : vector<1x648xf32> to vector<4x648xf32>
    %57 = arith.mulf %55, %56 : vector<4x648xf32>
    %cst_43 = arith.constant dense<0.000000e+00> : vector<4xf32>
    %58 = vector.multi_reduction <add>, %57, %cst_43 [1] : vector<4x648xf32> to vector<4xf32>
    %59 = vector.shape_cast %58 : vector<4xf32> to vector<4x1xf32>
    %cst_44 = arith.constant 0.001953125 : f32
    %60 = vector.broadcast %cst_44 : f32 to vector<4x1xf32>
    %61 = arith.mulf %59, %60 : vector<4x1xf32>
    %cst_45 = arith.constant 9.99999974E-6 : f32
    %62 = vector.broadcast %cst_45 : f32 to vector<4x1xf32>
    %63 = arith.addf %61, %62 : vector<4x1xf32>
    %64 = math.rsqrt %63 : vector<4x1xf32>
    %65 = vector.broadcast %64 : vector<4x1xf32> to vector<4x648xf32>
    %66 = arith.mulf %54, %65 : vector<4x648xf32>
    %c0_46 = arith.constant 0 : index
    %c0_47 = arith.constant 0 : index
    %67 = vector.load %arg2[%c0_46, %c0_47] : memref<4x1xf32, #tpu.memory_space<vmem>>, vector<4x1xf32>
    %68 = vector.broadcast %67 : vector<4x1xf32> to vector<4x648xf32>
    %69 = arith.mulf %66, %68 : vector<4x648xf32>
    %c0_48 = arith.constant 0 : index
    %c0_49 = arith.constant 0 : index
    %70 = vector.load %arg3[%c0_48, %c0_49] : memref<4x1xf32, #tpu.memory_space<vmem>>, vector<4x1xf32>
    %71 = vector.broadcast %70 : vector<4x1xf32> to vector<4x648xf32>
    %72 = arith.addf %69, %71 : vector<4x648xf32>
    %cst_50 = arith.constant 0.000000e+00 : f32
    %73 = vector.broadcast %cst_50 : f32 to vector<4x648xf32>
    %74 = arith.maximumf %72, %73 : vector<4x648xf32>
    %75 = vector.broadcast %0 : vector<1x648xf32> to vector<4x648xf32>
    %76 = arith.mulf %74, %75 : vector<4x648xf32>
    %cst_51 = arith.constant 0.000000e+00 : f32
    %77 = vector.broadcast %cst_51 : f32 to vector<4x686xf32>
    %c0_52 = arith.constant 0 : index
    %c0_53 = arith.constant 0 : index
    %78 = vector.load %arg10[%c0_52, %c0_53] : memref<4x686xf32, #tpu.memory_space<vmem>>, vector<4x686xf32>
    tpu.vector_store %arg10[%c0_52, %c0_53], %77 {strides = array<i32>} : memref<4x686xf32, #tpu.memory_space<vmem>>, vector<4x686xf32>,
    %c0_54 = arith.constant 0 : index
    %c19_55 = arith.constant 19 : index
    %79 = vector.load %arg10[%c0_54, %c19_55] : memref<4x686xf32, #tpu.memory_space<vmem>>, vector<4x648xf32>
    tpu.vector_store %arg10[%c0_54, %c19_55], %76 {strides = array<i32>} : memref<4x686xf32, #tpu.memory_space<vmem>>, vector<4x648xf32>,
    %cst_56 = arith.constant 0.000000e+00 : f32
    %80 = vector.broadcast %cst_56 : f32 to vector<8x648xf32>
    %c0_57 = arith.constant 0 : index
    %c0_58 = arith.constant 0 : index
    %81 = vector.load %arg10[%c0_57, %c0_58] : memref<4x686xf32, #tpu.memory_space<vmem>>, vector<4x648xf32>
    %c0_59 = arith.constant 0 : index
    %c0_60 = arith.constant 0 : index
    %c0_61 = arith.constant 0 : index
    %82 = vector.load %arg4[%c0_59, %c0_60, %c0_61] : memref<9x8x4xf32, #tpu.memory_space<vmem>>, vector<1x8x4xf32>
    %83 = vector.shape_cast %82 : vector<1x8x4xf32> to vector<8x4xf32>
    %cst_62 = arith.constant dense<0.000000e+00> : vector<8x648xf32>
    %84 = tpu.matmul %83, %81, %cst_62 {dimension_numbers = #tpu.dot_dimension_numbers<[1], [0], [0], [1], [0, 0, 1, 1], [], []>} : vector<8x4xf32>, vector<4x648xf32>, vector<8x648xf32> -> vector<8x648xf32>
    %85 = arith.addf %80, %84 : vector<8x648xf32>
    %c0_63 = arith.constant 0 : index
    %c1_64 = arith.constant 1 : index
    %86 = vector.load %arg10[%c0_63, %c1_64] : memref<4x686xf32, #tpu.memory_space<vmem>>, vector<4x648xf32>
    %c1_65 = arith.constant 1 : index
    %c0_66 = arith.constant 0 : index
    %c0_67 = arith.constant 0 : index
    %87 = vector.load %arg4[%c1_65, %c0_66, %c0_67] : memref<9x8x4xf32, #tpu.memory_space<vmem>>, vector<1x8x4xf32>
    %88 = vector.shape_cast %87 : vector<1x8x4xf32> to vector<8x4xf32>
    %cst_68 = arith.constant dense<0.000000e+00> : vector<8x648xf32>
    %89 = tpu.matmul %88, %86, %cst_68 {dimension_numbers = #tpu.dot_dimension_numbers<[1], [0], [0], [1], [0, 0, 1, 1], [], []>} : vector<8x4xf32>, vector<4x648xf32>, vector<8x648xf32> -> vector<8x648xf32>
    %90 = arith.addf %85, %89 : vector<8x648xf32>
    %c0_69 = arith.constant 0 : index
    %c2_70 = arith.constant 2 : index
    %91 = vector.load %arg10[%c0_69, %c2_70] : memref<4x686xf32, #tpu.memory_space<vmem>>, vector<4x648xf32>
    %c2_71 = arith.constant 2 : index
    %c0_72 = arith.constant 0 : index
    %c0_73 = arith.constant 0 : index
    %92 = vector.load %arg4[%c2_71, %c0_72, %c0_73] : memref<9x8x4xf32, #tpu.memory_space<vmem>>, vector<1x8x4xf32>
    %93 = vector.shape_cast %92 : vector<1x8x4xf32> to vector<8x4xf32>
    %cst_74 = arith.constant dense<0.000000e+00> : vector<8x648xf32>
    %94 = tpu.matmul %93, %91, %cst_74 {dimension_numbers = #tpu.dot_dimension_numbers<[1], [0], [0], [1], [0, 0, 1, 1], [], []>} : vector<8x4xf32>, vector<4x648xf32>, vector<8x648xf32> -> vector<8x648xf32>
    %95 = arith.addf %90, %94 : vector<8x648xf32>
    %c0_75 = arith.constant 0 : index
    %c18_76 = arith.constant 18 : index
    %96 = vector.load %arg10[%c0_75, %c18_76] : memref<4x686xf32, #tpu.memory_space<vmem>>, vector<4x648xf32>
    %c3_77 = arith.constant 3 : index
    %c0_78 = arith.constant 0 : index
    %c0_79 = arith.constant 0 : index
    %97 = vector.load %arg4[%c3_77, %c0_78, %c0_79] : memref<9x8x4xf32, #tpu.memory_space<vmem>>, vector<1x8x4xf32>
    %98 = vector.shape_cast %97 : vector<1x8x4xf32> to vector<8x4xf32>
    %cst_80 = arith.constant dense<0.000000e+00> : vector<8x648xf32>
    %99 = tpu.matmul %98, %96, %cst_80 {dimension_numbers = #tpu.dot_dimension_numbers<[1], [0], [0], [1], [0, 0, 1, 1], [], []>} : vector<8x4xf32>, vector<4x648xf32>, vector<8x648xf32> -> vector<8x648xf32>
    %100 = arith.addf %95, %99 : vector<8x648xf32>
    %c0_81 = arith.constant 0 : index
    %c19_82 = arith.constant 19 : index
    %101 = vector.load %arg10[%c0_81, %c19_82] : memref<4x686xf32, #tpu.memory_space<vmem>>, vector<4x648xf32>
    %c4_83 = arith.constant 4 : index
    %c0_84 = arith.constant 0 : index
    %c0_85 = arith.constant 0 : index
    %102 = vector.load %arg4[%c4_83, %c0_84, %c0_85] : memref<9x8x4xf32, #tpu.memory_space<vmem>>, vector<1x8x4xf32>
    %103 = vector.shape_cast %102 : vector<1x8x4xf32> to vector<8x4xf32>
    %cst_86 = arith.constant dense<0.000000e+00> : vector<8x648xf32>
    %104 = tpu.matmul %103, %101, %cst_86 {dimension_numbers = #tpu.dot_dimension_numbers<[1], [0], [0], [1], [0, 0, 1, 1], [], []>} : vector<8x4xf32>, vector<4x648xf32>, vector<8x648xf32> -> vector<8x648xf32>
    %105 = arith.addf %100, %104 : vector<8x648xf32>
    %c0_87 = arith.constant 0 : index
    %c20_88 = arith.constant 20 : index
    %106 = vector.load %arg10[%c0_87, %c20_88] : memref<4x686xf32, #tpu.memory_space<vmem>>, vector<4x648xf32>
    %c5_89 = arith.constant 5 : index
    %c0_90 = arith.constant 0 : index
    %c0_91 = arith.constant 0 : index
    %107 = vector.load %arg4[%c5_89, %c0_90, %c0_91] : memref<9x8x4xf32, #tpu.memory_space<vmem>>, vector<1x8x4xf32>
    %108 = vector.shape_cast %107 : vector<1x8x4xf32> to vector<8x4xf32>
    %cst_92 = arith.constant dense<0.000000e+00> : vector<8x648xf32>
    %109 = tpu.matmul %108, %106, %cst_92 {dimension_numbers = #tpu.dot_dimension_numbers<[1], [0], [0], [1], [0, 0, 1, 1], [], []>} : vector<8x4xf32>, vector<4x648xf32>, vector<8x648xf32> -> vector<8x648xf32>
    %110 = arith.addf %105, %109 : vector<8x648xf32>
    %c0_93 = arith.constant 0 : index
    %c36_94 = arith.constant 36 : index
    %111 = vector.load %arg10[%c0_93, %c36_94] : memref<4x686xf32, #tpu.memory_space<vmem>>, vector<4x648xf32>
    %c6_95 = arith.constant 6 : index
    %c0_96 = arith.constant 0 : index
    %c0_97 = arith.constant 0 : index
    %112 = vector.load %arg4[%c6_95, %c0_96, %c0_97] : memref<9x8x4xf32, #tpu.memory_space<vmem>>, vector<1x8x4xf32>
    %113 = vector.shape_cast %112 : vector<1x8x4xf32> to vector<8x4xf32>
    %cst_98 = arith.constant dense<0.000000e+00> : vector<8x648xf32>
    %114 = tpu.matmul %113, %111, %cst_98 {dimension_numbers = #tpu.dot_dimension_numbers<[1], [0], [0], [1], [0, 0, 1, 1], [], []>} : vector<8x4xf32>, vector<4x648xf32>, vector<8x648xf32> -> vector<8x648xf32>
    %115 = arith.addf %110, %114 : vector<8x648xf32>
    %c0_99 = arith.constant 0 : index
    %c37_100 = arith.constant 37 : index
    %116 = vector.load %arg10[%c0_99, %c37_100] : memref<4x686xf32, #tpu.memory_space<vmem>>, vector<4x648xf32>
    %c7_101 = arith.constant 7 : index
    %c0_102 = arith.constant 0 : index
    %c0_103 = arith.constant 0 : index
    %117 = vector.load %arg4[%c7_101, %c0_102, %c0_103] : memref<9x8x4xf32, #tpu.memory_space<vmem>>, vector<1x8x4xf32>
    %118 = vector.shape_cast %117 : vector<1x8x4xf32> to vector<8x4xf32>
    %cst_104 = arith.constant dense<0.000000e+00> : vector<8x648xf32>
    %119 = tpu.matmul %118, %116, %cst_104 {dimension_numbers = #tpu.dot_dimension_numbers<[1], [0], [0], [1], [0, 0, 1, 1], [], []>} : vector<8x4xf32>, vector<4x648xf32>, vector<8x648xf32> -> vector<8x648xf32>
    %120 = arith.addf %115, %119 : vector<8x648xf32>
    %c0_105 = arith.constant 0 : index
    %c38_106 = arith.constant 38 : index
    %121 = vector.load %arg10[%c0_105, %c38_106] : memref<4x686xf32, #tpu.memory_space<vmem>>, vector<4x648xf32>
    %c8_107 = arith.constant 8 : index
    %c0_108 = arith.constant 0 : index
    %c0_109 = arith.constant 0 : index
    %122 = vector.load %arg4[%c8_107, %c0_108, %c0_109] : memref<9x8x4xf32, #tpu.memory_space<vmem>>, vector<1x8x4xf32>
    %123 = vector.shape_cast %122 : vector<1x8x4xf32> to vector<8x4xf32>
    %cst_110 = arith.constant dense<0.000000e+00> : vector<8x648xf32>
    %124 = tpu.matmul %123, %121, %cst_110 {dimension_numbers = #tpu.dot_dimension_numbers<[1], [0], [0], [1], [0, 0, 1, 1], [], []>} : vector<8x4xf32>, vector<4x648xf32>, vector<8x648xf32> -> vector<8x648xf32>
    %125 = arith.addf %120, %124 : vector<8x648xf32>
    %126 = vector.broadcast %0 : vector<1x648xf32> to vector<8x648xf32>
    %127 = arith.mulf %125, %126 : vector<8x648xf32>
    %cst_111 = arith.constant dense<0.000000e+00> : vector<8xf32>
    %128 = vector.multi_reduction <add>, %127, %cst_111 [1] : vector<8x648xf32> to vector<8xf32>
    %129 = vector.shape_cast %128 : vector<8xf32> to vector<8x1xf32>
    %cst_112 = arith.constant 0.001953125 : f32
    %130 = vector.broadcast %cst_112 : f32 to vector<8x1xf32>
    %131 = arith.mulf %129, %130 : vector<8x1xf32>
    %132 = vector.broadcast %131 : vector<8x1xf32> to vector<8x648xf32>
    %133 = arith.subf %125, %132 : vector<8x648xf32>
    %134 = arith.mulf %133, %133 : vector<8x648xf32>
    %135 = vector.broadcast %0 : vector<1x648xf32> to vector<8x648xf32>
    %136 = arith.mulf %134, %135 : vector<8x648xf32>
    %cst_113 = arith.constant dense<0.000000e+00> : vector<8xf32>
    %137 = vector.multi_reduction <add>, %136, %cst_113 [1] : vector<8x648xf32> to vector<8xf32>
    %138 = vector.shape_cast %137 : vector<8xf32> to vector<8x1xf32>
    %cst_114 = arith.constant 0.001953125 : f32
    %139 = vector.broadcast %cst_114 : f32 to vector<8x1xf32>
    %140 = arith.mulf %138, %139 : vector<8x1xf32>
    %cst_115 = arith.constant 9.99999974E-6 : f32
    %141 = vector.broadcast %cst_115 : f32 to vector<8x1xf32>
    %142 = arith.addf %140, %141 : vector<8x1xf32>
    %143 = math.rsqrt %142 : vector<8x1xf32>
    %144 = vector.broadcast %143 : vector<8x1xf32> to vector<8x648xf32>
    %145 = arith.mulf %133, %144 : vector<8x648xf32>
    %c0_116 = arith.constant 0 : index
    %c0_117 = arith.constant 0 : index
    %146 = vector.load %arg5[%c0_116, %c0_117] : memref<8x1xf32, #tpu.memory_space<vmem>>, vector<8x1xf32>
    %147 = vector.broadcast %146 : vector<8x1xf32> to vector<8x648xf32>
    %148 = arith.mulf %145, %147 : vector<8x648xf32>
    %c0_118 = arith.constant 0 : index
    %c0_119 = arith.constant 0 : index
    %149 = vector.load %arg6[%c0_118, %c0_119] : memref<8x1xf32, #tpu.memory_space<vmem>>, vector<8x1xf32>
    %150 = vector.broadcast %149 : vector<8x1xf32> to vector<8x648xf32>
    %151 = arith.addf %148, %150 : vector<8x648xf32>
    %cst_120 = arith.constant 0.000000e+00 : f32
    %152 = vector.broadcast %cst_120 : f32 to vector<8x648xf32>
    %153 = arith.maximumf %151, %152 : vector<8x648xf32>
    %154 = vector.broadcast %0 : vector<1x648xf32> to vector<8x648xf32>
    %155 = arith.mulf %153, %154 : vector<8x648xf32>
    %c0_121 = arith.constant 0 : index
    %c0_122 = arith.constant 0 : index
    %156 = vector.load %arg8[%c0_121, %c0_122] : memref<324x1024xf32, #tpu.memory_space<vmem>>, vector<324x1024xf32>
    %157 = vector.extract_strided_slice %155 {offsets = [0, 0], sizes = [8, 324], strides = [1, 1]} : vector<8x648xf32> to vector<8x324xf32>
    %cst_123 = arith.constant dense<0.000000e+00> : vector<8x1024xf32>
    %158 = tpu.matmul %157, %156, %cst_123 {dimension_numbers = #tpu.dot_dimension_numbers<[1], [0], [0], [1], [0, 0, 1, 1], [], []>} : vector<8x324xf32>, vector<324x1024xf32>, vector<8x1024xf32> -> vector<8x1024xf32>
    %c0_124 = arith.constant 0 : index
    %c0_125 = arith.constant 0 : index
    %c0_126 = arith.constant 0 : index
    %159 = vector.load %arg9[%c0_124, %c0_125, %c0_126] : memref<2x8x1024xf32, #tpu.memory_space<vmem>>, vector<1x8x1024xf32>
    %160 = vector.shape_cast %159 : vector<1x8x1024xf32> to vector<8x1024xf32>
    %161 = vector.shape_cast %158 : vector<8x1024xf32> to vector<1x8x1024xf32>
    tpu.vector_store %arg9[%c0_124, %c0_125, %c0_126], %161 {strides = array<i32>} : memref<2x8x1024xf32, #tpu.memory_space<vmem>>, vector<1x8x1024xf32>,
    %162 = vector.extract_strided_slice %155 {offsets = [0, 324], sizes = [8, 324], strides = [1, 1]} : vector<8x648xf32> to vector<8x324xf32>
    %cst_127 = arith.constant dense<0.000000e+00> : vector<8x1024xf32>
    %163 = tpu.matmul %162, %156, %cst_127 {dimension_numbers = #tpu.dot_dimension_numbers<[1], [0], [0], [1], [0, 0, 1, 1], [], []>} : vector<8x324xf32>, vector<324x1024xf32>, vector<8x1024xf32> -> vector<8x1024xf32>
    %c1_128 = arith.constant 1 : index
    %c0_129 = arith.constant 0 : index
    %c0_130 = arith.constant 0 : index
    %164 = vector.load %arg9[%c1_128, %c0_129, %c0_130] : memref<2x8x1024xf32, #tpu.memory_space<vmem>>, vector<1x8x1024xf32>
    %165 = vector.shape_cast %164 : vector<1x8x1024xf32> to vector<8x1024xf32>
    %166 = vector.shape_cast %163 : vector<8x1024xf32> to vector<1x8x1024xf32>
    tpu.vector_store %arg9[%c1_128, %c0_129, %c0_130], %166 {strides = array<i32>} : memref<2x8x1024xf32, #tpu.memory_space<vmem>>, vector<1x8x1024xf32>,
    return
  }
}

</mosaic_0001>

<bundles_post_ra>
// kernel: decoder_block.1
= control target key start
LH: loop header
LB: loop body
LE: loop exit
PB: predicated region body
PF: predicated region fallthrough
CT: control target
= control target key end

     0   :  { %s6911_s13 = smov 127   ;;  %v6912_v4 = vmov 0.0   ;;  %s6913_s14 = smov 126   ;;  %vm84_vm0 = vcmask 1039360   ;;  %vm107_vm1 = vcmask 130048   ;;  %vm566_vm2 = vcmask 1031168   ;;  %s10146_s0 = inlined_call_operand.vmem [shape: f32[16,686], index: 0, kind: input, shape index: {}]   ;;  %s10147_s1 = inlined_call_operand.vmem [shape: f32[9,4,16], index: 1, kind: input, shape index: {}]   ;;  %s10148_s7 = inlined_call_operand.vmem [shape: f32[1,648], index: 7, kind: input, shape index: {}]   ;;  %s10149_s2 = inlined_call_operand.vmem [shape: f32[4,1], index: 2, kind: input, shape index: {}]   ;;  %s10150_s3 = inlined_call_operand.vmem [shape: f32[4,1], index: 3, kind: input, shape index: {}]   ;;  %s10151_s4 = inlined_call_operand.vmem [shape: f32[9,8,4], index: 4, kind: input, shape index: {}]   ;;  %s10152_s6 = inlined_call_operand.vmem [shape: f32[8,1], index: 6, kind: input, shape index: {}]   ;;  %s10153_s8 = inlined_call_operand.vmem [shape: f32[324,1024], index: 8, kind: input, shape index: {}]   ;;  %s10154_s5 = inlined_call_operand.vmem [shape: f32[8,1], index: 5, kind: input, shape index: {}]   ;;  %s10155_s9 = inlined_call_operand.vmem [shape: f32[2,8,1024], index: 9, kind: output, shape index: {}]  }
   0x1   :  { %v6976_v0 = vld [vmem:[%s10146_s0 + $0x38] sm:$0xff]  ;;  %v6981_v1 = vld [vmem:[%s10146_s0 + $0x30] sm:$0xff]  ;;  %v6990_v2 = vld [vmem:[%s10146_s0 + $0x40] sm:$0xff]  ;;  %175 = vmatprep.mubr.f32.mxu0 %v6912_v4  ;;  %2566 = vst [vmem:[#allocation2] sm:$0xff] %v6912_v4  ;;  %246 = vmatprep.mubr.f32.mxu1 %v6912_v4  ;;  %s6915_s15 = smov 109   ;;  %s6916_s16 = smov 108  }
   0x2   :  { %74 = vrot.lane.b32.xlu0 %v6976_v0, %s6911_s13  ;;  %72 = vrot.lane.b32.xlu1 %v6981_v1, %s6911_s13  ;;  %v6995_v3 = vld [vmem:[%s10146_s0 + $0x8] sm:$0xff]  ;;  %v7007_v5 = vld [vmem:[%s10146_s0 + $0x10] sm:$0xff]  ;;  %s6917_s17 = smov 92   ;;  %s6918_s22 = smov 91   ;;  %vm837_vm3 = vcmask 900096   ;;  %vm1108_vm4 = vcmask 891904  }
   0x3   :  { %v7012_v6 = vld [vmem:[%s10146_s0] sm:$0xff]  ;;  %v7021_v7 = vld [vmem:[%s10146_s0 + $0x48] sm:$0xff]  ;;  %v7026_v8 = vld [vmem:[%s10146_s0 + $0x50] sm:$0xff]  ;;  %s6919_s25 = smov 90   ;;  %vm1379_vm5 = vcmask 883712   ;;  %vm1650_vm6 = vcmask 752640  }
   0x4   :  { %v7035_v9 = vld [vmem:[%s10146_s0 + $0x58] sm:$0xff]  ;;  %v7049_v11 = vld [vmem:[%s10146_s0 + $0x20] sm:$0xff]  ;;  %v7054_v12 = vld [vmem:[%s10146_s0 + $0x28] sm:$0xff]  ;;  %vm1921_vm7 = vcmask 744448   ;;  %vm2192_vm8 = vcmask 736256   ;;  %vm2474_vm9 = vcmask 1043456  }
   0x5   :  { %v7040_v10 = vld [vmem:[%s10146_s0 + $0x18] sm:$0xff]  ;;  %s6914_s0 = smov 110   ;;  %v6545_v23 = vld [vmem:[%s10147_s1 + $0x4] sm:$0xf]  ;;  %v45_v39 = vld [vmem:[%s10147_s1] sm:$0xf] }
   0x6   :  { %76 = vrot.lane.b32.xlu0 %v6990_v2, %s6911_s13  ;;  %62 = vrot.lane.b32.xlu1 %v6995_v3, %s6911_s13  ;;  %v6552_v53 = vld [vmem:[%s10147_s1 + $0x8] sm:$0xf]  ;;  %vm2484_vm10 = vcmask 60416   ;;  %vm2568_vm11 = vcmask 375812   ;;  %vm2598_vm13 = vcmask 1043608   ;;  %vm2599_vm14 = vcmask 1047556  }
   0x7   :  { %vm2569_vm12 = vmor %vm2568_vm11, %vm2474_vm9  ;;  %vm2589_vm15 = vcmask 154624   ;;  %s6922_s24 = smov 60  }
   0xa   :  { %64 = vrot.lane.b32.xlu0 %v7007_v5, %s6911_s13  ;;  %60 = vrot.lane.b32.xlu1 %v7012_v6, %s6911_s13 }
   0xe   :  { %78 = vrot.lane.b32.xlu0 %v7021_v7, %s6911_s13  ;;  %80 = vrot.lane.b32.xlu1 %v7026_v8, %s6911_s13 }
  0x12   :  { %82 = vrot.lane.b32.xlu0 %v7035_v9, %s6911_s13  ;;  %66 = vrot.lane.b32.xlu1 %v7040_v10, %s6911_s13 }
  0x16   :  { %68 = vrot.lane.b32.xlu0 %v7049_v11, %s6911_s13  ;;  %70 = vrot.lane.b32.xlu1 %v7054_v12, %s6911_s13 }
  0x1a   :  { %556 = vrot.lane.b32.xlu0 %v6976_v0, %s6913_s14  ;;  %558 = vrot.lane.b32.xlu1 %v6990_v2, %s6913_s14 }
  0x1e   :  { %554 = vrot.lane.b32.xlu0 %v6981_v1, %s6913_s14  ;;  %544 = vrot.lane.b32.xlu1 %v6995_v3, %s6913_s14 }
  0x22   :  { %546 = vrot.lane.b32.xlu0 %v7007_v5, %s6913_s14  ;;  %542 = vrot.lane.b32.xlu1 %v7012_v6, %s6913_s14 }
  0x26   :  { %560 = vrot.lane.b32.xlu0 %v7021_v7, %s6913_s14  ;;  %562 = vrot.lane.b32.xlu1 %v7026_v8, %s6913_s14 }
  0x2a   :  { %564 = vrot.lane.b32.xlu0 %v7035_v9, %s6913_s14  ;;  %548 = vrot.lane.b32.xlu1 %v7040_v10, %s6913_s14 }
  0x2e   :  { %550 = vrot.lane.b32.xlu0 %v7049_v11, %s6913_s14  ;;  %552 = vrot.lane.b32.xlu1 %v7054_v12, %s6913_s14 }
  0x32   :  { %827 = vrot.lane.b32.xlu0 %v6976_v0, %s6914_s0  ;;  %829 = vrot.lane.b32.xlu1 %v6990_v2, %s6914_s0 }
  0x36   :  { %831 = vrot.lane.b32.xlu0 %v7021_v7, %s6914_s0  ;;  %833 = vrot.lane.b32.xlu1 %v7026_v8, %s6914_s0 }
  0x3a   :  { %825 = vrot.lane.b32.xlu0 %v6981_v1, %s6914_s0  ;;  %815 = vrot.lane.b32.xlu1 %v6995_v3, %s6914_s0 }
  0x3e   :  { %817 = vrot.lane.b32.xlu0 %v7007_v5, %s6914_s0  ;;  %819 = vrot.lane.b32.xlu1 %v7040_v10, %s6914_s0 }
  0x42   :  { %821 = vrot.lane.b32.xlu0 %v7049_v11, %s6914_s0  ;;  %813 = vrot.lane.b32.xlu1 %v7012_v6, %s6914_s0 }
  0x46   :  { %1098 = vrot.lane.b32.xlu0 %v6976_v0, %s6915_s15  ;;  %1100 = vrot.lane.b32.xlu1 %v6990_v2, %s6915_s15 }
  0x4a   :  { %835 = vrot.lane.b32.xlu0 %v7035_v9, %s6914_s0  ;;  %1096 = vrot.lane.b32.xlu1 %v6981_v1, %s6915_s15 }
  0x4e   :  { %1086 = vrot.lane.b32.xlu0 %v6995_v3, %s6915_s15  ;;  %1088 = vrot.lane.b32.xlu1 %v7007_v5, %s6915_s15 }
  0x52   :  { %823 = vrot.lane.b32.xlu0 %v7054_v12, %s6914_s0  ;;  %1084 = vrot.lane.b32.xlu1 %v7012_v6, %s6915_s15 }
  0x56   :  { %1102 = vrot.lane.b32.xlu0 %v7021_v7, %s6915_s15  ;;  %1104 = vrot.lane.b32.xlu1 %v7026_v8, %s6915_s15 }
  0x5a   :  { %1106 = vrot.lane.b32.xlu0 %v7035_v9, %s6915_s15  ;;  %1090 = vrot.lane.b32.xlu1 %v7040_v10, %s6915_s15 }
  0x5e   :  { %1092 = vrot.lane.b32.xlu0 %v7049_v11, %s6915_s15  ;;  %1094 = vrot.lane.b32.xlu1 %v7054_v12, %s6915_s15 }
  0x62   :  { %1369 = vrot.lane.b32.xlu0 %v6976_v0, %s6916_s16  ;;  %1371 = vrot.lane.b32.xlu1 %v6990_v2, %s6916_s16 }
  0x66   :  { %1373 = vrot.lane.b32.xlu0 %v7021_v7, %s6916_s16  ;;  %1375 = vrot.lane.b32.xlu1 %v7026_v8, %s6916_s16 }
  0x6a   :  { %1367 = vrot.lane.b32.xlu0 %v6981_v1, %s6916_s16  ;;  %1357 = vrot.lane.b32.xlu1 %v6995_v3, %s6916_s16 }
  0x6e   :  { %1359 = vrot.lane.b32.xlu0 %v7007_v5, %s6916_s16  ;;  %1361 = vrot.lane.b32.xlu1 %v7040_v10, %s6916_s16 }
  0x72   :  { %1363 = vrot.lane.b32.xlu0 %v7049_v11, %s6916_s16  ;;  %1355 = vrot.lane.b32.xlu1 %v7012_v6, %s6916_s16 }
  0x74   :  { %v75_v13 = vpop.permute.xlu0 %74  ;;  %v73_v14 = vpop.permute.xlu1 %72 }
  0x75   :  { %v90_v18 = vsel %vm84_vm0, %v73_v14, %v75_v13 }
  0x76   :  { %1640 = vrot.lane.b32.xlu0 %v6976_v0, %s6917_s17  ;;  %1642 = vrot.lane.b32.xlu1 %v6990_v2, %s6917_s17 }
  0x78   :  { %v77_v15 = vpop.permute.xlu0 %76  ;;  %v63_v16 = vpop.permute.xlu1 %62 }
  0x79   :  { %v91_v17 = vsel %vm84_vm0, %v75_v13, %v77_v15 }
  0x7a   :  { %139 = vmatprep.subr.mxu0 %v91_v17  ;;  %1377 = vrot.lane.b32.xlu0 %v7035_v9, %s6916_s16 }
  0x7b   :  { %1638 = vrot.lane.b32.xlu1 %v6981_v1, %s6917_s17  ;;  %140 = vmatpush1.msra.mxu0 %v90_v18 }
  0x7c   :  { %v65_v19 = vpop.permute.xlu0 %64  ;;  %v61_v20 = vpop.permute.xlu1 %60 }
  0x7d   :  { %v86_v21 = vsel %vm84_vm0, %v63_v16, %v65_v19  ;;  %v85_v22 = vsel %vm84_vm0, %v61_v20, %v63_v16 }
  0x7e   :  { %1628 = vrot.lane.b32.xlu0 %v6995_v3, %s6917_s17  ;;  %141 = vmatprep.subr.mxu0 %v86_v21 }
  0x7f   :  { %1630 = vrot.lane.b32.xlu1 %v7007_v5, %s6917_s17  ;;  %142 = vmatpush1.msra.mxu0 %v85_v22 }
  0x80   :  { %v79_v24 = vpop.permute.xlu0 %78  ;;  %v81_v25 = vpop.permute.xlu1 %80  ;;  %6546 = vmatmul.mubr.msk.f32.vlgmr.msra.gmra.mxu0 %vm107_vm1, %v6545_v23 }
  0x81   :  { %v93_v26 = vsel %vm84_vm0, %v79_v24, %v81_v25  ;;  %v92_v27 = vsel %vm84_vm0, %v77_v15, %v79_v24  ;;  %317 = vmatprep.mubr.f32.mxu0 %v6912_v4 }
  0x82   :  { %1365 = vrot.lane.b32.xlu0 %v7054_v12, %s6916_s16  ;;  %210 = vmatprep.subr.mxu1 %v93_v26 }
  0x83   :  { %1626 = vrot.lane.b32.xlu1 %v7012_v6, %s6917_s17  ;;  %211 = vmatpush1.msra.mxu1 %v92_v27 }
  0x84   :  { %v83_v28 = vpop.permute.xlu0 %82  ;;  %v67_v29 = vpop.permute.xlu1 %66 }
  0x85   :  { %281 = vmatprep.subr.mxu0 %v83_v28  ;;  %v94_v30 = vsel %vm84_vm0, %v81_v25, %v83_v28  ;;  %v87_v35 = vsel %vm84_vm0, %v65_v19, %v67_v29 }
  0x86   :  { %1644 = vrot.lane.b32.xlu0 %v7021_v7, %s6917_s17  ;;  %282 = vmatpush1.msra.mxu0 %v94_v30  ;;  %v6560_v30 = vld [vmem:[%s10147_s1 + $0x10] sm:$0xf] }
  0x87   :  { %1646 = vrot.lane.b32.xlu1 %v7026_v8, %s6917_s17 }
  0x88   :  { %v69_v31 = vpop.permute.xlu0 %68  ;;  %v71_v32 = vpop.permute.xlu1 %70 }
  0x89   :  { %283 = vmatprep.subr.mxu0 %v71_v32  ;;  %v88_v33 = vsel %vm84_vm0, %v67_v29, %v69_v31  ;;  %v89_v34 = vsel %vm84_vm0, %v69_v31, %v71_v32 }
  0x8a   :  { %1648 = vrot.lane.b32.xlu0 %v7035_v9, %s6917_s17  ;;  %212 = vmatprep.subr.mxu1 %v88_v33 }
  0x8b   :  { %1632 = vrot.lane.b32.xlu1 %v7040_v10, %s6917_s17  ;;  %284 = vmatpush1.msra.mxu0 %v89_v34 }
  0x8c   :  { %213 = vmatpush1.msra.mxu1 %v87_v35  ;;  %426 = vmatprep.subr.mxu0 %v7021_v7  ;;  %v557_v36 = vpop.permute.xlu0 %556  ;;  %v559_v37 = vpop.permute.xlu1 %558 }
  0x8d   :  { %6548 = vmatmul.mubr.msk.f32.vlgmr.msra.gmra.mxu0 %vm107_vm1, %v6545_v23  ;;  %355 = vmatprep.subr.mxu1 %v6976_v0  ;;  %v573_v38 = vsel %vm566_vm2, %v557_v36, %v559_v37 }
  0x8e   :  { %427 = vmatpush1.msra.mxu0 %v6990_v2  ;;  %1634 = vrot.lane.b32.xlu0 %v7049_v11, %s6917_s17 }
  0x8f   :  { %428 = vmatprep.subr.mxu0 %v7040_v10  ;;  %1636 = vrot.lane.b32.xlu1 %v7054_v12, %s6917_s17 }
  0x90   :  { %429 = vmatpush1.msra.mxu0 %v7007_v5  ;;  %v555_v40 = vpop.permute.xlu0 %554  ;;  %v545_v41 = vpop.permute.xlu1 %544  ;;  %462 = vmatprep.mubr.f32.mxu0 %v6912_v4 }
  0x91   :  { %620 = vmatprep.subr.mxu0 %v573_v38  ;;  %v572_v42 = vsel %vm566_vm2, %v555_v40, %v557_v36  ;;  %6550 = vmatmul.mubr.msk.f32.vlgmr.msra.gmra.mxu0 %vm107_vm1, %v45_v39 }
  0x92   :  { %1911 = vrot.lane.b32.xlu0 %v6976_v0, %s6918_s22  ;;  %621 = vmatpush1.msra.mxu0 %v572_v42 }
  0x93   :  { %1913 = vrot.lane.b32.xlu1 %v6990_v2, %s6918_s22  ;;  %6547 = vmatmul.mubr.msk.f32.vlgmr.msra.gmra.mxu1 %vm107_vm1, %v6545_v23 }
  0x94   :  { %356 = vmatpush1.msra.mxu1 %v6981_v1  ;;  %v547_v43 = vpop.permute.xlu0 %546  ;;  %v543_v44 = vpop.permute.xlu1 %542  ;;  %391 = vmatprep.mubr.f32.mxu1 %v6912_v4 }
  0x95   :  { %357 = vmatprep.subr.mxu1 %v6995_v3  ;;  %v568_v45 = vsel %vm566_vm2, %v545_v41, %v547_v43  ;;  %656 = vmatprep.mubr.f32.mxu0 %v6912_v4  ;;  %v567_v46 = vsel %vm566_vm2, %v543_v44, %v545_v41 }
  0x96   :  { %358 = vmatpush1.msra.mxu1 %v7012_v6  ;;  %1915 = vrot.lane.b32.xlu0 %v7021_v7, %s6918_s22 }
  0x97   :  { %1917 = vrot.lane.b32.xlu1 %v7026_v8, %s6918_s22  ;;  %497 = vmatprep.subr.mxu1 %v7035_v9 }
  0x98   :  { %622 = vmatprep.subr.mxu0 %v568_v45  ;;  %6549 = vmatmul.mubr.msk.f32.vlgmr.msra.gmra.mxu1 %vm107_vm1, %v45_v39  ;;  %v561_v47 = vpop.permute.xlu0 %560  ;;  %v563_v48 = vpop.permute.xlu1 %562 }
  0x99   :  { %498 = vmatpush1.msra.mxu1 %v7026_v8  ;;  %623 = vmatpush1.msra.mxu0 %v567_v46  ;;  %v575_v49 = vsel %vm566_vm2, %v561_v47, %v563_v48  ;;  %v574_v50 = vsel %vm566_vm2, %v559_v37, %v561_v47 }
  0x9a   :  { %499 = vmatprep.subr.mxu1 %v7054_v12  ;;  %1909 = vrot.lane.b32.xlu0 %v6981_v1, %s6918_s22 }
  0x9b   :  { %500 = vmatpush1.msra.mxu1 %v7049_v11  ;;  %1899 = vrot.lane.b32.xlu1 %v6995_v3, %s6918_s22 }
  0x9c   :  { %533 = vmatprep.mubr.f32.mxu1 %v6912_v4  ;;  %691 = vmatprep.subr.mxu1 %v575_v49  ;;  %v565_v51 = vpop.permute.xlu0 %564  ;;  %v549_v52 = vpop.permute.xlu1 %548 }
  0x9d   :  { %6551 = vmatmul.mubr.msk.f32.vlgmr.msra.gmra.mxu1 %vm107_vm1, %v45_v39  ;;  %762 = vmatprep.subr.mxu0 %v565_v51  ;;  %v576_v54 = vsel %vm566_vm2, %v563_v48, %v565_v51  ;;  %v569_v59 = vsel %vm566_vm2, %v547_v43, %v549_v52 }
  0x9e   :  { %692 = vmatpush1.msra.mxu1 %v574_v50  ;;  %1901 = vrot.lane.b32.xlu0 %v7007_v5, %s6918_s22 }
  0x9f   :  { %1903 = vrot.lane.b32.xlu1 %v7040_v10, %s6918_s22  ;;  %6553 = vmatmul.mubr.msk.f32.vlgmr.msra.gmra.mxu0 %vm107_vm1, %v6552_v53 }
  0xa0   :  { %763 = vmatpush1.msra.mxu0 %v576_v54  ;;  %v551_v55 = vpop.permute.xlu0 %550  ;;  %v553_v56 = vpop.permute.xlu1 %552  ;;  %798 = vmatprep.mubr.f32.mxu0 %v6912_v4 }
  0xa1   :  { %764 = vmatprep.subr.mxu0 %v553_v56  ;;  %v570_v57 = vsel %vm566_vm2, %v549_v52, %v551_v55  ;;  %v571_v58 = vsel %vm566_vm2, %v551_v55, %v553_v56  ;;  %727 = vmatprep.mubr.f32.mxu1 %v6912_v4 }
  0xa2   :  { %1905 = vrot.lane.b32.xlu0 %v7049_v11, %s6918_s22  ;;  %693 = vmatprep.subr.mxu1 %v570_v57 }
  0xa3   :  { %1897 = vrot.lane.b32.xlu1 %v7012_v6, %s6918_s22  ;;  %765 = vmatpush1.msra.mxu0 %v571_v58  ;;  %v6564_v58 = vld [vmem:[%s10147_s1 + $0x14] sm:$0xf] }
  0xa4   :  { %694 = vmatpush1.msra.mxu1 %v569_v59  ;;  %v828_v60 = vpop.permute.xlu0 %827  ;;  %v830_v61 = vpop.permute.xlu1 %829  ;;  %6555 = vmatmul.mubr.msk.f32.vlgmr.msra.gmra.mxu0 %vm107_vm1, %v6552_v53 }
  0xa5   :  { %v844_v62 = vsel %vm837_vm3, %v828_v60, %v830_v61  ;;  %6554 = vmatmul.mubr.msk.f32.vlgmr.msra.gmra.mxu1 %vm107_vm1, %v6552_v53  ;;  %998 = vmatprep.mubr.f32.mxu0 %v6912_v4 }
  0xa6   :  { %2182 = vrot.lane.b32.xlu0 %v6976_v0, %s6919_s25  ;;  %891 = vmatprep.subr.mxu1 %v844_v62 }
  0xa7   :  { %2184 = vrot.lane.b32.xlu1 %v6990_v2, %s6919_s25  ;;  %927 = vmatprep.mubr.f32.mxu1 %v6912_v4 }
  0xa8   :  { %v832_v63 = vpop.permute.xlu0 %831  ;;  %v834_v13 = vpop.permute.xlu1 %833 }
  0xa9   :  { %v846_v14 = vsel %vm837_vm3, %v832_v63, %v834_v13  ;;  %v845_v15 = vsel %vm837_vm3, %v830_v61, %v832_v63 }
  0xaa   :  { %1919 = vrot.lane.b32.xlu0 %v7035_v9, %s6918_s22  ;;  %962 = vmatprep.subr.mxu0 %v846_v14 }
  0xab   :  { %2180 = vrot.lane.b32.xlu1 %v6981_v1, %s6919_s25  ;;  %963 = vmatpush1.msra.mxu0 %v845_v15 }
  0xac   :  { %v826_v0 = vpop.permute.xlu0 %825  ;;  %v816_v16 = vpop.permute.xlu1 %815 }
  0xad   :  { %v843_v2 = vsel %vm837_vm3, %v826_v0, %v828_v60 }
  0xae   :  { %2170 = vrot.lane.b32.xlu0 %v6995_v3, %s6919_s25  ;;  %892 = vmatpush1.msra.mxu1 %v843_v2 }
  0xaf   :  { %2172 = vrot.lane.b32.xlu1 %v7007_v5, %s6919_s25  ;;  %v6556_v5 = vld [vmem:[%s10147_s1 + $0xc] sm:$0xf] }
  0xb0   :  { %v818_v17 = vpop.permute.xlu0 %817  ;;  %v820_v18 = vpop.permute.xlu1 %819 }
  0xb1   :  { %v839_v19 = vsel %vm837_vm3, %v816_v16, %v818_v17 }
  0xb2   :  { %1907 = vrot.lane.b32.xlu0 %v7054_v12, %s6918_s22  ;;  %893 = vmatprep.subr.mxu1 %v839_v19 }
  0xb3   :  { %2168 = vrot.lane.b32.xlu1 %v7012_v6, %s6919_s25  ;;  %v840_v6 = vsel %vm837_vm3, %v818_v17, %v820_v18 }
  0xb4   :  { %v822_v1 = vpop.permute.xlu0 %821  ;;  %v814_v20 = vpop.permute.xlu1 %813 }
  0xb5   :  { %v838_v21 = vsel %vm837_vm3, %v814_v20, %v816_v16  ;;  %v841_v3 = vsel %vm837_vm3, %v820_v18, %v822_v1 }
  0xb6   :  { %2186 = vrot.lane.b32.xlu0 %v7021_v7, %s6919_s25  ;;  %894 = vmatpush1.msra.mxu1 %v838_v21  ;;  %v6568_v21 = vld [vmem:[%s10147_s1 + $0x18] sm:$0xf] }
  0xb7   :  { %2188 = vrot.lane.b32.xlu1 %v7026_v8, %s6919_s25  ;;  %964 = vmatprep.subr.mxu0 %v841_v3 }
  0xb8   :  { %965 = vmatpush1.msra.mxu0 %v840_v6  ;;  %v1099_v22 = vpop.permute.xlu0 %1098  ;;  %v1101_v23 = vpop.permute.xlu1 %1100  ;;  %6557 = vmatmul.mubr.msk.f32.vlgmr.msra.gmra.mxu1 %vm107_vm1, %v6556_v5 }
  0xb9   :  { %v1115_v24 = vsel %vm1108_vm4, %v1099_v22, %v1101_v23  ;;  %6558 = vmatmul.mubr.msk.f32.vlgmr.msra.gmra.mxu0 %vm107_vm1, %v6556_v5  ;;  %1069 = vmatprep.mubr.f32.mxu1 %v6912_v4 }
  0xba   :  { %2174 = vrot.lane.b32.xlu0 %v7040_v10, %s6919_s25  ;;  %1162 = vmatprep.subr.mxu0 %v1115_v24 }
  0xbb   :  { %2176 = vrot.lane.b32.xlu1 %v7049_v11, %s6919_s25  ;;  %1198 = vmatprep.mubr.f32.mxu0 %v6912_v4 }
  0xbc   :  { %v836_v7 = vpop.permute.xlu0 %835  ;;  %v1097_v8 = vpop.permute.xlu1 %1096 }
  0xbd   :  { %v1114_v25 = vsel %vm1108_vm4, %v1097_v8, %v1099_v22  ;;  %1033 = vmatprep.subr.mxu1 %v836_v7  ;;  %v847_v26 = vsel %vm837_vm3, %v834_v13, %v836_v7 }
  0xbe   :  { %2190 = vrot.lane.b32.xlu0 %v7035_v9, %s6919_s25  ;;  %1034 = vmatpush1.msra.mxu1 %v847_v26 }
  0xbf   :  { %2178 = vrot.lane.b32.xlu1 %v7054_v12, %s6919_s25  ;;  %1163 = vmatpush1.msra.mxu0 %v1114_v25 }
  0xc0   :  { %v1087_v10 = vpop.permute.xlu0 %1086  ;;  %v1089_v27 = vpop.permute.xlu1 %1088 }
  0xc1   :  { %v1110_v11 = vsel %vm1108_vm4, %v1087_v10, %v1089_v27 }
  0xc2   :  { %1164 = vmatprep.subr.mxu0 %v1110_v11 }
  0xc4   :  { %v824_v28 = vpop.permute.xlu0 %823  ;;  %v1085_v29 = vpop.permute.xlu1 %1084 }
  0xc5   :  { %v1109_v31 = vsel %vm1108_vm4, %v1085_v29, %v1087_v10  ;;  %1035 = vmatprep.subr.mxu1 %v824_v28  ;;  %v842_v9 = vsel %vm837_vm3, %v822_v1, %v824_v28 }
  0xc6   :  { %1036 = vmatpush1.msra.mxu1 %v842_v9  ;;  %1165 = vmatpush1.msra.mxu0 %v1109_v31 }
  0xc7   :  { %6559 = vmatmul.mubr.msk.f32.vlgmr.msra.gmra.mxu1 %vm107_vm1, %v6556_v5  ;;  %6561 = vmatmul.mubr.msk.f32.vlgmr.msra.gmra.mxu0 %vm107_vm1, %v6560_v30 }
  0xc8   :  { %v1103_v12 = vpop.permute.xlu0 %1102  ;;  %v1105_v32 = vpop.permute.xlu1 %1104  ;;  %1340 = vmatprep.mubr.f32.mxu0 %v6912_v4  ;;  %1269 = vmatprep.mubr.f32.mxu1 %v6912_v4 }
  0xc9   :  { %v1117_v33 = vsel %vm1108_vm4, %v1103_v12, %v1105_v32  ;;  %v1116_v34 = vsel %vm1108_vm4, %v1101_v23, %v1103_v12 }
  0xca   :  { %1233 = vmatprep.subr.mxu1 %v1117_v33 }
  0xcb   :  { %1234 = vmatpush1.msra.mxu1 %v1116_v34 }
  0xcc   :  { %v1107_v35 = vpop.permute.xlu0 %1106  ;;  %v1091_v36 = vpop.permute.xlu1 %1090 }
  0xcd   :  { %1304 = vmatprep.subr.mxu0 %v1107_v35  ;;  %v1118_v37 = vsel %vm1108_vm4, %v1105_v32, %v1107_v35  ;;  %v1111_v42 = vsel %vm1108_vm4, %v1089_v27, %v1091_v36 }
  0xce   :  { %1305 = vmatpush1.msra.mxu0 %v1118_v37 }
  0xd0   :  { %v1093_v38 = vpop.permute.xlu0 %1092  ;;  %v1095_v39 = vpop.permute.xlu1 %1094 }
  0xd1   :  { %1306 = vmatprep.subr.mxu0 %v1095_v39  ;;  %v1112_v40 = vsel %vm1108_vm4, %v1091_v36, %v1093_v38  ;;  %v1113_v41 = vsel %vm1108_vm4, %v1093_v38, %v1095_v39 }
  0xd2   :  { %1235 = vmatprep.subr.mxu1 %v1112_v40  ;;  %1307 = vmatpush1.msra.mxu0 %v1113_v41 }
  0xd3   :  { %1236 = vmatpush1.msra.mxu1 %v1111_v42  ;;  %6563 = vmatmul.mubr.msk.f32.vlgmr.msra.gmra.mxu0 %vm107_vm1, %v6560_v30  ;;  %v6572_v42 = vld [vmem:[%s10147_s1 + $0x1c] sm:$0xf] }
  0xd4   :  { %v1370_v43 = vpop.permute.xlu0 %1369  ;;  %v1372_v44 = vpop.permute.xlu1 %1371  ;;  %6562 = vmatmul.mubr.msk.f32.vlgmr.msra.gmra.mxu1 %vm107_vm1, %v6560_v30  ;;  %1540 = vmatprep.mubr.f32.mxu0 %v6912_v4 }
  0xd5   :  { %v1386_v45 = vsel %vm1379_vm5, %v1370_v43, %v1372_v44  ;;  %1469 = vmatprep.mubr.f32.mxu1 %v6912_v4 }
  0xd6   :  { %1433 = vmatprep.subr.mxu1 %v1386_v45 }
  0xd8   :  { %v1374_v46 = vpop.permute.xlu0 %1373  ;;  %v1376_v47 = vpop.permute.xlu1 %1375 }
  0xd9   :  { %v1388_v48 = vsel %vm1379_vm5, %v1374_v46, %v1376_v47  ;;  %v1387_v49 = vsel %vm1379_vm5, %v1372_v44, %v1374_v46 }
  0xda   :  { %1504 = vmatprep.subr.mxu0 %v1388_v48 }
  0xdb   :  { %1505 = vmatpush1.msra.mxu0 %v1387_v49 }
  0xdc   :  { %v1368_v50 = vpop.permute.xlu0 %1367  ;;  %v1358_v51 = vpop.permute.xlu1 %1357 }
  0xdd   :  { %v1385_v52 = vsel %vm1379_vm5, %v1368_v50, %v1370_v43 }
  0xde   :  { %1434 = vmatpush1.msra.mxu1 %v1385_v52 }
  0xe0   :  { %v1360_v53 = vpop.permute.xlu0 %1359  ;;  %v1362_v54 = vpop.permute.xlu1 %1361 }
  0xe1   :  { %v1381_v55 = vsel %vm1379_vm5, %v1358_v51, %v1360_v53  ;;  %v1382_v61 = vsel %vm1379_vm5, %v1360_v53, %v1362_v54 }
  0xe2   :  { %1435 = vmatprep.subr.mxu1 %v1381_v55 }
  0xe4   :  { %v1364_v56 = vpop.permute.xlu0 %1363  ;;  %v1356_v57 = vpop.permute.xlu1 %1355 }
  0xe5   :  { %v1380_v59 = vsel %vm1379_vm5, %v1356_v57, %v1358_v51  ;;  %v1383_v60 = vsel %vm1379_vm5, %v1362_v54, %v1364_v56 }
  0xe6   :  { %1436 = vmatpush1.msra.mxu1 %v1380_v59  ;;  %1506 = vmatprep.subr.mxu0 %v1383_v60 }
  0xe7   :  { %1507 = vmatpush1.msra.mxu0 %v1382_v61  ;;  %6565 = vmatmul.mubr.msk.f32.vlgmr.msra.gmra.mxu1 %vm107_vm1, %v6564_v58 }
  0xe8   :  { %v1641_v62 = vpop.permute.xlu0 %1640  ;;  %v1643_v63 = vpop.permute.xlu1 %1642  ;;  %6566 = vmatmul.mubr.msk.f32.vlgmr.msra.gmra.mxu0 %vm107_vm1, %v6564_v58  ;;  %1611 = vmatprep.mubr.f32.mxu1 %v6912_v4 }
  0xe9   :  { %v1657_v13 = vsel %vm1650_vm6, %v1641_v62, %v1643_v63  ;;  %1740 = vmatprep.mubr.f32.mxu0 %v6912_v4 }
  0xea   :  { %1704 = vmatprep.subr.mxu0 %v1657_v13 }
  0xec   :  { %v1378_v14 = vpop.permute.xlu0 %1377 }
  0xed   :  { %v1389_v15 = vsel %vm1379_vm5, %v1376_v47, %v1378_v14  ;;  %v1639_v0 = vpop.permute.xlu1 %1638  ;;  %1575 = vmatprep.subr.mxu1 %v1378_v14 }
  0xee   :  { %v1656_v16 = vsel %vm1650_vm6, %v1639_v0, %v1641_v62  ;;  %1576 = vmatpush1.msra.mxu1 %v1389_v15 }
  0xef   :  { %1705 = vmatpush1.msra.mxu0 %v1656_v16 }
  0xf0   :  { %v1629_v2 = vpop.permute.xlu0 %1628 }
  0xf1   :  { %v1631_v17 = vpop.permute.xlu1 %1630 }
  0xf2   :  { %v1652_v18 = vsel %vm1650_vm6, %v1629_v2, %v1631_v17 }
  0xf3   :  { %1706 = vmatprep.subr.mxu0 %v1652_v18 }
  0xf4   :  { %v1366_v19 = vpop.permute.xlu0 %1365 }
  0xf5   :  { %v1384_v1 = vsel %vm1379_vm5, %v1364_v56, %v1366_v19  ;;  %v1627_v20 = vpop.permute.xlu1 %1626  ;;  %1577 = vmatprep.subr.mxu1 %v1366_v19 }
  0xf6   :  { %v1651_v3 = vsel %vm1650_vm6, %v1627_v20, %v1629_v2  ;;  %1578 = vmatpush1.msra.mxu1 %v1384_v1 }
  0xf7   :  { %1707 = vmatpush1.msra.mxu0 %v1651_v3  ;;  %6567 = vmatmul.mubr.msk.f32.vlgmr.msra.gmra.mxu1 %vm107_vm1, %v6564_v58  ;;  %v6576_v58 = vld [vmem:[%s10147_s1 + $0x20] sm:$0xf] }
  0xf8   :  { %v1645_v5 = vpop.permute.xlu0 %1644  ;;  %6569 = vmatmul.mubr.msk.f32.vlgmr.msra.gmra.mxu0 %vm107_vm1, %v6568_v21  ;;  %1811 = vmatprep.mubr.f32.mxu1 %v6912_v4 }
  0xf9   :  { %v1658_v6 = vsel %vm1650_vm6, %v1643_v63, %v1645_v5  ;;  %v1647_v22 = vpop.permute.xlu1 %1646  ;;  %1882 = vmatprep.mubr.f32.mxu0 %v6912_v4 }
  0xfa   :  { %v1659_v23 = vsel %vm1650_vm6, %v1645_v5, %v1647_v22 }
  0xfb   :  { %1775 = vmatprep.subr.mxu1 %v1659_v23 }
  0xfc   :  { %1776 = vmatpush1.msra.mxu1 %v1658_v6  ;;  %v1649_v24 = vpop.permute.xlu0 %1648 }
  0xfd   :  { %v1660_v7 = vsel %vm1650_vm6, %v1647_v22, %v1649_v24  ;;  %v1633_v8 = vpop.permute.xlu1 %1632  ;;  %1846 = vmatprep.subr.mxu0 %v1649_v24 }
  0xfe   :  { %1847 = vmatpush1.msra.mxu0 %v1660_v7  ;;  %v1653_v27 = vsel %vm1650_vm6, %v1631_v17, %v1633_v8 }
 0x100   :  { %v1635_v25 = vpop.permute.xlu0 %1634 }
 0x101   :  { %v1637_v26 = vpop.permute.xlu1 %1636  ;;  %v1654_v10 = vsel %vm1650_vm6, %v1633_v8, %v1635_v25 }
 0x102   :  { %v1655_v11 = vsel %vm1650_vm6, %v1635_v25, %v1637_v26  ;;  %1848 = vmatprep.subr.mxu0 %v1637_v26  ;;  %1777 = vmatprep.subr.mxu1 %v1654_v10 }
 0x103   :  { %1849 = vmatpush1.msra.mxu0 %v1655_v11  ;;  %1778 = vmatpush1.msra.mxu1 %v1653_v27 }
 0x104   :  { %v1912_v28 = vpop.permute.xlu0 %1911  ;;  %6570 = vmatmul.mubr.msk.f32.vlgmr.msra.gmra.mxu1 %vm107_vm1, %v6568_v21  ;;  %6571 = vmatmul.mubr.msk.f32.vlgmr.msra.gmra.mxu0 %vm107_vm1, %v6568_v21 }
 0x105   :  { %v1914_v29 = vpop.permute.xlu1 %1913  ;;  %2011 = vmatprep.mubr.f32.mxu1 %v6912_v4  ;;  %2082 = vmatprep.mubr.f32.mxu0 %v6912_v4 }
 0x106   :  { %v1928_v30 = vsel %vm1921_vm7, %v1912_v28, %v1914_v29 }
 0x107   :  { %1975 = vmatprep.subr.mxu1 %v1928_v30 }
 0x108   :  { %v1916_v31 = vpop.permute.xlu0 %1915 }
 0x109   :  { %v1929_v9 = vsel %vm1921_vm7, %v1914_v29, %v1916_v31  ;;  %v1918_v12 = vpop.permute.xlu1 %1917 }
 0x10a   :  { %v1930_v32 = vsel %vm1921_vm7, %v1916_v31, %v1918_v12 }
 0x10b   :  { %2046 = vmatprep.subr.mxu0 %v1930_v32 }
 0x10c   :  { %2047 = vmatpush1.msra.mxu0 %v1929_v9  ;;  %v1910_v33 = vpop.permute.xlu0 %1909 }
 0x10d   :  { %v1927_v34 = vsel %vm1921_vm7, %v1910_v33, %v1912_v28  ;;  %v1900_v35 = vpop.permute.xlu1 %1899 }
 0x10e   :  { %1976 = vmatpush1.msra.mxu1 %v1927_v34 }
 0x110   :  { %v1902_v36 = vpop.permute.xlu0 %1901 }
 0x111   :  { %v1904_v37 = vpop.permute.xlu1 %1903  ;;  %v1923_v38 = vsel %vm1921_vm7, %v1900_v35, %v1902_v36 }
 0x112   :  { %1977 = vmatprep.subr.mxu1 %v1923_v38  ;;  %v1924_v43 = vsel %vm1921_vm7, %v1902_v36, %v1904_v37 }
 0x114   :  { %v1906_v39 = vpop.permute.xlu0 %1905 }
 0x115   :  { %v1898_v40 = vpop.permute.xlu1 %1897  ;;  %v1925_v41 = vsel %vm1921_vm7, %v1904_v37, %v1906_v39 }
 0x116   :  { %v1922_v44 = vsel %vm1921_vm7, %v1898_v40, %v1900_v35  ;;  %2048 = vmatprep.subr.mxu0 %v1925_v41 }
 0x117   :  { %1978 = vmatpush1.msra.mxu1 %v1922_v44  ;;  %2049 = vmatpush1.msra.mxu0 %v1924_v43 }
 0x118   :  { %6573 = vmatmul.mubr.msk.f32.vlgmr.msra.gmra.mxu1 %vm107_vm1, %v6572_v42  ;;  %v2183_v45 = vpop.permute.xlu0 %2182  ;;  %6574 = vmatmul.mubr.msk.f32.vlgmr.msra.gmra.mxu0 %vm107_vm1, %v6572_v42 }
 0x119   :  { %v2185_v46 = vpop.permute.xlu1 %2184  ;;  %2153 = vmatprep.mubr.f32.mxu1 %v6912_v4  ;;  %2282 = vmatprep.mubr.f32.mxu0 %v6912_v4 }
 0x11a   :  { %v2199_v47 = vsel %vm2192_vm8, %v2183_v45, %v2185_v46 }
 0x11b   :  { %2246 = vmatprep.subr.mxu0 %v2199_v47 }
 0x11c   :  { %v1920_v48 = vpop.permute.xlu0 %1919 }
 0x11d   :  { %v1931_v49 = vsel %vm1921_vm7, %v1918_v12, %v1920_v48  ;;  %v2181_v50 = vpop.permute.xlu1 %2180  ;;  %2117 = vmatprep.subr.mxu1 %v1920_v48 }
 0x11e   :  { %v2198_v51 = vsel %vm2192_vm8, %v2181_v50, %v2183_v45  ;;  %2118 = vmatpush1.msra.mxu1 %v1931_v49 }
 0x11f   :  { %2247 = vmatpush1.msra.mxu0 %v2198_v51 }
 0x120   :  { %v2171_v52 = vpop.permute.xlu0 %2170 }
 0x121   :  { %v2173_v53 = vpop.permute.xlu1 %2172 }
 0x122   :  { %v2194_v54 = vsel %vm2192_vm8, %v2171_v52, %v2173_v53 }
 0x123   :  { %2248 = vmatprep.subr.mxu0 %v2194_v54 }
 0x124   :  { %v1908_v55 = vpop.permute.xlu0 %1907 }
 0x125   :  { %v1926_v56 = vsel %vm1921_vm7, %v1906_v39, %v1908_v55  ;;  %v2169_v57 = vpop.permute.xlu1 %2168  ;;  %2119 = vmatprep.subr.mxu1 %v1908_v55 }
 0x126   :  { %v2193_v59 = vsel %vm2192_vm8, %v2169_v57, %v2171_v52  ;;  %2120 = vmatpush1.msra.mxu1 %v1926_v56 }
 0x127   :  { %2249 = vmatpush1.msra.mxu0 %v2193_v59  ;;  %6575 = vmatmul.mubr.msk.f32.vlgmr.msra.gmra.mxu1 %vm107_vm1, %v6572_v42 }
 0x128   :  { %6577 = vmatmul.mubr.msk.f32.vlgmr.msra.gmra.mxu0 %vm107_vm1, %v6576_v58  ;;  %v2187_v60 = vpop.permute.xlu0 %2186  ;;  %2353 = vmatprep.mubr.f32.mxu1 %v6912_v4 }
 0x129   :  { %v2200_v61 = vsel %vm2192_vm8, %v2185_v46, %v2187_v60  ;;  %v2189_v62 = vpop.permute.xlu1 %2188  ;;  %2424 = vmatprep.mubr.f32.mxu0 %v6912_v4 }
 0x12a   :  { %v2201_v63 = vsel %vm2192_vm8, %v2187_v60, %v2189_v62 }
 0x12b   :  { %2317 = vmatprep.subr.mxu1 %v2201_v63 }
 0x12c   :  { %2318 = vmatpush1.msra.mxu1 %v2200_v61  ;;  %v2175_v13 = vpop.permute.xlu0 %2174 }
 0x12d   :  { %v2195_v14 = vsel %vm2192_vm8, %v2173_v53, %v2175_v13  ;;  %v2177_v15 = vpop.permute.xlu1 %2176 }
 0x12e   :  { %v2196_v0 = vsel %vm2192_vm8, %v2175_v13, %v2177_v15  ;;  %v2438_v13 = vlaneseq }
 0x12f   :  { %2319 = vmatprep.subr.mxu1 %v2196_v0 }
 0x130   :  { %2320 = vmatpush1.msra.mxu1 %v2195_v14  ;;  %v2191_v16 = vpop.permute.xlu0 %2190 }
 0x131   :  { %v2202_v2 = vsel %vm2192_vm8, %v2189_v62, %v2191_v16  ;;  %6578 = vmatmul.mubr.msk.f32.vlgmr.msra.gmra.mxu1 %vm107_vm1, %v6576_v58  ;;  %v2179_v17 = vpop.permute.xlu1 %2178  ;;  %2388 = vmatprep.subr.mxu0 %v2191_v16 }
 0x132   :  { %2389 = vmatpush1.msra.mxu0 %v2202_v2  ;;  %2715 = vmatprep.mubr.f32.mxu1 %v6912_v4  ;;  %v2197_v18 = vsel %vm2192_vm8, %v2177_v15, %v2179_v17 }
 0x133   :  { %2390 = vmatprep.subr.mxu0 %v2179_v17 }
 0x134   :  { %2391 = vmatpush1.msra.mxu0 %v2197_v18 }
 0x135   :  { %6579 = vmatmul.mubr.msk.f32.vlgmr.msra.gmra.mxu0 %vm107_vm1, %v6576_v58  ;;  %vm2600_vm1 = vmor %vm2599_vm14, %vm2598_vm13 }
 0x136   :  { %2786 = vmatprep.mubr.f32.mxu0 %v6912_v4 }
 0x140   :  { %v177_v19 = vpop.f32.mrf.mxu0 }
 0x142   :  { %v179_v1 = vpop.f32.mrf.mxu0 }
 0x14d   :  { %v319_v21 = vpop.f32.mrf.mxu0 }
 0x14f   :  { %v321_v5 = vpop.f32.mrf.mxu0 }
 0x151   :  { %v464_v22 = vpop.f32.mrf.mxu0 }
 0x153   :  { %v248_v20 = vpop.f32.mrf.mxu1  ;;  %v466_v24 = vpop.f32.mrf.mxu0 }
 0x154   :  { %v465_v50 = vadd.f32 %v464_v22, %v248_v20 }
 0x155   :  { %v250_v3 = vpop.f32.mrf.mxu1 }
 0x156   :  { %v467_v52 = vadd.f32 %v466_v24, %v250_v3 }
 0x158   :  { %v393_v6 = vpop.f32.mrf.mxu1 }
 0x159   :  { %v394_v43 = vadd.f32 %v393_v6, %v177_v19 }
 0x15a   :  { %v395_v23 = vpop.f32.mrf.mxu1 }
 0x15b   :  { %v396_v42 = vadd.f32 %v395_v23, %v179_v1  ;;  %v2439_v1 = vshrl.u32 %v2438_v13, 7 }
 0x15d   :  { %v535_v7 = vpop.f32.mrf.mxu1 }
 0x15e   :  { %v536_v56 = vadd.f32 %v535_v7, %v319_v21 }
 0x15f   :  { %v658_v8 = vpop.f32.mrf.mxu0  ;;  %v537_v25 = vpop.f32.mrf.mxu1 }
 0x160   :  { %v805_v47 = vadd.f32 %v658_v8, %v394_v43  ;;  %v538_v58 = vadd.f32 %v537_v25, %v321_v5  ;;  %v2444_v5 = vsub.s32 1, %v2439_v1  ;;  %v2440_v25 = vsub.s32 0, %v2439_v1 }
 0x161   :  { %v660_v26 = vpop.f32.mrf.mxu0 }
 0x162   :  { %v806_v46 = vadd.f32 %v660_v26, %v396_v42 }
 0x164   :  { %v800_v27 = vpop.f32.mrf.mxu0 }
 0x165   :  { %v729_v10 = vpop.f32.mrf.mxu1  ;;  %v809_v14 = vadd.f32 %v800_v27, %v536_v56 }
 0x166   :  { %v802_v28 = vpop.f32.mrf.mxu0  ;;  %v807_v57 = vadd.f32 %v729_v10, %v465_v50  ;;  %v32_v10 = vld [vmem:[%s10148_s7] sm:$0x3f]  ;;  %v2460_v50 = vsub.s32 5, %v2439_v1 }
 0x167   :  { %v731_v11 = vpop.f32.mrf.mxu1  ;;  %v810_v2 = vadd.f32 %v802_v28, %v538_v58 }
 0x168   :  { %v808_v60 = vadd.f32 %v731_v11, %v467_v52  ;;  %v7419_v13 = vrot.slane %v32_v10, %v2460_v50 }
 0x178   :  { %v929_v29 = vpop.f32.mrf.mxu1 }
 0x179   :  { %v1000_v4 = vpop.f32.mrf.mxu0  ;;  %v1076_v53 = vadd.f32 %v929_v29, %v805_v47 }
 0x17a   :  { %v931_v30 = vpop.f32.mrf.mxu1  ;;  %v1078_v15 = vadd.f32 %v1000_v4, %v807_v57  ;;  %v7404_v4 = vrot.slane %v32_v10, %v2444_v5  ;;  %v6920_v5 = vmov 0  }
 0x17b   :  { %v1002_v31 = vpop.f32.mrf.mxu0  ;;  %v1077_v51 = vadd.f32 %v931_v30, %v806_v46  ;;  %6713 = vset.pattern.permute.xlu0 %v6920_v5  ;;  %6714 = vset.pattern.permute.xlu1 %v6920_v5 }
 0x17c   :  { %v1079_v18 = vadd.f32 %v1002_v31, %v808_v60 }
 0x187   :  { %v1071_v9 = vpop.f32.mrf.mxu1  ;;  %v1200_v12 = vpop.f32.mrf.mxu0 }
 0x188   :  { %v1347_v61 = vadd.f32 %v1200_v12, %v1076_v53  ;;  %v1080_v20 = vadd.f32 %v1071_v9, %v809_v14 }
 0x189   :  { %v1073_v32 = vpop.f32.mrf.mxu1  ;;  %v1202_v33 = vpop.f32.mrf.mxu0 }
 0x18a   :  { %v1348_v59 = vadd.f32 %v1202_v33, %v1077_v51  ;;  %v1081_v22 = vadd.f32 %v1073_v32, %v810_v2  ;;  %v7406_v33 = vrot.slane %v32_v10, %v2440_v25 }
 0x193   :  { %v1342_v35 = vpop.f32.mrf.mxu0 }
 0x194   :  { %v1271_v34 = vpop.f32.mrf.mxu1  ;;  %v1351_v27 = vadd.f32 %v1342_v35, %v1080_v20 }
 0x195   :  { %v1344_v37 = vpop.f32.mrf.mxu0  ;;  %v1349_v3 = vadd.f32 %v1271_v34, %v1078_v15  ;;  %v2448_v34 = vsub.s32 2, %v2439_v1 }
 0x196   :  { %v1273_v36 = vpop.f32.mrf.mxu1  ;;  %v1352_v30 = vadd.f32 %v1344_v37, %v1081_v22  ;;  %v2530_v22 = vld [vmem:[%s10149_s2] sm:$0xf] }
 0x197   :  { %v1350_v24 = vadd.f32 %v1273_v36, %v1079_v18  ;;  %v2452_v36 = vsub.s32 3, %v2439_v1  ;;  %v7410_v37 = vrot.slane %v32_v10, %v2448_v34 }
 0x1a7   :  { %v1471_v38 = vpop.f32.mrf.mxu1 }
 0x1a8   :  { %v1542_v39 = vpop.f32.mrf.mxu0  ;;  %v1618_v19 = vadd.f32 %v1471_v38, %v1347_v61 }
 0x1a9   :  { %v1473_v40 = vpop.f32.mrf.mxu1  ;;  %v1620_v11 = vadd.f32 %v1542_v39, %v1349_v3  ;;  %v2456_v39 = vsub.s32 4, %v2439_v1 }
 0x1aa   :  { %v1544_v41 = vpop.f32.mrf.mxu0  ;;  %v1619_v17 = vadd.f32 %v1473_v40, %v1348_v59 }
 0x1ab   :  { %v1621_v12 = vadd.f32 %v1544_v41, %v1350_v24  ;;  %v7415_v56 = vrot.slane %v32_v10, %v2456_v39 }
 0x1b7   :  { %v1613_v44 = vpop.f32.mrf.mxu1 }
 0x1b8   :  { %v1742_v45 = vpop.f32.mrf.mxu0  ;;  %v1622_v38 = vadd.f32 %v1613_v44, %v1351_v27 }
 0x1b9   :  { %v1615_v48 = vpop.f32.mrf.mxu1  ;;  %v1889_v7 = vadd.f32 %v1742_v45, %v1618_v19 }
 0x1ba   :  { %v1744_v49 = vpop.f32.mrf.mxu0  ;;  %v1623_v43 = vadd.f32 %v1615_v48, %v1352_v30 }
 0x1bb   :  { %v1890_v23 = vadd.f32 %v1744_v49, %v1619_v17  ;;  %v7412_v49 = vrot.slane %v32_v10, %v2452_v36 }
 0x1c4   :  { %v1813_v54 = vpop.f32.mrf.mxu1  ;;  %v1884_v55 = vpop.f32.mrf.mxu0 }
 0x1c5   :  { %v1891_v40 = vadd.f32 %v1813_v54, %v1620_v11  ;;  %v1893_v51 = vadd.f32 %v1884_v55, %v1622_v38 }
 0x1c6   :  { %v1815_v62 = vpop.f32.mrf.mxu1  ;;  %v1886_v63 = vpop.f32.mrf.mxu0 }
 0x1c7   :  { %v1892_v45 = vadd.f32 %v1815_v62, %v1621_v12  ;;  %v1894_v54 = vadd.f32 %v1886_v63, %v1623_v43 }
 0x1d8   :  { %v2013_v0 = vpop.f32.mrf.mxu1  ;;  %v2084_v16 = vpop.f32.mrf.mxu0 }
 0x1d9   :  { %v2160_v28 = vadd.f32 %v2013_v0, %v1889_v7  ;;  %v2162_v46 = vadd.f32 %v2084_v16, %v1891_v40 }
 0x1da   :  { %v2015_v21 = vpop.f32.mrf.mxu1  ;;  %v2086_v6 = vpop.f32.mrf.mxu0 }
 0x1db   :  { %v2161_v26 = vadd.f32 %v2015_v21, %v1890_v23  ;;  %v2163_v52 = vadd.f32 %v2086_v6, %v1892_v45 }
 0x1e7   :  { %v2155_v31 = vpop.f32.mrf.mxu1 }
 0x1e8   :  { %v2284_v8 = vpop.f32.mrf.mxu0  ;;  %v2164_v57 = vadd.f32 %v2155_v31, %v1893_v51 }
 0x1e9   :  { %v2431_v32 = vadd.f32 %v2284_v8, %v2160_v28  ;;  %v2157_v35 = vpop.f32.mrf.mxu1 }
 0x1ea   :  { %v2286_v29 = vpop.f32.mrf.mxu0  ;;  %v2165_v14 = vadd.f32 %v2157_v35, %v1894_v54 }
 0x1eb   :  { %v2432_v9 = vadd.f32 %v2286_v29, %v2161_v26  ;;  %v2468_v47 = vmul.f32 %v7406_v33, %v2431_v32 }
 0x1ed   :  { %v2469_v42 = vmul.f32 %v7404_v4, %v2432_v9  ;;  %v2475_v58 = vsel %vm2474_vm9, %v2468_v47, 0.0 }
 0x1ef   :  { %v2476_v44 = vsel %vm2474_vm9, %v2469_v42, 0.0 }
 0x1f0   :  { %v2477_v61 = vadd.f32 %v2476_v44, %v2475_v58  ;;  %v2542_v44 = vld [vmem:[%s10150_s3] sm:$0xf]  ;;  %s6921_s3 = smov 19  }
 0x1f1   :  { %v2355_v41 = vpop.f32.mrf.mxu1 }
 0x1f2   :  { %v2433_v53 = vadd.f32 %v2355_v41, %v2162_v46 }
 0x1f3   :  { %v2357_v48 = vpop.f32.mrf.mxu1 }
 0x1f4   :  { %v2470_v59 = vmul.f32 %v7410_v37, %v2433_v53  ;;  %v2434_v60 = vadd.f32 %v2357_v48, %v2163_v52 }
 0x1f5   :  { %v2426_v62 = vpop.f32.mrf.mxu0 }
 0x1f6   :  { %v2478_v55 = vsel %vm2474_vm9, %v2470_v59, 0.0  ;;  %v2471_v15 = vmul.f32 %v7412_v49, %v2434_v60  ;;  %v2435_v0 = vadd.f32 %v2426_v62, %v2164_v57 }
 0x1f7   :  { %v2479_v63 = vadd.f32 %v2478_v55, %v2477_v61  ;;  %v2428_v16 = vpop.f32.mrf.mxu0 }
 0x1f8   :  { %v2480_v2 = vsel %vm2474_vm9, %v2471_v15, 0.0  ;;  %v2472_v17 = vmul.f32 %v7415_v56, %v2435_v0  ;;  %v2436_v18 = vadd.f32 %v2428_v16, %v2165_v14 }
 0x1f9   :  { %v2481_v19 = vadd.f32 %v2480_v2, %v2479_v63 }
 0x1fa   :  { %v2473_v1 = vmul.f32 %v7419_v13, %v2436_v18  ;;  %v2482_v20 = vsel %vm2474_vm9, %v2472_v17, 0.0 }
 0x1fb   :  { %v2483_v3 = vadd.f32 %v2482_v20, %v2481_v19 }
 0x1fc   :  { %v2485_v21 = vsel %vm2484_vm10, %v2473_v1, 0.0 }
 0x1fd   :  { %v2486_v6 = vadd.f32 %v2485_v21, %v2483_v3 }
 0x1ff   :  { %2487 = vadd.xlane.f32.xlu0 %v2486_v6 }
 0x215   :  { %2533 = vperm.xlu0 %6713, %v2530_v22  }
 0x288   :  { %v2488_v23 = vpop.xlane.xlu0 %2487 }
 0x289   :  { %v2489_v24 = vmul.f32 0.001953125, %v2488_v23 }
 0x28b   :  { %v2490_v7 = vsub.f32 %v2431_v32, %v2489_v24  ;;  %v2491_v8 = vsub.f32 %v2432_v9, %v2489_v24  ;;  %v2492_v25 = vsub.f32 %v2433_v53, %v2489_v24  ;;  %v2493_v26 = vsub.f32 %v2434_v60, %v2489_v24 }
 0x28c   :  { %v2494_v10 = vsub.f32 %v2435_v0, %v2489_v24  ;;  %v2495_v27 = vsub.f32 %v2436_v18, %v2489_v24 }
 0x28d   :  { %v2496_v11 = vmul.f32 %v2490_v7, %v2490_v7  ;;  %v2497_v28 = vmul.f32 %v2491_v8, %v2491_v8  ;;  %v2498_v29 = vmul.f32 %v2492_v25, %v2492_v25  ;;  %v2499_v30 = vmul.f32 %v2493_v26, %v2493_v26 }
 0x28e   :  { %v2500_v31 = vmul.f32 %v2494_v10, %v2494_v10  ;;  %v2501_v38 = vmul.f32 %v2495_v27, %v2495_v27 }
 0x28f   :  { %v2502_v12 = vmul.f32 %v2496_v11, %v7406_v33  ;;  %v2503_v34 = vmul.f32 %v2497_v28, %v7404_v4  ;;  %v2504_v36 = vmul.f32 %v2498_v29, %v7410_v37  ;;  %v2505_v40 = vmul.f32 %v2499_v30, %v7412_v49 }
 0x290   :  { %v2506_v43 = vmul.f32 %v2500_v31, %v7415_v56  ;;  %v2507_v45 = vmul.f32 %v2501_v38, %v7419_v13  ;;  %v2534_v58 = vpop.permute.xlu0 %2533 }
 0x291   :  { %v2508_v9 = vsel %vm2474_vm9, %v2502_v12, 0.0  ;;  %v2509_v32 = vsel %vm2474_vm9, %v2503_v34, 0.0  ;;  %v2511_v35 = vsel %vm2474_vm9, %v2504_v36, 0.0  ;;  %v2513_v46 = vsel %vm2474_vm9, %v2505_v40, 0.0 }
 0x292   :  { %v2510_v42 = vadd.f32 %v2509_v32, %v2508_v9  ;;  %v2515_v41 = vsel %vm2474_vm9, %v2506_v43, 0.0  ;;  %v2517_v51 = vsel %vm2484_vm10, %v2507_v45, 0.0  ;;  %vm2603_vm10 = vcmask 220164  }
 0x293   :  { %vm2604_vm11 = vmor %vm2603_vm10, %vm2474_vm9 }
 0x294   :  { %v2512_v39 = vadd.f32 %v2511_v35, %v2510_v42 }
 0x296   :  { %v2514_v47 = vadd.f32 %v2513_v46, %v2512_v39 }
 0x298   :  { %v2516_v50 = vadd.f32 %v2515_v41, %v2514_v47 }
 0x29a   :  { %v2518_v52 = vadd.f32 %v2517_v51, %v2516_v50 }
 0x29c   :  { %2519 = vadd.xlane.f32.xlu1 %v2518_v52 }
 0x2ad   :  { %2545 = vperm.xlu1 %6714, %v2542_v44  }
 0x325   :  { %v2520_v53 = vpop.xlane.xlu1 %2519 }
 0x326   :  { %v2521_v54 = vmul.f32 0.001953125, %v2520_v53 }
 0x328   :  { %v2522_v48 = vadd.f32 1e-05, %v2521_v54 }
 0x329   :  { %v2546_v15 = vpop.permute.xlu1 %2545 }
 0x32a   :  { %6722 = vrsqrt.f32 %v2522_v48 }
 0x337   :  { %v6723_v57 = vpop.eup %6722 }
 0x338   :  { %v2524_v59 = vmul.f32 %v6723_v57, %v2490_v7  ;;  %v2525_v60 = vmul.f32 %v6723_v57, %v2491_v8  ;;  %v2526_v61 = vmul.f32 %v6723_v57, %v2492_v25  ;;  %v2527_v62 = vmul.f32 %v6723_v57, %v2493_v26  ;;  %v7449_v26 = vld [vmem:[#allocation2] sm:$0xff] }
 0x339   :  { %v2528_v14 = vmul.f32 %v6723_v57, %v2494_v10  ;;  %v2529_v55 = vmul.f32 %v6723_v57, %v2495_v27  ;;  %2570 = vst.msk [vmem:[#allocation2 + $0x10] sm:$0xff] %vm2569_vm12, %v7449_v26  ;;  %vm2635_vm12 = vcmask 31744  }
 0x33a   :  { %v2536_v0 = vmul.f32 %v2534_v58, %v2524_v59  ;;  %v2537_v63 = vmul.f32 %v2534_v58, %v2525_v60  ;;  %v2538_v16 = vmul.f32 %v2534_v58, %v2526_v61  ;;  %v2539_v2 = vmul.f32 %v2534_v58, %v2527_v62 }
 0x33b   :  { %v2540_v17 = vmul.f32 %v2534_v58, %v2528_v14  ;;  %v2541_v18 = vmul.f32 %v2534_v58, %v2529_v55 }
 0x33c   :  { %v2548_v19 = vadd.f32 %v2546_v15, %v2536_v0  ;;  %v2549_v1 = vadd.f32 %v2546_v15, %v2537_v63  ;;  %v2550_v20 = vadd.f32 %v2546_v15, %v2538_v16  ;;  %v2551_v3 = vadd.f32 %v2546_v15, %v2539_v2 }
 0x33d   :  { %v2552_v21 = vadd.f32 %v2546_v15, %v2540_v17  ;;  %v2553_v6 = vadd.f32 %v2546_v15, %v2541_v18  ;;  %v6580_v17 = vld [vmem:[%s10151_s4 + $0x8] sm:$0xff] }
 0x33e   :  { %v2554_v5 = vmax.f32 %v2548_v19, 0.0  ;;  %v2555_v22 = vmax.f32 %v2549_v1, 0.0  ;;  %v2556_v23 = vmax.f32 %v2550_v20, 0.0  ;;  %v2557_v24 = vmax.f32 %v2551_v3, 0.0  ;;  %v2609_v1 = vld [vmem:[%s10151_s4] sm:$0xff] }
 0x33f   :  { %v2558_v25 = vmax.f32 %v2552_v21, 0.0  ;;  %v2559_v28 = vmax.f32 %v2553_v6, 0.0 }
 0x340   :  { %v2560_v7 = vmul.f32 %v2554_v5, %v7406_v33  ;;  %v2561_v8 = vmul.f32 %v2555_v22, %v7404_v4  ;;  %v2562_v27 = vmul.f32 %v2556_v23, %v7410_v37  ;;  %v2563_v11 = vmul.f32 %v2557_v24, %v7412_v49  ;;  %v6599_v23 = vld [vmem:[%s10151_s4 + $0x10] sm:$0xff] }
 0x341   :  { %v2564_v30 = vmul.f32 %v2558_v25, %v7415_v56  ;;  %v2565_v31 = vmul.f32 %v2559_v28, %v7419_v13 }
 0x342   :  { %v2577_v10 = vcombine.low %v2560_v7, %v2561_v8  ;;  %v2578_v29 = vcombine.low %v2562_v27, %v2563_v11 }
 0x343   :  { %v2579_v12 = vcombine.low %v2564_v30, %v2565_v31 }
 0x344   :  { %2580 = vrot.lane.b32.xlu1 %v2577_v10, %s6921_s3 }
 0x348   :  { %2582 = vrot.lane.b32.xlu1 %v2578_v29, %s6921_s3 }
 0x34c   :  { %2584 = vrot.lane.b32.xlu1 %v2579_v12, %s6921_s3 }
 0x3b6   :  { %v2581_v34 = vpop.permute.xlu1 %2580 }
 0x3b7   :  { %v2586_v36 = vrot.slane %v2581_v34, 4 }
 0x3b9   :  { %v2590_v38 = vsel %vm2589_vm15, %v2586_v36, %v2581_v34 }
 0x3ba   :  { %2601 = vst.msk [vmem:[#allocation2] sm:$0xff] %vm2600_vm1, %v2590_v38  ;;  %v2583_v40 = vpop.permute.xlu1 %2582  ;;  %v6609_v38 = vld [vmem:[%s10151_s4 + $0x18] sm:$0xff] }
 0x3bb   :  { %v2587_v9 = vrot.slane %v2583_v40, 4 }
 0x3bd   :  { %v2591_v32 = vsel %vm2474_vm9, %v2586_v36, %v2587_v9 }
 0x3be   :  { %v7459_v42 = vsel %vm2589_vm15, %v2591_v32, %v2583_v40  ;;  %v2585_v43 = vpop.permute.xlu1 %2584 }
 0x3bf   :  { %v2588_v35 = vrot.slane %v2585_v43, 4  ;;  %3107 = vrot.lane.b32.xlu0 %v7459_v42, %s6913_s14  ;;  %v7502_v50 = vcombine.high %v7459_v42, %v7459_v42 }
 0x3c1   :  { %v2593_v39 = vsel %vm2474_vm9, %v2587_v9, %v2588_v35  ;;  %v7465_v45 = vld [vmem:[#allocation2] sm:$0xff] }
 0x3c2   :  { %v2594_v46 = vsel %vm2589_vm15, %v2593_v39, %v2585_v43  ;;  %2618 = vrot.lane.b32.xlu1 %v7465_v45, %s6911_s13  ;;  %v7490_v41 = vcombine.high %v7465_v45, %v7465_v45 }
 0x3c3   :  { %2605 = vst.msk [vmem:[#allocation2 + $0x10] sm:$0xff] %vm2604_vm11, %v2594_v46  ;;  %3369 = vrot.lane.b32.xlu0 %v7459_v42, %s6914_s0 }
 0x3c6   :  { %3103 = vrot.lane.b32.xlu1 %v7465_v45, %s6913_s14 }
 0x3ca   :  { %3365 = vrot.lane.b32.xlu1 %v7465_v45, %s6914_s0  ;;  %v7476_v47 = vld [vmem:[#allocation2 + $0x10] sm:$0xff] }
 0x3cb   :  { %3373 = vrot.lane.b32.xlu0 %v7476_v47, %s6914_s0  ;;  %v7510_v51 = vcombine.high %v7476_v47, %v7476_v47 }
 0x3ce   :  { %3627 = vrot.lane.b32.xlu1 %v7465_v45, %s6915_s15 }
 0x3cf   :  { %3893 = vrot.lane.b32.xlu0 %v7459_v42, %s6916_s16 }
 0x3d2   :  { %3889 = vrot.lane.b32.xlu1 %v7465_v45, %s6916_s16 }
 0x3d3   :  { %3897 = vrot.lane.b32.xlu0 %v7476_v47, %s6916_s16 }
 0x3d6   :  { %2622 = vrot.lane.b32.xlu1 %v7459_v42, %s6911_s13 }
 0x3d7   :  { %3629 = vrot.lane.b32.xlu0 %v7490_v41, %s6915_s15 }
 0x3da   :  { %2626 = vrot.lane.b32.xlu1 %v7476_v47, %s6911_s13 }
 0x3db   :  { %4153 = vrot.lane.b32.xlu0 %v7490_v41, %s6917_s17 }
 0x3de   :  { %3111 = vrot.lane.b32.xlu1 %v7476_v47, %s6913_s14 }
 0x3df   :  { %2624 = vrot.lane.b32.xlu0 %v7502_v50, %s6911_s13 }
 0x3e2   :  { %3631 = vrot.lane.b32.xlu1 %v7459_v42, %s6915_s15 }
 0x3e3   :  { %2628 = vrot.lane.b32.xlu0 %v7510_v51, %s6911_s13 }
 0x3e6   :  { %3635 = vrot.lane.b32.xlu1 %v7476_v47, %s6915_s15 }
 0x3e7   :  { %3109 = vrot.lane.b32.xlu0 %v7502_v50, %s6913_s14 }
 0x3ea   :  { %4155 = vrot.lane.b32.xlu1 %v7459_v42, %s6917_s17 }
 0x3eb   :  { %3113 = vrot.lane.b32.xlu0 %v7510_v51, %s6913_s14 }
 0x3ee   :  { %2620 = vrot.lane.b32.xlu1 %v7490_v41, %s6911_s13 }
 0x3ef   :  { %4417 = vrot.lane.b32.xlu0 %v7459_v42, %s6918_s22 }
 0x3f2   :  { %4151 = vrot.lane.b32.xlu1 %v7465_v45, %s6917_s17 }
 0x3f3   :  { %4421 = vrot.lane.b32.xlu0 %v7476_v47, %s6918_s22 }
 0x3f6   :  { %3105 = vrot.lane.b32.xlu1 %v7490_v41, %s6913_s14 }
 0x3f7   :  { %3375 = vrot.lane.b32.xlu0 %v7510_v51, %s6914_s0 }
 0x3fa   :  { %3367 = vrot.lane.b32.xlu1 %v7490_v41, %s6914_s0 }
 0x3fb   :  { %3633 = vrot.lane.b32.xlu0 %v7502_v50, %s6915_s15 }
 0x3fe   :  { %3891 = vrot.lane.b32.xlu1 %v7490_v41, %s6916_s16 }
 0x3ff   :  { %3637 = vrot.lane.b32.xlu0 %v7510_v51, %s6915_s15 }
 0x402   :  { %3371 = vrot.lane.b32.xlu1 %v7502_v50, %s6914_s0 }
 0x403   :  { %3899 = vrot.lane.b32.xlu0 %v7510_v51, %s6916_s16 }
 0x406   :  { %4159 = vrot.lane.b32.xlu1 %v7476_v47, %s6917_s17 }
 0x407   :  { %4157 = vrot.lane.b32.xlu0 %v7502_v50, %s6917_s17 }
 0x40a   :  { %4415 = vrot.lane.b32.xlu1 %v7490_v41, %s6918_s22 }
 0x40b   :  { %4161 = vrot.lane.b32.xlu0 %v7510_v51, %s6917_s17 }
 0x40e   :  { %3895 = vrot.lane.b32.xlu1 %v7502_v50, %s6916_s16 }
 0x40f   :  { %4677 = vrot.lane.b32.xlu0 %v7490_v41, %s6919_s25 }
 0x412   :  { %4413 = vrot.lane.b32.xlu1 %v7465_v45, %s6918_s22 }
 0x413   :  { %4423 = vrot.lane.b32.xlu0 %v7510_v51, %s6918_s22 }
 0x416   :  { %4679 = vrot.lane.b32.xlu1 %v7459_v42, %s6919_s25 }
 0x417   :  { %4681 = vrot.lane.b32.xlu0 %v7502_v50, %s6919_s25 }
 0x41a   :  { %4419 = vrot.lane.b32.xlu1 %v7502_v50, %s6918_s22 }
 0x41b   :  { %4685 = vrot.lane.b32.xlu0 %v7510_v51, %s6919_s25 }
 0x41e   :  { %4675 = vrot.lane.b32.xlu1 %v7465_v45, %s6919_s25 }
 0x422   :  { %4683 = vrot.lane.b32.xlu1 %v7476_v47, %s6919_s25 }
 0x431   :  { %v7576_v52 = vpop.permute.xlu0 %3107 }
 0x434   :  { %v2619_v44 = vpop.permute.xlu1 %2618 }
 0x435   :  { %v7580_v54 = vpop.permute.xlu0 %3369 }
 0x438   :  { %v7578_v53 = vpop.permute.xlu1 %3103 }
 0x43c   :  { %v7582_v48 = vpop.permute.xlu1 %3365 }
 0x43d   :  { %v7584_v57 = vpop.permute.xlu0 %3373 }
 0x440   :  { %v7586_v58 = vpop.permute.xlu1 %3627 }
 0x441   :  { %v7588_v59 = vpop.permute.xlu0 %3893 }
 0x444   :  { %v7590_v60 = vpop.permute.xlu1 %3889 }
 0x445   :  { %v7592_v61 = vpop.permute.xlu0 %3897 }
 0x448   :  { %v2623_v62 = vpop.permute.xlu1 %2622 }
 0x449   :  { %v7594_v14 = vpop.permute.xlu0 %3629 }
 0x44c   :  { %v2627_v55 = vpop.permute.xlu1 %2626 }
 0x44d   :  { %v7596_v15 = vpop.permute.xlu0 %4153 }
 0x450   :  { %v7598_v0 = vpop.permute.xlu1 %3111 }
 0x451   :  { %v2625_v63 = vpop.permute.xlu0 %2624 }
 0x452   :  { %v2632_v16 = vsel %vm84_vm0, %v2623_v62, %v2625_v63  ;;  %v2633_v2 = vsel %vm84_vm0, %v2625_v63, %v2627_v55 }
 0x453   :  { %6584 = vmatprep.subr.msk.mxu0 %vm2474_vm9, %v2633_v2 }
 0x454   :  { %v7606_v18 = vpop.permute.xlu1 %3631  ;;  %6585 = vmatpush1.msk.msra.mxu0 %vm2474_vm9, %v2632_v16 }
 0x455   :  { %v2629_v19 = vpop.permute.xlu0 %2628  ;;  %6586 = vmatmul.mubr.msk.f32.vlgmr.msra.gmra.mxu0 %vm2635_vm12, %v6580_v17  ;;  %6590 = vmatprep.subr.msk.mxu0 %vm2474_vm9, %v7490_v41 }
 0x456   :  { %6591 = vmatpush1.msk.msra.mxu0 %vm2474_vm9, %v7465_v45  ;;  %2943 = vmatprep.mubr.f32.mxu0 %v7449_v26  ;;  %v2634_v10 = vsel %vm84_vm0, %v2627_v55, %v2629_v19 }
 0x457   :  { %6596 = vmatprep.subr.msk.mxu0 %vm2474_vm9, %v7510_v51  ;;  %v6619_v51 = vld [vmem:[%s10151_s4 + $0x20] sm:$0xff] }
 0x458   :  { %v7620_v20 = vpop.permute.xlu1 %3635 }
 0x459   :  { %v3110_v3 = vpop.permute.xlu0 %3109  ;;  %6592 = vmatmul.mubr.msk.f32.vlgmr.msra.gmra.mxu0 %vm2635_vm12, %v2609_v1 }
 0x45a   :  { %v3118_v21 = vsel %vm566_vm2, %v3110_v3, %v7598_v0  ;;  %6597 = vmatpush1.msk.msra.mxu0 %vm2474_vm9, %v7476_v47  ;;  %3085 = vmatprep.mubr.f32.mxu0 %v7449_v26  ;;  %v3117_v5 = vsel %vm566_vm2, %v7576_v52, %v3110_v3 }
 0x45b   :  { %6603 = vmatprep.subr.msk.mxu0 %vm2474_vm9, %v3118_v21 }
 0x45c   :  { %v7629_v6 = vpop.permute.xlu1 %4155 }
 0x45d   :  { %v3114_v22 = vpop.permute.xlu0 %3113  ;;  %6598 = vmatmul.mubr.msk.f32.vlgmr.msra.gmra.mxu0 %vm2635_vm12, %v2609_v1 }
 0x45e   :  { %6604 = vmatpush1.msk.msra.mxu0 %vm2474_vm9, %v3117_v5  ;;  %3270 = vmatprep.mubr.f32.mxu0 %v7449_v26  ;;  %v3119_v9 = vsel %vm566_vm2, %v7598_v0, %v3114_v22 }
 0x460   :  { %v2621_v24 = vpop.permute.xlu1 %2620 }
 0x461   :  { %v2630_v7 = vsel %vm84_vm0, %v2619_v44, %v2621_v24  ;;  %v2631_v8 = vsel %vm84_vm0, %v2621_v24, %v2623_v62  ;;  %v7641_v25 = vpop.permute.xlu0 %4417  ;;  %6605 = vmatmul.mubr.msk.f32.vlgmr.msra.gmra.mxu0 %vm2635_vm12, %v6599_v23  ;;  %v3639_v44 = vsel %vm1108_vm4, %v7586_v58, %v7594_v14  ;;  %vm4936_vm0 = vcmask 64512  }
 0x462   :  { %6581 = vmatprep.subr.msk.mxu1 %vm2474_vm9, %v2631_v8  ;;  %3461 = vmatprep.mubr.f32.mxu0 %v7449_v26 }
 0x463   :  { %6582 = vmatpush1.msk.msra.mxu1 %vm2474_vm9, %v2630_v7 }
 0x464   :  { %6583 = vmatmul.mubr.msk.f32.vlgmr.msra.gmra.mxu1 %vm2635_vm12, %v6580_v17  ;;  %6587 = vmatprep.subr.msk.mxu1 %vm2474_vm9, %v2629_v19  ;;  %v7650_v27 = vpop.permute.xlu1 %4151  ;;  %v4164_v19 = vsel %vm1650_vm6, %v7596_v15, %v7629_v6 }
 0x465   :  { %6588 = vmatpush1.msk.msra.mxu1 %vm2474_vm9, %v2634_v10  ;;  %2857 = vmatprep.mubr.f32.mxu1 %v7449_v26  ;;  %v7654_v11 = vpop.permute.xlu0 %4421 }
 0x466   :  { %6593 = vmatprep.subr.msk.mxu1 %vm2474_vm9, %v7502_v50 }
 0x468   :  { %6589 = vmatmul.mubr.msk.f32.vlgmr.msra.gmra.mxu1 %vm2635_vm12, %v6580_v17  ;;  %v3106_v28 = vpop.permute.xlu1 %3105 }
 0x469   :  { %6594 = vmatpush1.msk.msra.mxu1 %vm2474_vm9, %v7459_v42  ;;  %v3116_v29 = vsel %vm566_vm2, %v3106_v28, %v7576_v52  ;;  %3014 = vmatprep.mubr.f32.mxu1 %v7449_v26  ;;  %v3376_v30 = vpop.permute.xlu0 %3375  ;;  %v3115_v31 = vsel %vm566_vm2, %v7578_v53, %v3106_v28  ;;  %v3640_v52 = vsel %vm1108_vm4, %v7594_v14, %v7606_v18  ;;  %vm5341_vm2 = vcmask 556032  }
 0x46a   :  { %6600 = vmatprep.subr.msk.mxu1 %vm2474_vm9, %v3116_v29  ;;  %v3381_v42 = vsel %vm837_vm3, %v7584_v57, %v3376_v30 }
 0x46c   :  { %6595 = vmatmul.mubr.msk.f32.vlgmr.msra.gmra.mxu1 %vm2635_vm12, %v2609_v1  ;;  %v3368_v12 = vpop.permute.xlu1 %3367 }
 0x46d   :  { %6601 = vmatpush1.msk.msra.mxu1 %vm2474_vm9, %v3115_v31  ;;  %v3377_v34 = vsel %vm837_vm3, %v7582_v48, %v3368_v12  ;;  %v3378_v36 = vsel %vm837_vm3, %v3368_v12, %v7580_v54  ;;  %3199 = vmatprep.mubr.f32.mxu1 %v7449_v26  ;;  %v3634_v40 = vpop.permute.xlu0 %3633 }
 0x46e   :  { %6606 = vmatprep.subr.msk.mxu1 %vm2474_vm9, %v3114_v22  ;;  %6610 = vmatprep.subr.msk.mxu0 %vm2474_vm9, %v3378_v36  ;;  %v3642_v35 = vsel %vm1108_vm4, %v3634_v40, %v7620_v20  ;;  %v3641_v39 = vsel %vm1108_vm4, %v7606_v18, %v3634_v40 }
 0x46f   :  { %6611 = vmatpush1.msk.msra.mxu0 %vm2474_vm9, %v3377_v34 }
 0x470   :  { %6602 = vmatmul.mubr.msk.f32.vlgmr.msra.gmra.mxu1 %vm2635_vm12, %v6599_v23  ;;  %6612 = vmatmul.mubr.msk.f32.vlgmr.msra.gmra.mxu0 %vm2635_vm12, %v6609_v38  ;;  %v3892_v32 = vpop.permute.xlu1 %3891 }
 0x471   :  { %6607 = vmatpush1.msk.msra.mxu1 %vm2474_vm9, %v3119_v9  ;;  %6616 = vmatprep.subr.msk.mxu0 %vm2474_vm9, %v3376_v30  ;;  %v3638_v43 = vpop.permute.xlu0 %3637  ;;  %v3902_v46 = vsel %vm1379_vm5, %v3892_v32, %v7588_v59 }
 0x472   :  { %6617 = vmatpush1.msk.msra.mxu0 %vm2474_vm9, %v3381_v42  ;;  %3341 = vmatprep.mubr.f32.mxu1 %v7449_v26  ;;  %v3643_v58 = vsel %vm1108_vm4, %v7620_v20, %v3638_v43 }
 0x473   :  { %3603 = vmatprep.mubr.f32.mxu0 %v7449_v26  ;;  %6623 = vmatprep.subr.msk.mxu0 %vm2474_vm9, %v3642_v35 }
 0x474   :  { %6608 = vmatmul.mubr.msk.f32.vlgmr.msra.gmra.mxu1 %vm2635_vm12, %v6599_v23  ;;  %6618 = vmatmul.mubr.msk.f32.vlgmr.msra.gmra.mxu0 %vm2635_vm12, %v6609_v38  ;;  %v3372_v45 = vpop.permute.xlu1 %3371 }
 0x475   :  { %6624 = vmatpush1.msk.msra.mxu0 %vm2474_vm9, %v3641_v39  ;;  %v3379_v47 = vsel %vm837_vm3, %v7580_v54, %v3372_v45  ;;  %v3380_v41 = vsel %vm837_vm3, %v3372_v45, %v7584_v57  ;;  %3532 = vmatprep.mubr.f32.mxu1 %v7449_v26  ;;  %v3900_v50 = vpop.permute.xlu0 %3899  ;;  %v3901_v54 = vsel %vm1379_vm5, %v7590_v60, %v3892_v32  ;;  %v6629_v57 = vld [vmem:[%s10151_s4 + $0x28] sm:$0xff]  ;;  %vm5956_vm3 = vcmask 490496  }
 0x476   :  { %6630 = vmatprep.subr.msk.mxu0 %vm2474_vm9, %v3902_v46  ;;  %6613 = vmatprep.subr.msk.mxu1 %vm2474_vm9, %v3380_v41  ;;  %v3905_v62 = vsel %vm1379_vm5, %v7592_v61, %v3900_v50 }
 0x477   :  { %6614 = vmatpush1.msk.msra.mxu1 %vm2474_vm9, %v3379_v47  ;;  %3794 = vmatprep.mubr.f32.mxu0 %v7449_v26 }
 0x478   :  { %6615 = vmatmul.mubr.msk.f32.vlgmr.msra.gmra.mxu1 %vm2635_vm12, %v6609_v38  ;;  %6620 = vmatprep.subr.msk.mxu1 %vm2474_vm9, %v3640_v52  ;;  %v4160_v53 = vpop.permute.xlu1 %4159 }
 0x479   :  { %6625 = vmatmul.mubr.msk.f32.vlgmr.msra.gmra.mxu0 %vm2635_vm12, %v6619_v51  ;;  %6621 = vmatpush1.msk.msra.mxu1 %vm2474_vm9, %v3639_v44  ;;  %v4158_v48 = vpop.permute.xlu0 %4157 }
 0x47a   :  { %6631 = vmatpush1.msk.msra.mxu0 %vm2474_vm9, %v3901_v54  ;;  %6626 = vmatprep.subr.msk.mxu1 %vm2474_vm9, %v3638_v43  ;;  %v4166_v55 = vsel %vm1650_vm6, %v4158_v48, %v4160_v53  ;;  %v4165_v63 = vsel %vm1650_vm6, %v7629_v6, %v4158_v48 }
 0x47b   :  { %6636 = vmatprep.subr.msk.mxu0 %vm2474_vm9, %v3900_v50  ;;  %3723 = vmatprep.mubr.f32.mxu1 %v7449_v26 }
 0x47c   :  { %3985 = vmatprep.mubr.f32.mxu0 %v7449_v26  ;;  %6622 = vmatmul.mubr.msk.f32.vlgmr.msra.gmra.mxu1 %vm2635_vm12, %v6619_v51  ;;  %v4416_v60 = vpop.permute.xlu1 %4415 }
 0x47d   :  { %6627 = vmatpush1.msk.msra.mxu1 %vm2474_vm9, %v3643_v58  ;;  %6632 = vmatmul.mubr.msk.f32.vlgmr.msra.gmra.mxu0 %vm2635_vm12, %v6629_v57  ;;  %v4162_v14 = vpop.permute.xlu0 %4161  ;;  %v4426_v18 = vsel %vm1921_vm7, %v4416_v60, %v7641_v25 }
 0x47e   :  { %6637 = vmatpush1.msk.msra.mxu0 %vm2474_vm9, %v3905_v62  ;;  %3865 = vmatprep.mubr.f32.mxu1 %v7449_v26  ;;  %v4167_v21 = vsel %vm1650_vm6, %v4160_v53, %v4162_v14 }
 0x47f   :  { %4127 = vmatprep.mubr.f32.mxu0 %v7449_v26  ;;  %6643 = vmatprep.subr.msk.mxu0 %vm2474_vm9, %v4166_v55 }
 0x480   :  { %6628 = vmatmul.mubr.msk.f32.vlgmr.msra.gmra.mxu1 %vm2635_vm12, %v6619_v51  ;;  %v3896_v0 = vpop.permute.xlu1 %3895 }
 0x481   :  { %6638 = vmatmul.mubr.msk.f32.vlgmr.msra.gmra.mxu0 %vm2635_vm12, %v6629_v57  ;;  %v3903_v16 = vsel %vm1379_vm5, %v7588_v59, %v3896_v0  ;;  %v3904_v2 = vsel %vm1379_vm5, %v3896_v0, %v7592_v61  ;;  %4056 = vmatprep.mubr.f32.mxu1 %v7449_v26  ;;  %v4678_v17 = vpop.permute.xlu0 %4677  ;;  %v6639_v59 = vld [vmem:[%s10151_s4 + $0x30] sm:$0xff]  ;;  %v4163_v61 = vsel %vm1650_vm6, %v7650_v27, %v7596_v15  ;;  %v6649_v15 = vld [vmem:[%s10151_s4 + $0x38] sm:$0xff]  ;;  %v6659_v27 = vld [vmem:[%s10151_s4 + $0x40] sm:$0xff] }
 0x482   :  { %6644 = vmatpush1.msk.msra.mxu0 %vm2474_vm9, %v4165_v63  ;;  %6633 = vmatprep.subr.msk.mxu1 %vm2474_vm9, %v3904_v2 }
 0x483   :  { %6650 = vmatprep.subr.msk.mxu0 %vm2474_vm9, %v4426_v18  ;;  %6634 = vmatpush1.msk.msra.mxu1 %vm2474_vm9, %v3903_v16 }
 0x484   :  { %6635 = vmatmul.mubr.msk.f32.vlgmr.msra.gmra.mxu1 %vm2635_vm12, %v6629_v57  ;;  %6640 = vmatprep.subr.msk.mxu1 %vm2474_vm9, %v4164_v19  ;;  %v4414_v1 = vpop.permute.xlu1 %4413 }
 0x485   :  { %v4425_v20 = vsel %vm1921_vm7, %v4414_v1, %v4416_v60  ;;  %6641 = vmatpush1.msk.msra.mxu1 %vm2474_vm9, %v4163_v61  ;;  %4318 = vmatprep.mubr.f32.mxu0 %v7449_v26  ;;  %v4424_v3 = vpop.permute.xlu0 %4423 }
 0x486   :  { %6645 = vmatmul.mubr.msk.f32.vlgmr.msra.gmra.mxu0 %vm2635_vm12, %v6639_v59  ;;  %6646 = vmatprep.subr.msk.mxu1 %vm2474_vm9, %v4162_v14  ;;  %v4429_v5 = vsel %vm1921_vm7, %v7654_v11, %v4424_v3 }
 0x487   :  { %6651 = vmatpush1.msk.msra.mxu0 %vm2474_vm9, %v4425_v20  ;;  %4247 = vmatprep.mubr.f32.mxu1 %v7449_v26 }
 0x488   :  { %6642 = vmatmul.mubr.msk.f32.vlgmr.msra.gmra.mxu1 %vm2635_vm12, %v6639_v59  ;;  %v4680_v6 = vpop.permute.xlu1 %4679  ;;  %4509 = vmatprep.mubr.f32.mxu0 %v7449_v26 }
 0x489   :  { %6647 = vmatpush1.msk.msra.mxu1 %vm2474_vm9, %v4167_v21  ;;  %6656 = vmatprep.subr.msk.mxu0 %vm2474_vm9, %v4424_v3  ;;  %v4682_v23 = vpop.permute.xlu0 %4681  ;;  %v4688_v8 = vsel %vm2192_vm8, %v4678_v17, %v4680_v6 }
 0x48a   :  { %6652 = vmatmul.mubr.msk.f32.vlgmr.msra.gmra.mxu0 %vm2635_vm12, %v6649_v15  ;;  %4389 = vmatprep.mubr.f32.mxu1 %v7449_v26  ;;  %v4689_v31 = vsel %vm2192_vm8, %v4680_v6, %v4682_v23 }
 0x48b   :  { %6657 = vmatpush1.msk.msra.mxu0 %vm2474_vm9, %v4429_v5  ;;  %4651 = vmatprep.mubr.f32.mxu0 %v7449_v26 }
 0x48c   :  { %6648 = vmatmul.mubr.msk.f32.vlgmr.msra.gmra.mxu1 %vm2635_vm12, %v6639_v59  ;;  %v4420_v22 = vpop.permute.xlu1 %4419 }
 0x48d   :  { %v4427_v24 = vsel %vm1921_vm7, %v7641_v25, %v4420_v22  ;;  %v4428_v7 = vsel %vm1921_vm7, %v4420_v22, %v7654_v11  ;;  %4580 = vmatprep.mubr.f32.mxu1 %v7449_v26  ;;  %v4686_v11 = vpop.permute.xlu0 %4685 }
 0x48e   :  { %6653 = vmatprep.subr.msk.mxu1 %vm2474_vm9, %v4428_v7  ;;  %6658 = vmatmul.mubr.msk.f32.vlgmr.msra.gmra.mxu0 %vm2635_vm12, %v6649_v15 }
 0x48f   :  { %6654 = vmatpush1.msk.msra.mxu1 %vm2474_vm9, %v4427_v24  ;;  %4842 = vmatprep.mubr.f32.mxu0 %v7449_v26 }
 0x490   :  { %6655 = vmatmul.mubr.msk.f32.vlgmr.msra.gmra.mxu1 %vm2635_vm12, %v6649_v15  ;;  %6660 = vmatprep.subr.msk.mxu1 %vm2474_vm9, %v4688_v8  ;;  %v4676_v25 = vpop.permute.xlu1 %4675 }
 0x491   :  { %v4687_v10 = vsel %vm2192_vm8, %v4676_v25, %v4678_v17  ;;  %4771 = vmatprep.mubr.f32.mxu1 %v7449_v26 }
 0x492   :  { %6661 = vmatpush1.msk.msra.mxu1 %vm2474_vm9, %v4687_v10 }
 0x493   :  { %6666 = vmatprep.subr.msk.mxu1 %vm2474_vm9, %v4686_v11 }
 0x494   :  { %6662 = vmatmul.mubr.msk.f32.vlgmr.msra.gmra.mxu1 %vm2635_vm12, %v6659_v27  ;;  %v4684_v28 = vpop.permute.xlu1 %4683 }
 0x495   :  { %v4690_v29 = vsel %vm2192_vm8, %v4682_v23, %v4684_v28  ;;  %v4691_v30 = vsel %vm2192_vm8, %v4684_v28, %v4686_v11  ;;  %4913 = vmatprep.mubr.f32.mxu1 %v7449_v26 }
 0x496   :  { %6663 = vmatprep.subr.msk.mxu0 %vm2474_vm9, %v4690_v29  ;;  %6667 = vmatpush1.msk.msra.mxu1 %vm2474_vm9, %v4691_v30 }
 0x497   :  { %6664 = vmatpush1.msk.msra.mxu0 %vm2474_vm9, %v4689_v31 }
 0x498   :  { %6665 = vmatmul.mubr.msk.f32.vlgmr.msra.gmra.mxu0 %vm2635_vm12, %v6659_v27  ;;  %6668 = vmatmul.mubr.msk.f32.vlgmr.msra.gmra.mxu1 %vm2635_vm12, %v6659_v27 }
 0x499   :  { %5504 = vmatprep.mubr.f32.mxu1 %v7449_v26 }
 0x515   :  { %v2788_v12 = vpop.f32.mrf.mxu0 }
 0x517   :  { %v2790_v34 = vpop.f32.mrf.mxu0 }
 0x519   :  { %v2945_v36 = vpop.f32.mrf.mxu0 }
 0x51b   :  { %v2947_v38 = vpop.f32.mrf.mxu0 }
 0x51d   :  { %v3087_v40 = vpop.f32.mrf.mxu0 }
 0x51f   :  { %v3089_v42 = vpop.f32.mrf.mxu0 }
 0x521   :  { %v3272_v35 = vpop.f32.mrf.mxu0 }
 0x523   :  { %v3274_v46 = vpop.f32.mrf.mxu0 }
 0x524   :  { %v2717_v9 = vpop.f32.mrf.mxu1 }
 0x525   :  { %v2946_v2 = vadd.f32 %v2945_v36, %v2717_v9 }
 0x526   :  { %v2719_v32 = vpop.f32.mrf.mxu1 }
 0x527   :  { %v2948_v19 = vadd.f32 %v2947_v38, %v2719_v32 }
 0x528   :  { %v2859_v43 = vpop.f32.mrf.mxu1 }
 0x529   :  { %v3088_v15 = vadd.f32 %v3087_v40, %v2859_v43 }
 0x52a   :  { %v2861_v39 = vpop.f32.mrf.mxu1 }
 0x52b   :  { %v3090_v23 = vadd.f32 %v3089_v42, %v2861_v39 }
 0x52c   :  { %v3016_v45 = vpop.f32.mrf.mxu1 }
 0x52d   :  { %v3017_v20 = vadd.f32 %v3016_v45, %v2788_v12 }
 0x52e   :  { %v3018_v47 = vpop.f32.mrf.mxu1 }
 0x52f   :  { %v3019_v5 = vadd.f32 %v3018_v47, %v2790_v34  ;;  %v3350_v25 = vadd.f32 %v3272_v35, %v3017_v20 }
 0x530   :  { %v3201_v41 = vpop.f32.mrf.mxu1  ;;  %v3463_v50 = vpop.f32.mrf.mxu0 }
 0x531   :  { %v3348_v59 = vadd.f32 %v3201_v41, %v2946_v2  ;;  %v3351_v30 = vadd.f32 %v3274_v46, %v3019_v5 }
 0x532   :  { %v3203_v51 = vpop.f32.mrf.mxu1  ;;  %v3465_v52 = vpop.f32.mrf.mxu0 }
 0x533   :  { %v3349_v3 = vadd.f32 %v3203_v51, %v2948_v19  ;;  %v3610_v22 = vadd.f32 %v3463_v50, %v3348_v59 }
 0x534   :  { %v3343_v44 = vpop.f32.mrf.mxu1  ;;  %v3605_v53 = vpop.f32.mrf.mxu0 }
 0x535   :  { %v3352_v24 = vadd.f32 %v3343_v44, %v3088_v15  ;;  %v3611_v10 = vadd.f32 %v3465_v52, %v3349_v3 }
 0x536   :  { %v3345_v54 = vpop.f32.mrf.mxu1  ;;  %v3607_v48 = vpop.f32.mrf.mxu0 }
 0x537   :  { %v3353_v11 = vadd.f32 %v3345_v54, %v3090_v23  ;;  %v3614_v12 = vadd.f32 %v3605_v53, %v3352_v24 }
 0x538   :  { %v3534_v57 = vpop.f32.mrf.mxu1 }
 0x539   :  { %v3796_v58 = vpop.f32.mrf.mxu0  ;;  %v3612_v31 = vadd.f32 %v3534_v57, %v3350_v25  ;;  %v3615_v32 = vadd.f32 %v3607_v48, %v3353_v11 }
 0x53a   :  { %v3536_v60 = vpop.f32.mrf.mxu1 }
 0x53b   :  { %v3798_v62 = vpop.f32.mrf.mxu0  ;;  %v3613_v40 = vadd.f32 %v3536_v60, %v3351_v30  ;;  %v3874_v39 = vadd.f32 %v3796_v58, %v3612_v31 }
 0x53c   :  { %v3725_v14 = vpop.f32.mrf.mxu1 }
 0x53d   :  { %v3987_v55 = vpop.f32.mrf.mxu0  ;;  %v3872_v27 = vadd.f32 %v3725_v14, %v3610_v22  ;;  %v3875_v50 = vadd.f32 %v3798_v62, %v3613_v40  ;;  %v5126_v40 = vld [vmem:[%s10153_s8 + $0x388] sm:$0xff] }
 0x53e   :  { %v3727_v0 = vpop.f32.mrf.mxu1 }
 0x53f   :  { %v3989_v63 = vpop.f32.mrf.mxu0  ;;  %v3873_v36 = vadd.f32 %v3727_v0, %v3611_v10  ;;  %v4134_v9 = vadd.f32 %v3987_v55, %v3872_v27 }
 0x540   :  { %v3867_v16 = vpop.f32.mrf.mxu1 }
 0x541   :  { %v4129_v17 = vpop.f32.mrf.mxu0  ;;  %v3876_v34 = vadd.f32 %v3867_v16, %v3614_v12  ;;  %v4135_v45 = vadd.f32 %v3989_v63, %v3873_v36  ;;  %v4989_v36 = vld [vmem:[%s10152_s6] sm:$0xff]  ;;  %v5134_v12 = vld [vmem:[%s10153_s8 + $0x3c8] sm:$0xff] }
 0x542   :  { %v3869_v18 = vpop.f32.mrf.mxu1  ;;  %5369 = vmatprep.subr.mxu0 %v5134_v12 }
 0x543   :  { %v4131_v61 = vpop.f32.mrf.mxu0  ;;  %v3877_v35 = vadd.f32 %v3869_v18, %v3615_v32  ;;  %v4138_v44 = vadd.f32 %v4129_v17, %v3876_v34  ;;  %v5118_v32 = vld [vmem:[%s10153_s8 + $0x348] sm:$0xff]  ;;  %v5117_v34 = vld [vmem:[%s10153_s8 + $0x340] sm:$0xff] }
 0x544   :  { %v4058_v1 = vpop.f32.mrf.mxu1 }
 0x545   :  { %v4136_v51 = vadd.f32 %v4058_v1, %v3874_v39  ;;  %v4139_v14 = vadd.f32 %v4131_v61, %v3877_v35  ;;  %v5102_v39 = vld [vmem:[%s10153_s8 + $0x2c8] sm:$0xff]  ;;  %v5093_v35 = vld [vmem:[%s10153_s8 + $0x280] sm:$0xff] }
 0x546   :  { %v4060_v21 = vpop.f32.mrf.mxu1  ;;  %v4320_v6 = vpop.f32.mrf.mxu0 }
 0x547   :  { %v4137_v57 = vadd.f32 %v4060_v21, %v3875_v50  ;;  %v4398_v48 = vadd.f32 %v4320_v6, %v4136_v51  ;;  %v5085_v50 = vld [vmem:[%s10153_s8 + $0x240] sm:$0xff]  ;;  %v5078_v51 = vld [vmem:[%s10153_s8 + $0x208] sm:$0xff] }
 0x548   :  { %v4249_v7 = vpop.f32.mrf.mxu1  ;;  %v4322_v8 = vpop.f32.mrf.mxu0 }
 0x549   :  { %v4396_v47 = vadd.f32 %v4249_v7, %v4134_v9  ;;  %v4399_v18 = vadd.f32 %v4322_v8, %v4137_v57  ;;  %v5125_v9 = vld [vmem:[%s10153_s8 + $0x380] sm:$0xff] }
 0x54a   :  { %v4251_v28 = vpop.f32.mrf.mxu1  ;;  %v4511_v29 = vpop.f32.mrf.mxu0  ;;  %v5061_v57 = vld [vmem:[%s10153_s8 + $0x180] sm:$0xff] }
 0x54b   :  { %v4397_v52 = vadd.f32 %v4251_v28, %v4135_v45  ;;  %v4658_v53 = vadd.f32 %v4511_v29, %v4396_v47  ;;  %v5101_v45 = vld [vmem:[%s10153_s8 + $0x2c0] sm:$0xff]  ;;  %v5094_v47 = vld [vmem:[%s10153_s8 + $0x288] sm:$0xff] }
 0x54c   :  { %v4391_v38 = vpop.f32.mrf.mxu1  ;;  %v4513_v43 = vpop.f32.mrf.mxu0 }
 0x54d   :  { %v4400_v60 = vadd.f32 %v4391_v38, %v4138_v44  ;;  %v4659_v0 = vadd.f32 %v4513_v43, %v4397_v52  ;;  %v5133_v38 = vld [vmem:[%s10153_s8 + $0x3c0] sm:$0xff]  ;;  %v5110_v43 = vld [vmem:[%s10153_s8 + $0x308] sm:$0xff] }
 0x54e   :  { %v4393_v42 = vpop.f32.mrf.mxu1  ;;  %v4653_v46 = vpop.f32.mrf.mxu0  ;;  %5370 = vmatpush1.msra.mxu0 %v5133_v38  ;;  %v5077_v52 = vld [vmem:[%s10153_s8 + $0x200] sm:$0xff]  ;;  %v5070_v44 = vld [vmem:[%s10153_s8 + $0x1c8] sm:$0xff] }
 0x54f   :  { %v4401_v58 = vadd.f32 %v4393_v42, %v4139_v14  ;;  %v4662_v59 = vadd.f32 %v4653_v46, %v4400_v60  ;;  %5371 = vmatprep.subr.mxu0 %v5126_v40  ;;  %v5109_v42 = vld [vmem:[%s10153_s8 + $0x300] sm:$0xff]  ;;  %v5046_v60 = vld [vmem:[%s10153_s8 + $0x108] sm:$0xff] }
 0x550   :  { %v4582_v41 = vpop.f32.mrf.mxu1  ;;  %v4655_v63 = vpop.f32.mrf.mxu0  ;;  %5372 = vmatpush1.msra.mxu0 %v5125_v9  ;;  %v5069_v46 = vld [vmem:[%s10153_s8 + $0x1c0] sm:$0xff] }
 0x551   :  { %v4660_v19 = vadd.f32 %v4582_v41, %v4398_v48  ;;  %v4663_v21 = vadd.f32 %v4655_v63, %v4401_v58  ;;  %5373 = vmatprep.subr.mxu0 %v5118_v32  ;;  %v5086_v41 = vld [vmem:[%s10153_s8 + $0x248] sm:$0xff]  ;;  %v5053_v14 = vld [vmem:[%s10153_s8 + $0x140] sm:$0xff] }
 0x552   :  { %v4584_v54 = vpop.f32.mrf.mxu1  ;;  %5374 = vmatpush1.msra.mxu0 %v5117_v34  ;;  %v5038_v48 = vld [vmem:[%s10153_s8 + $0xc8] sm:$0xff]  ;;  %v5029_v63 = vld [vmem:[%s10153_s8 + $0x80] sm:$0xff] }
 0x553   :  { %v4661_v20 = vadd.f32 %v4584_v54, %v4399_v18  ;;  %5375 = vmatprep.subr.mxu0 %v5110_v43  ;;  %v5062_v54 = vld [vmem:[%s10153_s8 + $0x188] sm:$0xff]  ;;  %v5021_v18 = vld [vmem:[%s10153_s8 + $0x40] sm:$0xff] }
 0x554   :  { %v4773_v55 = vpop.f32.mrf.mxu1  ;;  %5376 = vmatpush1.msra.mxu0 %v5109_v42  ;;  %v5030_v58 = vld [vmem:[%s10153_s8 + $0x88] sm:$0xff]  ;;  %v5245_v43 = vld [vmem:[%s10153_s8 + $0x740] sm:$0xff] }
 0x555   :  { %v7823_v16 = vadd.f32 %v4773_v55, %v4658_v53  ;;  %5377 = vmatprep.subr.mxu0 %v5102_v39  ;;  %v5054_v53 = vld [vmem:[%s10153_s8 + $0x148] sm:$0xff]  ;;  %v5045_v55 = vld [vmem:[%s10153_s8 + $0x100] sm:$0xff] }
 0x556   :  { %v4775_v2 = vpop.f32.mrf.mxu1  ;;  %5378 = vmatpush1.msra.mxu0 %v5101_v45  ;;  %v5246_v34 = vld [vmem:[%s10153_s8 + $0x748] sm:$0xff]  ;;  %v5237_v39 = vld [vmem:[%s10153_s8 + $0x700] sm:$0xff] }
 0x557   :  { %v7825_v62 = vadd.f32 %v4775_v2, %v4659_v0  ;;  %v4926_v61 = vmul.f32 %v7823_v16, %v7406_v33  ;;  %5379 = vmatprep.subr.mxu0 %v5094_v47  ;;  %v5037_v0 = vld [vmem:[%s10153_s8 + $0xc0] sm:$0xff]  ;;  %v5022_v2 = vld [vmem:[%s10153_s8 + $0x48] sm:$0xff] }
 0x558   :  { %v4844_v17 = vpop.f32.mrf.mxu0  ;;  %v4915_v1 = vpop.f32.mrf.mxu1  ;;  %5380 = vmatpush1.msra.mxu0 %v5093_v35  ;;  %v5238_v42 = vld [vmem:[%s10153_s8 + $0x708] sm:$0xff]  ;;  %v5229_v47 = vld [vmem:[%s10153_s8 + $0x6c0] sm:$0xff] }
 0x559   :  { %v4927_v3 = vmul.f32 %v7825_v62, %v7404_v4  ;;  %v7831_v15 = vadd.f32 %v4844_v17, %v4660_v19  ;;  %v7835_v24 = vadd.f32 %v4915_v1, %v4662_v59  ;;  %5381 = vmatprep.subr.mxu0 %v5086_v41  ;;  %v5014_v19 = vld [vmem:[%s10153_s8 + $0x8] sm:$0xff]  ;;  %v5013_v59 = vld [vmem:[%s10153_s8] sm:$0xff] }
 0x55a   :  { %v4846_v6 = vpop.f32.mrf.mxu0  ;;  %v4917_v5 = vpop.f32.mrf.mxu1  ;;  %5382 = vmatpush1.msra.mxu0 %v5085_v50  ;;  %v5262_v17 = vld [vmem:[%s10153_s8 + $0x7c8] sm:$0xff]  ;;  %v5261_v1 = vld [vmem:[%s10153_s8 + $0x7c0] sm:$0xff] }
 0x55b   :  { %v4932_v22 = vadd.f32 %v4927_v3, %v4926_v61  ;;  %v4928_v23 = vmul.f32 %v7831_v15, %v7410_v37  ;;  %v7837_v7 = vadd.f32 %v4846_v6, %v4661_v20  ;;  %v7839_v8 = vadd.f32 %v4917_v5, %v4663_v21  ;;  %5383 = vmatprep.subr.mxu0 %v5078_v51  ;;  %v5254_v20 = vld [vmem:[%s10153_s8 + $0x788] sm:$0xff]  ;;  %v5253_v61 = vld [vmem:[%s10153_s8 + $0x780] sm:$0xff] }
 0x55c   :  { %v4930_v11 = vmul.f32 %v7835_v24, %v7415_v56  ;;  %5384 = vmatpush1.msra.mxu0 %v5077_v52  ;;  %v5230_v45 = vld [vmem:[%s10153_s8 + $0x6c8] sm:$0xff]  ;;  %v5221_v41 = vld [vmem:[%s10153_s8 + $0x680] sm:$0xff] }
 0x55d   :  { %v4933_v25 = vadd.f32 %v4932_v22, %v4928_v23  ;;  %v4929_v10 = vmul.f32 %v7837_v7, %v7412_v49  ;;  %v4931_v27 = vmul.f32 %v7839_v8, %v7419_v13  ;;  %5385 = vmatprep.subr.mxu0 %v5070_v44  ;;  %v5222_v35 = vld [vmem:[%s10153_s8 + $0x688] sm:$0xff]  ;;  %v4977_v50 = vld [vmem:[%s10154_s5] sm:$0xff] }
 0x55e   :  { %5386 = vmatpush1.msra.mxu0 %v5069_v46  ;;  %v5214_v51 = vld [vmem:[%s10153_s8 + $0x648] sm:$0xff]  ;;  %v5213_v52 = vld [vmem:[%s10153_s8 + $0x640] sm:$0xff] }
 0x55f   :  { %v4934_v28 = vadd.f32 %v4933_v25, %v4929_v10  ;;  %v4937_v30 = vsel %vm4936_vm0, %v4931_v27, 0.0  ;;  %5387 = vmatprep.subr.mxu0 %v5062_v54  ;;  %v5334_v44 = vld [vmem:[%s10153_s8 + $0xa08] sm:$0xf]  ;;  %v5333_v54 = vld [vmem:[%s10153_s8 + $0xa00] sm:$0xf] }
 0x560   :  { %5388 = vmatpush1.msra.mxu0 %v5061_v57  ;;  %v5206_v46 = vld [vmem:[%s10153_s8 + $0x608] sm:$0xff]  ;;  %6669 = vmatprep.subr.msk.mxu1 %vm2474_vm9, %v5334_v44  ;;  %v5205_v57 = vld [vmem:[%s10153_s8 + $0x600] sm:$0xff] }
 0x561   :  { %v4935_v29 = vadd.f32 %v4934_v28, %v4930_v11  ;;  %5389 = vmatprep.subr.mxu0 %v5054_v53  ;;  %v5326_v53 = vld [vmem:[%s10153_s8 + $0x9c8] sm:$0xff]  ;;  %6670 = vmatpush1.msk.msra.mxu1 %vm2474_vm9, %v5333_v54 }
 0x562   :  { %5390 = vmatpush1.msra.mxu0 %v5053_v14  ;;  %v5198_v14 = vld [vmem:[%s10153_s8 + $0x5c8] sm:$0xff]  ;;  %5456 = vmatprep.subr.mxu1 %v5326_v53 }
 0x563   :  { %v4938_v31 = vadd.f32 %v4937_v30, %v4935_v29  ;;  %5391 = vmatprep.subr.mxu0 %v5046_v60  ;;  %v5325_v60 = vld [vmem:[%s10153_s8 + $0x9c0] sm:$0xff] }
 0x564   :  { %5392 = vmatpush1.msra.mxu0 %v5045_v55  ;;  %v5197_v55 = vld [vmem:[%s10153_s8 + $0x5c0] sm:$0xff]  ;;  %5457 = vmatpush1.msra.mxu1 %v5325_v60 }
 0x565   :  { %4939 = vadd.xlane.f32.xlu1 %v4938_v31  ;;  %5393 = vmatprep.subr.mxu0 %v5038_v48  ;;  %v5318_v48 = vld [vmem:[%s10153_s8 + $0x988] sm:$0xff] }
 0x566   :  { %5394 = vmatpush1.msra.mxu0 %v5037_v0  ;;  %v5190_v0 = vld [vmem:[%s10153_s8 + $0x588] sm:$0xff]  ;;  %5458 = vmatprep.subr.mxu1 %v5318_v48 }
 0x567   :  { %5395 = vmatprep.subr.mxu0 %v5030_v58  ;;  %v5317_v58 = vld [vmem:[%s10153_s8 + $0x980] sm:$0xff] }
 0x568   :  { %5396 = vmatpush1.msra.mxu0 %v5029_v63  ;;  %v5189_v63 = vld [vmem:[%s10153_s8 + $0x580] sm:$0xff]  ;;  %5459 = vmatpush1.msra.mxu1 %v5317_v58 }
 0x569   :  { %5397 = vmatprep.subr.mxu0 %v5022_v2  ;;  %v5310_v2 = vld [vmem:[%s10153_s8 + $0x948] sm:$0xff] }
 0x56a   :  { %5398 = vmatpush1.msra.mxu0 %v5021_v18  ;;  %v5182_v18 = vld [vmem:[%s10153_s8 + $0x548] sm:$0xff]  ;;  %5460 = vmatprep.subr.mxu1 %v5310_v2 }
 0x56b   :  { %5399 = vmatprep.subr.mxu0 %v5014_v19  ;;  %v5309_v19 = vld [vmem:[%s10153_s8 + $0x940] sm:$0xff] }
 0x56c   :  { %5400 = vmatpush1.msra.mxu0 %v5013_v59  ;;  %v5181_v59 = vld [vmem:[%s10153_s8 + $0x540] sm:$0xff]  ;;  %5461 = vmatpush1.msra.mxu1 %v5309_v19 }
 0x56d   :  { %5401 = vmatprep.subr.mxu0 %v5262_v17  ;;  %v5302_v17 = vld [vmem:[%s10153_s8 + $0x908] sm:$0xff] }
 0x56e   :  { %5402 = vmatpush2.msra.mxu0 %v5261_v1  ;;  %v5174_v1 = vld [vmem:[%s10153_s8 + $0x508] sm:$0xff]  ;;  %5462 = vmatprep.subr.mxu1 %v5302_v17  ;;  %v5135_v17 = vld [vmem:[%s10153_s8 + $0x3d0] sm:$0xff] }
 0x56f   :  { %5403 = vmatprep.subr.mxu0 %v5254_v20  ;;  %v5301_v20 = vld [vmem:[%s10153_s8 + $0x900] sm:$0xff] }
 0x570   :  { %5404 = vmatpush2.msra.mxu0 %v5253_v61  ;;  %v5173_v61 = vld [vmem:[%s10153_s8 + $0x500] sm:$0xff]  ;;  %5463 = vmatpush1.msra.mxu1 %v5301_v20 }
 0x571   :  { %5405 = vmatprep.subr.mxu0 %v5246_v34 }
 0x572   :  { %5406 = vmatpush2.msra.mxu0 %v5245_v43 }
 0x573   :  { %5407 = vmatprep.subr.mxu0 %v5238_v42 }
 0x574   :  { %5408 = vmatpush2.msra.mxu0 %v5237_v39 }
 0x575   :  { %5409 = vmatprep.subr.mxu0 %v5230_v45 }
 0x576   :  { %4992 = vperm.xlu1 %6714, %v4989_v36   ;;  %5410 = vmatpush2.msra.mxu0 %v5229_v47 }
 0x577   :  { %5411 = vmatprep.subr.mxu0 %v5222_v35 }
 0x578   :  { %5412 = vmatpush2.msra.mxu0 %v5221_v41 }
 0x579   :  { %5413 = vmatprep.subr.mxu0 %v5214_v51 }
 0x57a   :  { %5414 = vmatpush2.msra.mxu0 %v5213_v52 }
 0x57b   :  { %5415 = vmatprep.subr.mxu0 %v5206_v46 }
 0x57c   :  { %5416 = vmatpush2.msra.mxu0 %v5205_v57 }
 0x57d   :  { %5417 = vmatprep.subr.mxu0 %v5198_v14 }
 0x57e   :  { %5418 = vmatpush2.msra.mxu0 %v5197_v55 }
 0x57f   :  { %5419 = vmatprep.subr.mxu0 %v5190_v0 }
 0x580   :  { %5420 = vmatpush2.msra.mxu0 %v5189_v63 }
 0x581   :  { %5421 = vmatprep.subr.mxu0 %v5182_v18 }
 0x582   :  { %5422 = vmatpush2.msra.mxu0 %v5181_v59 }
 0x583   :  { %5423 = vmatprep.subr.mxu0 %v5174_v1  ;;  %v5327_v1 = vld [vmem:[%s10153_s8 + $0x9d0] sm:$0xff] }
 0x584   :  { %5424 = vmatpush2.msra.mxu0 %v5173_v61  ;;  %v5119_v61 = vld [vmem:[%s10153_s8 + $0x350] sm:$0xff] }
 0x5ee   :  { %v4940_v3 = vpop.xlane.xlu1 %4939 }
 0x5ef   :  { %v4941_v21 = vmul.f32 0.001953125, %v4940_v3  ;;  %v5294_v3 = vld [vmem:[%s10153_s8 + $0x8c8] sm:$0xff] }
 0x5f0   :  { %5464 = vmatprep.subr.mxu1 %v5294_v3  ;;  %v5320_v3 = vld [vmem:[%s10153_s8 + $0x998] sm:$0xff] }
 0x5f1   :  { %v7960_v6 = vsub.f32 %v7823_v16, %v4941_v21  ;;  %v7963_v5 = vsub.f32 %v7825_v62, %v4941_v21  ;;  %v7966_v22 = vsub.f32 %v7831_v15, %v4941_v21  ;;  %v7969_v23 = vsub.f32 %v7837_v7, %v4941_v21 }
 0x5f2   :  { %v7972_v25 = vsub.f32 %v7839_v8, %v4941_v21  ;;  %v7975_v10 = vsub.f32 %v7835_v24, %v4941_v21  ;;  %v5166_v21 = vld [vmem:[%s10153_s8 + $0x4c8] sm:$0xff]  ;;  %v4993_v54 = vpop.permute.xlu1 %4992 }
 0x5f3   :  { %v4948_v27 = vmul.f32 %v7960_v6, %v7960_v6  ;;  %v4949_v16 = vmul.f32 %v7963_v5, %v7963_v5  ;;  %v4950_v62 = vmul.f32 %v7966_v22, %v7966_v22  ;;  %v4951_v15 = vmul.f32 %v7969_v23, %v7969_v23  ;;  %5425 = vmatprep.subr.mxu0 %v5166_v21  ;;  %v5112_v21 = vld [vmem:[%s10153_s8 + $0x318] sm:$0xff] }
 0x5f4   :  { %v4953_v24 = vmul.f32 %v7972_v25, %v7972_v25  ;;  %v4952_v11 = vmul.f32 %v7975_v10, %v7975_v10 }
 0x5f5   :  { %v4954_v7 = vmul.f32 %v4948_v27, %v7406_v33  ;;  %v4955_v8 = vmul.f32 %v4949_v16, %v7404_v4  ;;  %v4956_v28 = vmul.f32 %v4950_v62, %v7410_v37  ;;  %v4957_v30 = vmul.f32 %v4951_v15, %v7412_v49  ;;  %v5293_v27 = vld [vmem:[%s10153_s8 + $0x8c0] sm:$0xff]  ;;  %v5286_v62 = vld [vmem:[%s10153_s8 + $0x888] sm:$0xff] }
 0x5f6   :  { %v4959_v36 = vmul.f32 %v4953_v24, %v7419_v13  ;;  %v4958_v12 = vmul.f32 %v4952_v11, %v7415_v56  ;;  %v5165_v16 = vld [vmem:[%s10153_s8 + $0x4c0] sm:$0xff]  ;;  %v5158_v15 = vld [vmem:[%s10153_s8 + $0x488] sm:$0xff]  ;;  %5465 = vmatpush1.msra.mxu1 %v5293_v27  ;;  %v5319_v27 = vld [vmem:[%s10153_s8 + $0x990] sm:$0xff] }
 0x5f7   :  { %v4960_v29 = vadd.f32 %v4955_v8, %v4954_v7  ;;  %v5285_v7 = vld [vmem:[%s10153_s8 + $0x880] sm:$0xff]  ;;  %5426 = vmatpush2.msra.mxu0 %v5165_v16  ;;  %v5278_v24 = vld [vmem:[%s10153_s8 + $0x848] sm:$0xff]  ;;  %5466 = vmatprep.subr.mxu1 %v5286_v62  ;;  %v5111_v16 = vld [vmem:[%s10153_s8 + $0x310] sm:$0xff] }
 0x5f8   :  { %v4964_v9 = vsel %vm4936_vm0, %v4959_v36, 0.0  ;;  %v5157_v8 = vld [vmem:[%s10153_s8 + $0x480] sm:$0xff]  ;;  %v5150_v11 = vld [vmem:[%s10153_s8 + $0x448] sm:$0xff]  ;;  %5427 = vmatprep.subr.mxu0 %v5158_v15  ;;  %5467 = vmatpush1.msra.mxu1 %v5285_v7  ;;  %v5312_v62 = vld [vmem:[%s10153_s8 + $0x958] sm:$0xff] }
 0x5f9   :  { %v4961_v31 = vadd.f32 %v4960_v29, %v4956_v28  ;;  %v5277_v28 = vld [vmem:[%s10153_s8 + $0x840] sm:$0xff]  ;;  %5428 = vmatpush2.msra.mxu0 %v5157_v8  ;;  %5468 = vmatprep.subr.mxu1 %v5278_v24  ;;  %v5104_v15 = vld [vmem:[%s10153_s8 + $0x2d8] sm:$0xff]  ;;  %v5311_v7 = vld [vmem:[%s10153_s8 + $0x950] sm:$0xff] }
 0x5fa   :  { %v5149_v29 = vld [vmem:[%s10153_s8 + $0x440] sm:$0xff]  ;;  %5429 = vmatprep.subr.mxu0 %v5150_v11  ;;  %5469 = vmatpush1.msra.mxu1 %v5277_v28  ;;  %v5103_v8 = vld [vmem:[%s10153_s8 + $0x2d0] sm:$0xff]  ;;  %v5304_v24 = vld [vmem:[%s10153_s8 + $0x918] sm:$0xff] }
 0x5fb   :  { %v4962_v38 = vadd.f32 %v4961_v31, %v4957_v30  ;;  %v5270_v30 = vld [vmem:[%s10153_s8 + $0x808] sm:$0xff]  ;;  %v5269_v36 = vld [vmem:[%s10153_s8 + $0x800] sm:$0xff]  ;;  %5430 = vmatpush2.msra.mxu0 %v5149_v29  ;;  %v5096_v11 = vld [vmem:[%s10153_s8 + $0x298] sm:$0xff] }
 0x5fc   :  { %v5142_v31 = vld [vmem:[%s10153_s8 + $0x408] sm:$0xff]  ;;  %5470 = vmatprep.subr.mxu1 %v5270_v30  ;;  %v5303_v28 = vld [vmem:[%s10153_s8 + $0x910] sm:$0xff]  ;;  %v5296_v30 = vld [vmem:[%s10153_s8 + $0x8d8] sm:$0xff] }
 0x5fd   :  { %v4963_v40 = vadd.f32 %v4962_v38, %v4958_v12  ;;  %v5141_v12 = vld [vmem:[%s10153_s8 + $0x400] sm:$0xff]  ;;  %v5136_v38 = vld [vmem:[%s10153_s8 + $0x3d8] sm:$0xff]  ;;  %5431 = vmatprep.subr.mxu0 %v5142_v31  ;;  %5471 = vmatpush1.msra.mxu1 %v5269_v36  ;;  %v5095_v29 = vld [vmem:[%s10153_s8 + $0x290] sm:$0xff] }
 0x5fe   :  { %5432 = vmatpush2.msra.mxu0 %v5141_v12  ;;  %5511 = vmatprep.subr.mxu1 %v5136_v38  ;;  %v5088_v31 = vld [vmem:[%s10153_s8 + $0x258] sm:$0xff]  ;;  %v5295_v36 = vld [vmem:[%s10153_s8 + $0x8d0] sm:$0xff] }
 0x5ff   :  { %v4965_v32 = vadd.f32 %v4964_v9, %v4963_v40  ;;  %v5336_v40 = vld [vmem:[%s10153_s8 + $0xa18] sm:$0xf]  ;;  %v5087_v12 = vld [vmem:[%s10153_s8 + $0x250] sm:$0xff] }
 0x600   :  { %6672 = vmatprep.subr.msk.mxu0 %vm2474_vm9, %v5336_v40  ;;  %v5288_v38 = vld [vmem:[%s10153_s8 + $0x898] sm:$0xff] }
 0x601   :  { %4966 = vadd.xlane.f32.xlu0 %v4965_v32  ;;  %v5080_v40 = vld [vmem:[%s10153_s8 + $0x218] sm:$0xff] }
 0x617   :  { %4980 = vperm.xlu0 %6713, %v4977_v50  }
 0x68a   :  { %v4967_v9 = vpop.xlane.xlu0 %4966 }
 0x68b   :  { %v4968_v32 = vmul.f32 0.001953125, %v4967_v9  ;;  %v5287_v9 = vld [vmem:[%s10153_s8 + $0x890] sm:$0xff] }
 0x68d   :  { %v4969_v34 = vadd.f32 1e-05, %v4968_v32  ;;  %v5079_v32 = vld [vmem:[%s10153_s8 + $0x210] sm:$0xff] }
 0x68f   :  { %6724 = vrsqrt.f32 %v4969_v34  ;;  %v5280_v34 = vld [vmem:[%s10153_s8 + $0x858] sm:$0xff] }
 0x692   :  { %v4981_v50 = vpop.permute.xlu0 %4980 }
 0x69c   :  { %v6725_v43 = vpop.eup %6724 }
 0x69d   :  { %v4971_v42 = vmul.f32 %v6725_v43, %v7960_v6  ;;  %v4972_v39 = vmul.f32 %v6725_v43, %v7963_v5  ;;  %v4973_v45 = vmul.f32 %v6725_v43, %v7966_v22  ;;  %v4974_v47 = vmul.f32 %v6725_v43, %v7969_v23 }
 0x69e   :  { %v4975_v35 = vmul.f32 %v6725_v43, %v7975_v10  ;;  %v4976_v41 = vmul.f32 %v6725_v43, %v7972_v25  ;;  %v5072_v43 = vld [vmem:[%s10153_s8 + $0x1d8] sm:$0xff] }
 0x69f   :  { %v4983_v51 = vmul.f32 %v4981_v50, %v4971_v42  ;;  %v4984_v52 = vmul.f32 %v4981_v50, %v4972_v39  ;;  %v4985_v44 = vmul.f32 %v4981_v50, %v4973_v45  ;;  %v4986_v46 = vmul.f32 %v4981_v50, %v4974_v47  ;;  %v5279_v42 = vld [vmem:[%s10153_s8 + $0x850] sm:$0xff]  ;;  %v5272_v45 = vld [vmem:[%s10153_s8 + $0x818] sm:$0xff] }
 0x6a0   :  { %v4987_v57 = vmul.f32 %v4981_v50, %v4975_v35  ;;  %v4988_v53 = vmul.f32 %v4981_v50, %v4976_v41  ;;  %v5071_v39 = vld [vmem:[%s10153_s8 + $0x1d0] sm:$0xff]  ;;  %v5064_v47 = vld [vmem:[%s10153_s8 + $0x198] sm:$0xff]  ;;  %v5138_v50 = vld [vmem:[%s10153_s8 + $0x3e8] sm:$0xff] }
 0x6a1   :  { %v4997_v14 = vadd.f32 %v4993_v54, %v4985_v44  ;;  %v4996_v6 = vadd.f32 %v4993_v54, %v4984_v52  ;;  %v4995_v60 = vadd.f32 %v4993_v54, %v4983_v51  ;;  %v4998_v5 = vadd.f32 %v4993_v54, %v4986_v46  ;;  %v5271_v35 = vld [vmem:[%s10153_s8 + $0x810] sm:$0xff]  ;;  %v5056_v51 = vld [vmem:[%s10153_s8 + $0x158] sm:$0xff]  ;;  %v5137_v52 = vld [vmem:[%s10153_s8 + $0x3e0] sm:$0xff] }
 0x6a2   :  { %v5000_v55 = vadd.f32 %v4993_v54, %v4988_v53  ;;  %v4999_v22 = vadd.f32 %v4993_v54, %v4987_v57  ;;  %v5063_v41 = vld [vmem:[%s10153_s8 + $0x190] sm:$0xff]  ;;  %v5130_v46 = vld [vmem:[%s10153_s8 + $0x3a8] sm:$0xff]  ;;  %v5048_v54 = vld [vmem:[%s10153_s8 + $0x118] sm:$0xff] }
 0x6a3   :  { %v5002_v48 = vmax.f32 %v4996_v6, 0.0  ;;  %v5003_v23 = vmax.f32 %v4997_v14, 0.0  ;;  %v5001_v0 = vmax.f32 %v4995_v60, 0.0  ;;  %v5004_v10 = vmax.f32 %v4998_v5, 0.0  ;;  %v5055_v44 = vld [vmem:[%s10153_s8 + $0x150] sm:$0xff]  ;;  %v5129_v57 = vld [vmem:[%s10153_s8 + $0x3a0] sm:$0xff] }
 0x6a4   :  { %v5006_v58 = vmax.f32 %v5000_v55, 0.0  ;;  %v5005_v25 = vmax.f32 %v4999_v22, 0.0  ;;  %v5047_v53 = vld [vmem:[%s10153_s8 + $0x110] sm:$0xff]  ;;  %v5122_v14 = vld [vmem:[%s10153_s8 + $0x368] sm:$0xff]  ;;  %v5040_v6 = vld [vmem:[%s10153_s8 + $0xd8] sm:$0xff] }
 0x6a5   :  { %v8153_v63 = vmul.f32 %v5002_v48, %v7404_v4  ;;  %v8156_v2 = vmul.f32 %v5003_v23, %v7410_v37  ;;  %v8159_v18 = vmul.f32 %v5001_v0, %v7406_v33  ;;  %v5128_v4 = vld [vmem:[%s10153_s8 + $0x398] sm:$0xff]  ;;  %v5010_v33 = vmul.f32 %v5004_v10, %v7412_v49  ;;  %v5335_v37 = vld [vmem:[%s10153_s8 + $0xa10] sm:$0xf]  ;;  %v5121_v60 = vld [vmem:[%s10153_s8 + $0x360] sm:$0xff] }
 0x6a6   :  { %v5012_v19 = vmul.f32 %v5006_v58, %v7419_v13  ;;  %v5011_v59 = vmul.f32 %v5005_v25, %v7415_v56  ;;  %v5127_v56 = vld [vmem:[%s10153_s8 + $0x390] sm:$0xff]  ;;  %v5328_v13 = vld [vmem:[%s10153_s8 + $0x9d8] sm:$0xff]  ;;  %v5114_v55 = vld [vmem:[%s10153_s8 + $0x328] sm:$0xff] }
 0x6a7   :  { %5433 = vmatprep.mubr.f32.mxu0 %v8153_v63  ;;  %6671 = vmatmul.mubr.msk.f32.vlgmr.msra.gmra.mxu1 %vm5341_vm2, %v8156_v2  ;;  %v5120_v49 = vld [vmem:[%s10153_s8 + $0x358] sm:$0xff]  ;;  %v6715_v20 = vpack.i.bf16 %v8156_v2, %v5010_v33  ;;  %v5039_v5 = vld [vmem:[%s10153_s8 + $0xd0] sm:$0xff]  ;;  %v5113_v48 = vld [vmem:[%s10153_s8 + $0x320] sm:$0xff] }
 0x6a8   :  { %5954 = vrot.lane.b32.xlu0 %v5012_v19, %s6922_s24  ;;  %5952 = vrot.lane.b32.xlu1 %v5011_v59, %s6922_s24  ;;  %v5032_v22 = vld [vmem:[%s10153_s8 + $0x98] sm:$0xff]  ;;  %v5031_v23 = vld [vmem:[%s10153_s8 + $0x90] sm:$0xff] }
 0x6a9   :  { %5512 = vmatpush1.msra.mxu1 %v5135_v17  ;;  %5434 = vmatmul.mubr.f32.vlgmr.msra.gmra.mxu0 %v8159_v18  ;;  %v5106_v0 = vld [vmem:[%s10153_s8 + $0x2e8] sm:$0xff]  ;;  %v5024_v10 = vld [vmem:[%s10153_s8 + $0x58] sm:$0xff]  ;;  %v5105_v58 = vld [vmem:[%s10153_s8 + $0x2e0] sm:$0xff] }
 0x6aa   :  { %5513 = vmatprep.subr.mxu1 %v5128_v4  ;;  %5575 = vmatprep.mubr.f32.mxu1 %v8153_v63  ;;  %v5023_v25 = vld [vmem:[%s10153_s8 + $0x50] sm:$0xff]  ;;  %v5098_v19 = vld [vmem:[%s10153_s8 + $0x2a8] sm:$0xff]  ;;  %v5016_v59 = vld [vmem:[%s10153_s8 + $0x18] sm:$0xff] }
 0x6ab   :  { %6673 = vmatpush1.msk.msra.mxu0 %vm2474_vm9, %v5335_v37  ;;  %5514 = vmatpush1.msra.mxu1 %v5127_v56  ;;  %v5097_v17 = vld [vmem:[%s10153_s8 + $0x2a0] sm:$0xff]  ;;  %v5015_v4 = vld [vmem:[%s10153_s8 + $0x10] sm:$0xff]  ;;  %v5090_v33 = vld [vmem:[%s10153_s8 + $0x268] sm:$0xff] }
 0x6ac   :  { %5598 = vmatprep.subr.mxu0 %v5328_v13  ;;  %5515 = vmatprep.subr.mxu1 %v5120_v49  ;;  %v5264_v37 = vld [vmem:[%s10153_s8 + $0x7d8] sm:$0xff]  ;;  %v5089_v56 = vld [vmem:[%s10153_s8 + $0x260] sm:$0xff]  ;;  %v5263_v13 = vld [vmem:[%s10153_s8 + $0x7d0] sm:$0xff] }
 0x6ad   :  { %5599 = vmatpush1.msra.mxu0 %v5327_v1  ;;  %6716 = vrot.lane.b32.xlu1 %v6715_v20, %s6922_s24  ;;  %v5082_v49 = vld [vmem:[%s10153_s8 + $0x228] sm:$0xff]  ;;  %v5256_v1 = vld [vmem:[%s10153_s8 + $0x798] sm:$0xff]  ;;  %v5081_v20 = vld [vmem:[%s10153_s8 + $0x220] sm:$0xff] }
 0x6ae   :  { %5516 = vmatpush1.msra.mxu1 %v5119_v61  ;;  %5600 = vmatprep.subr.mxu0 %v5320_v3  ;;  %v5255_v61 = vld [vmem:[%s10153_s8 + $0x790] sm:$0xff]  ;;  %v5074_v3 = vld [vmem:[%s10153_s8 + $0x1e8] sm:$0xff] }
 0x6af   :  { %5517 = vmatprep.subr.mxu1 %v5112_v21  ;;  %5601 = vmatpush1.msra.mxu0 %v5319_v27  ;;  %v5248_v21 = vld [vmem:[%s10153_s8 + $0x758] sm:$0xff]  ;;  %v5073_v27 = vld [vmem:[%s10153_s8 + $0x1e0] sm:$0xff] }
 0x6b0   :  { %5518 = vmatpush1.msra.mxu1 %v5111_v16  ;;  %5602 = vmatprep.subr.mxu0 %v5312_v62  ;;  %v5247_v16 = vld [vmem:[%s10153_s8 + $0x750] sm:$0xff]  ;;  %v5066_v62 = vld [vmem:[%s10153_s8 + $0x1a8] sm:$0xff] }
 0x6b1   :  { %5519 = vmatprep.subr.mxu1 %v5104_v15  ;;  %5603 = vmatpush1.msra.mxu0 %v5311_v7  ;;  %v5240_v15 = vld [vmem:[%s10153_s8 + $0x718] sm:$0xff]  ;;  %v5065_v7 = vld [vmem:[%s10153_s8 + $0x1a0] sm:$0xff] }
 0x6b2   :  { %5520 = vmatpush1.msra.mxu1 %v5103_v8  ;;  %5604 = vmatprep.subr.mxu0 %v5304_v24  ;;  %v5239_v8 = vld [vmem:[%s10153_s8 + $0x710] sm:$0xff]  ;;  %v5058_v24 = vld [vmem:[%s10153_s8 + $0x168] sm:$0xff] }
 0x6b3   :  { %5521 = vmatprep.subr.mxu1 %v5096_v11  ;;  %5605 = vmatpush1.msra.mxu0 %v5303_v28  ;;  %v5232_v11 = vld [vmem:[%s10153_s8 + $0x6d8] sm:$0xff]  ;;  %v5057_v28 = vld [vmem:[%s10153_s8 + $0x160] sm:$0xff] }
 0x6b4   :  { %5522 = vmatpush1.msra.mxu1 %v5095_v29  ;;  %5606 = vmatprep.subr.mxu0 %v5296_v30  ;;  %v5231_v29 = vld [vmem:[%s10153_s8 + $0x6d0] sm:$0xff]  ;;  %v5050_v30 = vld [vmem:[%s10153_s8 + $0x128] sm:$0xff] }
 0x6b5   :  { %5523 = vmatprep.subr.mxu1 %v5088_v31  ;;  %5607 = vmatpush1.msra.mxu0 %v5295_v36  ;;  %v5224_v31 = vld [vmem:[%s10153_s8 + $0x698] sm:$0xff]  ;;  %v5049_v36 = vld [vmem:[%s10153_s8 + $0x120] sm:$0xff] }
 0x6b6   :  { %5524 = vmatpush1.msra.mxu1 %v5087_v12  ;;  %5608 = vmatprep.subr.mxu0 %v5288_v38  ;;  %v5223_v12 = vld [vmem:[%s10153_s8 + $0x690] sm:$0xff]  ;;  %v5042_v38 = vld [vmem:[%s10153_s8 + $0xe8] sm:$0xff] }
 0x6b7   :  { %5525 = vmatprep.subr.mxu1 %v5080_v40  ;;  %5609 = vmatpush1.msra.mxu0 %v5287_v9  ;;  %v5216_v40 = vld [vmem:[%s10153_s8 + $0x658] sm:$0xff]  ;;  %v5041_v9 = vld [vmem:[%s10153_s8 + $0xe0] sm:$0xff] }
 0x6b8   :  { %5526 = vmatpush1.msra.mxu1 %v5079_v32  ;;  %5610 = vmatprep.subr.mxu0 %v5280_v34  ;;  %v5215_v32 = vld [vmem:[%s10153_s8 + $0x650] sm:$0xff]  ;;  %v5034_v34 = vld [vmem:[%s10153_s8 + $0xa8] sm:$0xff] }
 0x6b9   :  { %5527 = vmatprep.subr.mxu1 %v5072_v43  ;;  %5611 = vmatpush1.msra.mxu0 %v5279_v42  ;;  %v5208_v43 = vld [vmem:[%s10153_s8 + $0x618] sm:$0xff]  ;;  %v5033_v42 = vld [vmem:[%s10153_s8 + $0xa0] sm:$0xff] }
 0x6ba   :  { %5528 = vmatpush1.msra.mxu1 %v5071_v39  ;;  %5612 = vmatprep.subr.mxu0 %v5272_v45  ;;  %v5207_v39 = vld [vmem:[%s10153_s8 + $0x610] sm:$0xff]  ;;  %v5026_v45 = vld [vmem:[%s10153_s8 + $0x68] sm:$0xff] }
 0x6bb   :  { %5529 = vmatprep.subr.mxu1 %v5064_v47  ;;  %5613 = vmatpush1.msra.mxu0 %v5271_v35  ;;  %v5200_v47 = vld [vmem:[%s10153_s8 + $0x5d8] sm:$0xff]  ;;  %v5025_v35 = vld [vmem:[%s10153_s8 + $0x60] sm:$0xff] }
 0x6bc   :  { %5646 = vmatprep.mubr.f32.mxu0 %v7449_v26  ;;  %5530 = vmatpush1.msra.mxu1 %v5063_v41  ;;  %v5199_v41 = vld [vmem:[%s10153_s8 + $0x5d0] sm:$0xff] }
 0x6bd   :  { %6674 = vmatmul.mubr.msk.f32.vlgmr.msra.gmra.mxu0 %vm5341_vm2, %v8156_v2  ;;  %5653 = vmatprep.subr.mxu0 %v5138_v50  ;;  %v5018_v50 = vld [vmem:[%s10153_s8 + $0x28] sm:$0xff] }
 0x6be   :  { %5531 = vmatprep.subr.mxu1 %v5056_v51  ;;  %5654 = vmatpush1.msra.mxu0 %v5137_v52  ;;  %v5192_v51 = vld [vmem:[%s10153_s8 + $0x598] sm:$0xff]  ;;  %v5017_v52 = vld [vmem:[%s10153_s8 + $0x20] sm:$0xff] }
 0x6bf   :  { %5717 = vmatprep.mubr.f32.mxu0 %v8153_v63  ;;  %5532 = vmatpush1.msra.mxu1 %v5055_v44  ;;  %v5191_v44 = vld [vmem:[%s10153_s8 + $0x590] sm:$0xff] }
 0x6c0   :  { %5655 = vmatprep.subr.mxu0 %v5130_v46  ;;  %5533 = vmatprep.subr.mxu1 %v5048_v54  ;;  %v8478_v46 = vld [vmem:[%s10153_s8 + $0x7e8] sm:$0xff]  ;;  %v8483_v54 = vld [vmem:[%s10153_s8 + $0x558] sm:$0xff] }
 0x6c1   :  { %5656 = vmatpush1.msra.mxu0 %v5129_v57  ;;  %5534 = vmatpush1.msra.mxu1 %v5047_v53  ;;  %v8488_v57 = vld [vmem:[%s10153_s8 + $0x7e0] sm:$0xff]  ;;  %v8493_v53 = vld [vmem:[%s10153_s8 + $0x550] sm:$0xff] }
 0x6c2   :  { %5657 = vmatprep.subr.mxu0 %v5122_v14  ;;  %5535 = vmatprep.subr.mxu1 %v5040_v6  ;;  %v8498_v14 = vld [vmem:[%s10153_s8 + $0x7a8] sm:$0xff]  ;;  %v8503_v6 = vld [vmem:[%s10153_s8 + $0x518] sm:$0xff] }
 0x6c3   :  { %5658 = vmatpush1.msra.mxu0 %v5121_v60  ;;  %5536 = vmatpush1.msra.mxu1 %v5039_v5  ;;  %v8510_v60 = vld [vmem:[%s10153_s8 + $0x7a0] sm:$0xff]  ;;  %v8515_v5 = vld [vmem:[%s10153_s8 + $0x510] sm:$0xff] }
 0x6c4   :  { %5659 = vmatprep.subr.mxu0 %v5114_v55  ;;  %5537 = vmatprep.subr.mxu1 %v5032_v22  ;;  %v8522_v55 = vld [vmem:[%s10153_s8 + $0x768] sm:$0xff]  ;;  %v8527_v22 = vld [vmem:[%s10153_s8 + $0x4d8] sm:$0xff] }
 0x6c5   :  { %5660 = vmatpush1.msra.mxu0 %v5113_v48  ;;  %5538 = vmatpush1.msra.mxu1 %v5031_v23  ;;  %v8534_v48 = vld [vmem:[%s10153_s8 + $0x760] sm:$0xff]  ;;  %v8539_v23 = vld [vmem:[%s10153_s8 + $0x4d0] sm:$0xff] }
 0x6c6   :  { %5661 = vmatprep.subr.mxu0 %v5106_v0  ;;  %5539 = vmatprep.subr.mxu1 %v5024_v10  ;;  %v8546_v0 = vld [vmem:[%s10153_s8 + $0x728] sm:$0xff]  ;;  %v8551_v10 = vld [vmem:[%s10153_s8 + $0x498] sm:$0xff] }
 0x6c7   :  { %5662 = vmatpush1.msra.mxu0 %v5105_v58  ;;  %5540 = vmatpush1.msra.mxu1 %v5023_v25  ;;  %v8558_v58 = vld [vmem:[%s10153_s8 + $0x720] sm:$0xff]  ;;  %v8563_v25 = vld [vmem:[%s10153_s8 + $0x490] sm:$0xff] }
 0x6c8   :  { %5663 = vmatprep.subr.mxu0 %v5098_v19  ;;  %5541 = vmatprep.subr.mxu1 %v5016_v59  ;;  %v8570_v19 = vld [vmem:[%s10153_s8 + $0x6e8] sm:$0xff]  ;;  %v8575_v59 = vld [vmem:[%s10153_s8 + $0x458] sm:$0xff] }
 0x6c9   :  { %5664 = vmatpush1.msra.mxu0 %v5097_v17  ;;  %5542 = vmatpush1.msra.mxu1 %v5015_v4  ;;  %v8582_v17 = vld [vmem:[%s10153_s8 + $0x6e0] sm:$0xff]  ;;  %v8587_v4 = vld [vmem:[%s10153_s8 + $0x450] sm:$0xff] }
 0x6ca   :  { %5665 = vmatprep.subr.mxu0 %v5090_v33  ;;  %5543 = vmatprep.subr.mxu1 %v5264_v37  ;;  %v8594_v33 = vld [vmem:[%s10153_s8 + $0x6a8] sm:$0xff]  ;;  %v8599_v37 = vld [vmem:[%s10153_s8 + $0x418] sm:$0xff] }
 0x6cb   :  { %5666 = vmatpush1.msra.mxu0 %v5089_v56  ;;  %5544 = vmatpush2.msra.mxu1 %v5263_v13  ;;  %v8606_v56 = vld [vmem:[%s10153_s8 + $0x6a0] sm:$0xff]  ;;  %v8611_v13 = vld [vmem:[%s10153_s8 + $0x410] sm:$0xff] }
 0x6cc   :  { %5667 = vmatprep.subr.mxu0 %v5082_v49  ;;  %5545 = vmatprep.subr.mxu1 %v5256_v1  ;;  %v8618_v49 = vld [vmem:[%s10153_s8 + $0x668] sm:$0xff]  ;;  %v8625_v1 = vld [vmem:[%s10153_s8 + $0x660] sm:$0xff] }
 0x6cd   :  { %5668 = vmatpush1.msra.mxu0 %v5081_v20  ;;  %5546 = vmatpush2.msra.mxu1 %v5255_v61  ;;  %v8630_v20 = vld [vmem:[%s10153_s8 + $0xa28] sm:$0xf] }
 0x6ce   :  { %5669 = vmatprep.subr.mxu0 %v5074_v3  ;;  %5547 = vmatprep.subr.mxu1 %v5248_v21  ;;  %v8637_v61 = vld [vmem:[%s10153_s8 + $0x628] sm:$0xff]  ;;  %v8642_v3 = vld [vmem:[%s10153_s8 + $0xa20] sm:$0xf] }
 0x6cf   :  { %5670 = vmatpush1.msra.mxu0 %v5073_v27  ;;  %5548 = vmatpush2.msra.mxu1 %v5247_v16  ;;  %v8649_v21 = vld [vmem:[%s10153_s8 + $0x620] sm:$0xff]  ;;  %v8654_v27 = vld [vmem:[%s10153_s8 + $0x9e8] sm:$0xff] }
 0x6d0   :  { %5671 = vmatprep.subr.mxu0 %v5066_v62  ;;  %5549 = vmatprep.subr.mxu1 %v5240_v15  ;;  %v8662_v16 = vld [vmem:[%s10153_s8 + $0x5e8] sm:$0xff]  ;;  %v8667_v62 = vld [vmem:[%s10153_s8 + $0x9e0] sm:$0xff] }
 0x6d1   :  { %5672 = vmatpush1.msra.mxu0 %v5065_v7  ;;  %5550 = vmatpush2.msra.mxu1 %v5239_v8  ;;  %v8675_v15 = vld [vmem:[%s10153_s8 + $0x5e0] sm:$0xff]  ;;  %v8680_v7 = vld [vmem:[%s10153_s8 + $0x9a8] sm:$0xff] }
 0x6d2   :  { %5673 = vmatprep.subr.mxu0 %v5058_v24  ;;  %5551 = vmatprep.subr.mxu1 %v5232_v11  ;;  %v8687_v8 = vld [vmem:[%s10153_s8 + $0x5a8] sm:$0xff]  ;;  %v8692_v24 = vld [vmem:[%s10153_s8 + $0x9a0] sm:$0xff] }
 0x6d3   :  { %5674 = vmatpush1.msra.mxu0 %v5057_v28  ;;  %5552 = vmatpush2.msra.mxu1 %v5231_v29  ;;  %v8699_v11 = vld [vmem:[%s10153_s8 + $0x5a0] sm:$0xff]  ;;  %v8704_v28 = vld [vmem:[%s10153_s8 + $0x968] sm:$0xff] }
 0x6d4   :  { %5675 = vmatprep.subr.mxu0 %v5050_v30  ;;  %5553 = vmatprep.subr.mxu1 %v5224_v31  ;;  %v8711_v29 = vld [vmem:[%s10153_s8 + $0x568] sm:$0xff]  ;;  %v8716_v30 = vld [vmem:[%s10153_s8 + $0x960] sm:$0xff] }
 0x6d5   :  { %5676 = vmatpush1.msra.mxu0 %v5049_v36  ;;  %5554 = vmatpush2.msra.mxu1 %v5223_v12  ;;  %v8723_v31 = vld [vmem:[%s10153_s8 + $0x560] sm:$0xff]  ;;  %v8728_v36 = vld [vmem:[%s10153_s8 + $0x928] sm:$0xff] }
 0x6d6   :  { %5677 = vmatprep.subr.mxu0 %v5042_v38  ;;  %5555 = vmatprep.subr.mxu1 %v5216_v40  ;;  %v8735_v12 = vld [vmem:[%s10153_s8 + $0x528] sm:$0xff]  ;;  %v8740_v38 = vld [vmem:[%s10153_s8 + $0x920] sm:$0xff] }
 0x6d7   :  { %5678 = vmatpush1.msra.mxu0 %v5041_v9  ;;  %5556 = vmatpush2.msra.mxu1 %v5215_v32  ;;  %v8747_v40 = vld [vmem:[%s10153_s8 + $0x520] sm:$0xff]  ;;  %v8752_v9 = vld [vmem:[%s10153_s8 + $0x8e8] sm:$0xff] }
 0x6d8   :  { %5679 = vmatprep.subr.mxu0 %v5034_v34  ;;  %5557 = vmatprep.subr.mxu1 %v5208_v43  ;;  %v8759_v32 = vld [vmem:[%s10153_s8 + $0x4e8] sm:$0xff]  ;;  %v8764_v34 = vld [vmem:[%s10153_s8 + $0x8e0] sm:$0xff] }
 0x6d9   :  { %5680 = vmatpush1.msra.mxu0 %v5033_v42  ;;  %5558 = vmatpush2.msra.mxu1 %v5207_v39  ;;  %v8771_v43 = vld [vmem:[%s10153_s8 + $0x4e0] sm:$0xff]  ;;  %v8776_v42 = vld [vmem:[%s10153_s8 + $0x8a8] sm:$0xff] }
 0x6da   :  { %5681 = vmatprep.subr.mxu0 %v5026_v45  ;;  %5559 = vmatprep.subr.mxu1 %v5200_v47  ;;  %v8783_v39 = vld [vmem:[%s10153_s8 + $0x4a8] sm:$0xff]  ;;  %v8788_v45 = vld [vmem:[%s10153_s8 + $0x8a0] sm:$0xff] }
 0x6db   :  { %5682 = vmatpush1.msra.mxu0 %v5025_v35  ;;  %5560 = vmatpush2.msra.mxu1 %v5199_v41  ;;  %10250 = vst [vmem:[#allocation3_spill] sm:$0xff] %v8788_v45  ;;  %v8795_v47 = vld [vmem:[%s10153_s8 + $0x4a0] sm:$0xff]  ;;  %v8800_v35 = vld [vmem:[%s10153_s8 + $0x868] sm:$0xff] }
 0x6dc   :  { %5683 = vmatprep.subr.mxu0 %v5018_v50  ;;  %5561 = vmatprep.subr.mxu1 %v5192_v51  ;;  %10251 = vst [vmem:[#allocation4_spill] sm:$0xff] %v8795_v47  ;;  %10252 = vst [vmem:[#allocation5_spill] sm:$0xff] %v8800_v35  ;;  %v8807_v41 = vld [vmem:[%s10153_s8 + $0x468] sm:$0xff]  ;;  %v8812_v50 = vld [vmem:[%s10153_s8 + $0x860] sm:$0xff] }
 0x6dd   :  { %5684 = vmatpush1.msra.mxu0 %v5017_v52  ;;  %5562 = vmatpush2.msra.mxu1 %v5191_v44  ;;  %10253 = vst [vmem:[#allocation6_spill] sm:$0xff] %v8807_v41  ;;  %10254 = vst [vmem:[#allocation7_spill] sm:$0xff] %v8812_v50  ;;  %v8819_v51 = vld [vmem:[%s10153_s8 + $0x460] sm:$0xff]  ;;  %v8824_v52 = vld [vmem:[%s10153_s8 + $0x828] sm:$0xff] }
 0x6de   :  { %5685 = vmatprep.subr.mxu0 %v8478_v46  ;;  %5563 = vmatprep.subr.mxu1 %v8483_v54  ;;  %10255 = vst [vmem:[#allocation8_spill] sm:$0xff] %v8819_v51  ;;  %10256 = vst [vmem:[#allocation9_spill] sm:$0xff] %v8824_v52  ;;  %v8831_v44 = vld [vmem:[%s10153_s8 + $0x428] sm:$0xff] }
 0x6df   :  { %5686 = vmatpush2.msra.mxu0 %v8488_v57  ;;  %5564 = vmatpush2.msra.mxu1 %v8493_v53  ;;  %10257 = vst [vmem:[#allocation10_spill] sm:$0xff] %v8831_v44 }
 0x6e0   :  { %5687 = vmatprep.subr.mxu0 %v8498_v14  ;;  %5565 = vmatprep.subr.mxu1 %v8503_v6 }
 0x6e1   :  { %5688 = vmatpush2.msra.mxu0 %v8510_v60  ;;  %5566 = vmatpush2.msra.mxu1 %v8515_v5 }
 0x6e2   :  { %5689 = vmatprep.subr.mxu0 %v8522_v55  ;;  %5567 = vmatprep.subr.mxu1 %v8527_v22 }
 0x6e3   :  { %5690 = vmatpush2.msra.mxu0 %v8534_v48  ;;  %5568 = vmatpush2.msra.mxu1 %v8539_v23 }
 0x6e4   :  { %5691 = vmatprep.subr.mxu0 %v8546_v0  ;;  %5569 = vmatprep.subr.mxu1 %v8551_v10 }
 0x6e5   :  { %5692 = vmatpush2.msra.mxu0 %v8558_v58  ;;  %5570 = vmatpush2.msra.mxu1 %v8563_v25 }
 0x6e6   :  { %5693 = vmatprep.subr.mxu0 %v8570_v19  ;;  %5571 = vmatprep.subr.mxu1 %v8575_v59 }
 0x6e7   :  { %5694 = vmatpush2.msra.mxu0 %v8582_v17  ;;  %5572 = vmatpush2.msra.mxu1 %v8587_v4 }
 0x6e8   :  { %5695 = vmatprep.subr.mxu0 %v8594_v33  ;;  %5573 = vmatprep.subr.mxu1 %v8599_v37 }
 0x6e9   :  { %5696 = vmatpush2.msra.mxu0 %v8606_v56  ;;  %5574 = vmatpush2.msra.mxu1 %v8611_v13 }
 0x6ea   :  { %5697 = vmatprep.subr.mxu0 %v8618_v49  ;;  %5576 = vmatmul.mubr.f32.vlgmr.msra.gmra.mxu1 %v8159_v18 }
 0x6eb   :  { %5698 = vmatpush2.msra.mxu0 %v8625_v1  ;;  %6675 = vmatprep.subr.msk.mxu1 %vm2474_vm9, %v8630_v20 }
 0x6ec   :  { %5699 = vmatprep.subr.mxu0 %v8637_v61  ;;  %6676 = vmatpush1.msk.msra.mxu1 %vm2474_vm9, %v8642_v3 }
 0x6ed   :  { %5700 = vmatpush2.msra.mxu0 %v8649_v21  ;;  %5740 = vmatprep.subr.mxu1 %v8654_v27 }
 0x6ee   :  { %5701 = vmatprep.subr.mxu0 %v8662_v16  ;;  %5741 = vmatpush1.msra.mxu1 %v8667_v62 }
 0x6ef   :  { %5702 = vmatpush2.msra.mxu0 %v8675_v15  ;;  %5742 = vmatprep.subr.mxu1 %v8680_v7 }
 0x6f0   :  { %5703 = vmatprep.subr.mxu0 %v8687_v8  ;;  %5743 = vmatpush1.msra.mxu1 %v8692_v24 }
 0x6f1   :  { %5704 = vmatpush2.msra.mxu0 %v8699_v11  ;;  %5744 = vmatprep.subr.mxu1 %v8704_v28 }
 0x6f2   :  { %5705 = vmatprep.subr.mxu0 %v8711_v29  ;;  %5745 = vmatpush1.msra.mxu1 %v8716_v30 }
 0x6f3   :  { %5706 = vmatpush2.msra.mxu0 %v8723_v31  ;;  %5746 = vmatprep.subr.mxu1 %v8728_v36 }
 0x6f4   :  { %5707 = vmatprep.subr.mxu0 %v8735_v12  ;;  %5747 = vmatpush1.msra.mxu1 %v8740_v38 }
 0x6f5   :  { %5708 = vmatpush2.msra.mxu0 %v8747_v40  ;;  %5748 = vmatprep.subr.mxu1 %v8752_v9 }
 0x6f6   :  { %5709 = vmatprep.subr.mxu0 %v8759_v32  ;;  %5749 = vmatpush1.msra.mxu1 %v8764_v34 }
 0x6f7   :  { %5710 = vmatpush2.msra.mxu0 %v8771_v43  ;;  %5750 = vmatprep.subr.mxu1 %v8776_v42 }
 0x6f8   :  { %5711 = vmatprep.subr.mxu0 %v8783_v39  ;;  %5751 = vmatpush1.msra.mxu1 %v8788_v45  ;;  %v8836_v45 = vld [vmem:[%s10153_s8 + $0x820] sm:$0xff] }
 0x6f9   :  { %5712 = vmatpush2.msra.mxu0 %v8795_v47  ;;  %5752 = vmatprep.subr.mxu1 %v8800_v35  ;;  %10258 = vst [vmem:[#allocation11_spill] sm:$0xff] %v8836_v45  ;;  %v8843_v47 = vld [vmem:[%s10153_s8 + $0x420] sm:$0xff]  ;;  %v8850_v35 = vld [vmem:[%s10153_s8 + $0x3f8] sm:$0xff] }
 0x6fa   :  { %5713 = vmatprep.subr.mxu0 %v8807_v41  ;;  %5753 = vmatpush1.msra.mxu1 %v8812_v50  ;;  %10259 = vst [vmem:[#allocation12_spill] sm:$0xff] %v8843_v47  ;;  %10260 = vst [vmem:[#allocation13_spill] sm:$0xff] %v8850_v35  ;;  %v8857_v50 = vld [vmem:[%s10153_s8 + $0x3f0] sm:$0xff] }
 0x6fb   :  { %5714 = vmatpush2.msra.mxu0 %v8819_v51  ;;  %5754 = vmatprep.subr.mxu1 %v8824_v52  ;;  %10261 = vst [vmem:[#allocation14_spill] sm:$0xff] %v8857_v50  ;;  %v8864_v52 = vld [vmem:[%s10153_s8 + $0xa38] sm:$0xf]  ;;  %v9338_v41 = vld [vmem:[%s10153_s8 + $0x630] sm:$0xff] }
 0x6fc   :  { %5715 = vmatprep.subr.mxu0 %v8831_v44  ;;  %5755 = vmatpush1.msra.mxu1 %v8836_v45  ;;  %10262 = vst [vmem:[#allocation15_spill] sm:$0xff] %v8864_v52  ;;  %v8872_v45 = vld [vmem:[%s10153_s8 + $0x3b8] sm:$0xff]  ;;  %v8877_v44 = vld [vmem:[%s10153_s8 + $0xa30] sm:$0xf]  ;;  %10326 = vst [vmem:[#allocation78_spill] sm:$0xff] %v9338_v41 }
 0x6fd   :  { %5788 = vmatprep.mubr.f32.mxu1 %v7449_v26  ;;  %5716 = vmatpush2.msra.mxu0 %v8843_v47  ;;  %10263 = vst [vmem:[#allocation16_spill] sm:$0xff] %v8872_v45  ;;  %10264 = vst [vmem:[#allocation17_spill] sm:$0xff] %v8877_v44  ;;  %v8884_v47 = vld [vmem:[%s10153_s8 + $0x3b0] sm:$0xff]  ;;  %v8897_v51 = vld [vmem:[%s10153_s8 + $0x378] sm:$0xff] }
 0x6fe   :  { %6677 = vmatmul.mubr.msk.f32.vlgmr.msra.gmra.mxu1 %vm5341_vm2, %v8156_v2  ;;  %5795 = vmatprep.subr.mxu1 %v8850_v35  ;;  %10265 = vst [vmem:[#allocation18_spill] sm:$0xff] %v8884_v47  ;;  %v8889_v35 = vld [vmem:[%s10153_s8 + $0x9f8] sm:$0xff]  ;;  %10267 = vst [vmem:[#allocation20_spill] sm:$0xff] %v8897_v51 }
 0x6ff   :  { %5718 = vmatmul.mubr.f32.vlgmr.msra.gmra.mxu0 %v8159_v18  ;;  %5796 = vmatpush1.msra.mxu1 %v8857_v50  ;;  %10266 = vst [vmem:[#allocation19_spill] sm:$0xff] %v8889_v35  ;;  %v8902_v50 = vld [vmem:[%s10153_s8 + $0x9f0] sm:$0xff] }
 0x700   :  { %5859 = vmatprep.mubr.f32.mxu1 %v8153_v63  ;;  %6678 = vmatprep.subr.msk.mxu0 %vm2474_vm9, %v8864_v52  ;;  %10268 = vst [vmem:[#allocation21_spill] sm:$0xff] %v8902_v50  ;;  %v8910_v63 = vld [vmem:[%s10153_s8 + $0x370] sm:$0xff]  ;;  %v8915_v52 = vld [vmem:[%s10153_s8 + $0x9b8] sm:$0xff] }
 0x701   :  { %5797 = vmatprep.subr.mxu1 %v8872_v45  ;;  %6679 = vmatpush1.msk.msra.mxu0 %vm2474_vm9, %v8877_v44  ;;  %10269 = vst [vmem:[#allocation22_spill] sm:$0xff] %v8910_v63  ;;  %10270 = vst [vmem:[#allocation23_spill] sm:$0xff] %v8915_v52  ;;  %v8922_v45 = vld [vmem:[%s10153_s8 + $0x338] sm:$0xff]  ;;  %v8927_v44 = vld [vmem:[%s10153_s8 + $0x9b0] sm:$0xff] }
 0x702   :  { %5798 = vmatpush1.msra.mxu1 %v8884_v47  ;;  %5882 = vmatprep.subr.mxu0 %v8889_v35  ;;  %10271 = vst [vmem:[#allocation24_spill] sm:$0xff] %v8922_v45  ;;  %10272 = vst [vmem:[#allocation25_spill] sm:$0xff] %v8927_v44  ;;  %v8934_v47 = vld [vmem:[%s10153_s8 + $0x330] sm:$0xff]  ;;  %v8939_v35 = vld [vmem:[%s10153_s8 + $0x978] sm:$0xff] }
 0x703   :  { %5799 = vmatprep.subr.mxu1 %v8897_v51  ;;  %5883 = vmatpush1.msra.mxu0 %v8902_v50  ;;  %10273 = vst [vmem:[#allocation26_spill] sm:$0xff] %v8934_v47  ;;  %10274 = vst [vmem:[#allocation27_spill] sm:$0xff] %v8939_v35  ;;  %v8946_v51 = vld [vmem:[%s10153_s8 + $0x2f8] sm:$0xff]  ;;  %v8951_v50 = vld [vmem:[%s10153_s8 + $0x970] sm:$0xff] }
 0x704   :  { %5800 = vmatpush1.msra.mxu1 %v8910_v63  ;;  %5884 = vmatprep.subr.mxu0 %v8915_v52  ;;  %10275 = vst [vmem:[#allocation28_spill] sm:$0xff] %v8946_v51  ;;  %10276 = vst [vmem:[#allocation29_spill] sm:$0xff] %v8951_v50  ;;  %v8958_v63 = vld [vmem:[%s10153_s8 + $0x2f0] sm:$0xff]  ;;  %v8963_v52 = vld [vmem:[%s10153_s8 + $0x938] sm:$0xff] }
 0x705   :  { %5801 = vmatprep.subr.mxu1 %v8922_v45  ;;  %5885 = vmatpush1.msra.mxu0 %v8927_v44  ;;  %10277 = vst [vmem:[#allocation30_spill] sm:$0xff] %v8958_v63  ;;  %10278 = vst [vmem:[#allocation31_spill] sm:$0xff] %v8963_v52  ;;  %v8970_v45 = vld [vmem:[%s10153_s8 + $0x2b8] sm:$0xff]  ;;  %v8975_v44 = vld [vmem:[%s10153_s8 + $0x930] sm:$0xff] }
 0x706   :  { %5802 = vmatpush1.msra.mxu1 %v8934_v47  ;;  %5886 = vmatprep.subr.mxu0 %v8939_v35  ;;  %10279 = vst [vmem:[#allocation32_spill] sm:$0xff] %v8970_v45  ;;  %10280 = vst [vmem:[#allocation33_spill] sm:$0xff] %v8975_v44  ;;  %v8982_v47 = vld [vmem:[%s10153_s8 + $0x2b0] sm:$0xff]  ;;  %v8987_v35 = vld [vmem:[%s10153_s8 + $0x8f8] sm:$0xff] }
 0x707   :  { %5803 = vmatprep.subr.mxu1 %v8946_v51  ;;  %5887 = vmatpush1.msra.mxu0 %v8951_v50  ;;  %10281 = vst [vmem:[#allocation34_spill] sm:$0xff] %v8982_v47  ;;  %10282 = vst [vmem:[#allocation35_spill] sm:$0xff] %v8987_v35  ;;  %v8994_v51 = vld [vmem:[%s10153_s8 + $0x278] sm:$0xff]  ;;  %v8999_v50 = vld [vmem:[%s10153_s8 + $0x8f0] sm:$0xff] }
 0x708   :  { %5804 = vmatpush1.msra.mxu1 %v8958_v63  ;;  %5888 = vmatprep.subr.mxu0 %v8963_v52  ;;  %10283 = vst [vmem:[#allocation36_spill] sm:$0xff] %v8994_v51  ;;  %10284 = vst [vmem:[#allocation37_spill] sm:$0xff] %v8999_v50  ;;  %v9006_v63 = vld [vmem:[%s10153_s8 + $0x270] sm:$0xff]  ;;  %v9011_v52 = vld [vmem:[%s10153_s8 + $0x8b8] sm:$0xff] }
 0x709   :  { %5805 = vmatprep.subr.mxu1 %v8970_v45  ;;  %5889 = vmatpush1.msra.mxu0 %v8975_v44  ;;  %10285 = vst [vmem:[#allocation38_spill] sm:$0xff] %v9006_v63  ;;  %10286 = vst [vmem:[#allocation39_spill] sm:$0xff] %v9011_v52  ;;  %v9018_v45 = vld [vmem:[%s10153_s8 + $0x238] sm:$0xff]  ;;  %v9023_v44 = vld [vmem:[%s10153_s8 + $0x8b0] sm:$0xff] }
 0x70a   :  { %5806 = vmatpush1.msra.mxu1 %v8982_v47  ;;  %5890 = vmatprep.subr.mxu0 %v8987_v35  ;;  %10287 = vst [vmem:[#allocation40_spill] sm:$0xff] %v9018_v45  ;;  %10288 = vst [vmem:[#allocation41_spill] sm:$0xff] %v9023_v44  ;;  %v9030_v47 = vld [vmem:[%s10153_s8 + $0x230] sm:$0xff]  ;;  %v9035_v35 = vld [vmem:[%s10153_s8 + $0x878] sm:$0xff] }
 0x70b   :  { %5807 = vmatprep.subr.mxu1 %v8994_v51  ;;  %5891 = vmatpush1.msra.mxu0 %v8999_v50  ;;  %10289 = vst [vmem:[#allocation42_spill] sm:$0xff] %v9030_v47  ;;  %10290 = vst [vmem:[#allocation43_spill] sm:$0xff] %v9035_v35  ;;  %v9042_v51 = vld [vmem:[%s10153_s8 + $0x1f8] sm:$0xff]  ;;  %v9047_v50 = vld [vmem:[%s10153_s8 + $0x870] sm:$0xff] }
 0x70c   :  { %5808 = vmatpush1.msra.mxu1 %v9006_v63  ;;  %5892 = vmatprep.subr.mxu0 %v9011_v52  ;;  %10291 = vst [vmem:[#allocation44_spill] sm:$0xff] %v9042_v51  ;;  %10292 = vst [vmem:[#allocation45_spill] sm:$0xff] %v9047_v50  ;;  %v9054_v63 = vld [vmem:[%s10153_s8 + $0x1f0] sm:$0xff]  ;;  %v9059_v52 = vld [vmem:[%s10153_s8 + $0x838] sm:$0xff] }
 0x70d   :  { %5809 = vmatprep.subr.mxu1 %v9018_v45  ;;  %5893 = vmatpush1.msra.mxu0 %v9023_v44  ;;  %10293 = vst [vmem:[#allocation46_spill] sm:$0xff] %v9054_v63  ;;  %10294 = vst [vmem:[#allocation47_spill] sm:$0xff] %v9059_v52  ;;  %v9066_v45 = vld [vmem:[%s10153_s8 + $0x1b8] sm:$0xff]  ;;  %v9071_v44 = vld [vmem:[%s10153_s8 + $0x830] sm:$0xff] }
 0x70e   :  { %5810 = vmatpush1.msra.mxu1 %v9030_v47  ;;  %5894 = vmatprep.subr.mxu0 %v9035_v35  ;;  %10295 = vst [vmem:[#allocation48_spill] sm:$0xff] %v9066_v45  ;;  %10296 = vst [vmem:[#allocation49_spill] sm:$0xff] %v9071_v44  ;;  %v9078_v47 = vld [vmem:[%s10153_s8 + $0x1b0] sm:$0xff]  ;;  %v9087_v35 = vld [vmem:[%s10153_s8 + $0x178] sm:$0xff] }
 0x70f   :  { %5811 = vmatprep.subr.mxu1 %v9042_v51  ;;  %5895 = vmatpush1.msra.mxu0 %v9047_v50  ;;  %10297 = vst [vmem:[#allocation50_spill] sm:$0xff] %v9078_v47  ;;  %10298 = vst [vmem:[#allocation51_spill] sm:$0xff] %v9087_v35  ;;  %v9094_v50 = vld [vmem:[%s10153_s8 + $0x170] sm:$0xff]  ;;  %v9271_v51 = vld [vmem:[%s10153_s8 + $0x6f8] sm:$0xff] }
 0x710   :  { %5812 = vmatpush1.msra.mxu1 %v9054_v63  ;;  %5896 = vmatprep.subr.mxu0 %v9059_v52  ;;  %10299 = vst [vmem:[#allocation52_spill] sm:$0xff] %v9094_v50  ;;  %10318 = vst [vmem:[#allocation71_spill] sm:$0xff] %v9271_v51 }
 0x711   :  { %5813 = vmatprep.subr.mxu1 %v9066_v45  ;;  %5897 = vmatpush1.msra.mxu0 %v9071_v44  ;;  %v6727_v44 = vld [vmem:[%s10153_s8 + $0x3c8] sm:$0xff]  ;;  %v9104_v45 = vld [vmem:[%s10153_s8 + $0x138] sm:$0xff] }
 0x712   :  { %5930 = vmatprep.mubr.f32.mxu0 %v7449_v26  ;;  %5814 = vmatpush1.msra.mxu1 %v9078_v47  ;;  %10300 = vst [vmem:[#allocation53_spill] sm:$0xff] %v9104_v45  ;;  %v6728_v47 = vld [vmem:[%s10153_s8 + $0x3c0] sm:$0xff] }
 0x713   :  { %6680 = vmatmul.mubr.msk.f32.vlgmr.msra.gmra.mxu0 %vm5341_vm2, %v8156_v2  ;;  %5964 = vmatprep.subr.mxu0 %v6727_v44  ;;  %v9113_v2 = vld [vmem:[%s10153_s8 + $0x130] sm:$0xff]  ;;  %v6729_v44 = vld [vmem:[%s10153_s8 + $0x388] sm:$0xff] }
 0x714   :  { %5815 = vmatprep.subr.mxu1 %v9087_v35  ;;  %5965 = vmatpush1.msra.mxu0 %v6728_v47  ;;  %10301 = vst [vmem:[#allocation54_spill] sm:$0xff] %v9113_v2  ;;  %v9122_v35 = vld [vmem:[%s10153_s8 + $0xf8] sm:$0xff]  ;;  %v6730_v47 = vld [vmem:[%s10153_s8 + $0x380] sm:$0xff] }
 0x715   :  { %5816 = vmatpush1.msra.mxu1 %v9094_v50  ;;  %5966 = vmatprep.subr.mxu0 %v6729_v44  ;;  %10302 = vst [vmem:[#allocation55_spill] sm:$0xff] %v9122_v35  ;;  %v9131_v50 = vld [vmem:[%s10153_s8 + $0xf0] sm:$0xff]  ;;  %v6731_v44 = vld [vmem:[%s10153_s8 + $0x348] sm:$0xff] }
 0x716   :  { %5817 = vmatprep.subr.mxu1 %v9104_v45  ;;  %5967 = vmatpush1.msra.mxu0 %v6730_v47  ;;  %10303 = vst [vmem:[#allocation56_spill] sm:$0xff] %v9131_v50  ;;  %v9140_v45 = vld [vmem:[%s10153_s8 + $0xb8] sm:$0xff]  ;;  %v6732_v47 = vld [vmem:[%s10153_s8 + $0x340] sm:$0xff] }
 0x717   :  { %5818 = vmatpush1.msra.mxu1 %v9113_v2  ;;  %5968 = vmatprep.subr.mxu0 %v6731_v44  ;;  %10304 = vst [vmem:[#allocation57_spill] sm:$0xff] %v9140_v45  ;;  %v9149_v2 = vld [vmem:[%s10153_s8 + $0xb0] sm:$0xff]  ;;  %v6733_v44 = vld [vmem:[%s10153_s8 + $0x308] sm:$0xff] }
 0x718   :  { %5819 = vmatprep.subr.mxu1 %v9122_v35  ;;  %5969 = vmatpush1.msra.mxu0 %v6732_v47  ;;  %10305 = vst [vmem:[#allocation58_spill] sm:$0xff] %v9149_v2  ;;  %v9158_v35 = vld [vmem:[%s10153_s8 + $0x78] sm:$0xff]  ;;  %v6734_v47 = vld [vmem:[%s10153_s8 + $0x300] sm:$0xff] }
 0x719   :  { %5820 = vmatpush1.msra.mxu1 %v9131_v50  ;;  %5970 = vmatprep.subr.mxu0 %v6733_v44  ;;  %10306 = vst [vmem:[#allocation59_spill] sm:$0xff] %v9158_v35  ;;  %v9167_v50 = vld [vmem:[%s10153_s8 + $0x70] sm:$0xff]  ;;  %v6735_v44 = vld [vmem:[%s10153_s8 + $0x2c8] sm:$0xff] }
 0x71a   :  { %5821 = vmatprep.subr.mxu1 %v9140_v45  ;;  %5971 = vmatpush1.msra.mxu0 %v6734_v47  ;;  %10307 = vst [vmem:[#allocation60_spill] sm:$0xff] %v9167_v50  ;;  %v9169_v52 = vpop.permute.xlu1 %5952  ;;  %v9178_v45 = vld [vmem:[%s10153_s8 + $0x38] sm:$0xff]  ;;  %v6736_v47 = vld [vmem:[%s10153_s8 + $0x2c0] sm:$0xff] }
 0x71b   :  { %5822 = vmatpush1.msra.mxu1 %v9149_v2  ;;  %5972 = vmatprep.subr.mxu0 %v6735_v44  ;;  %10308 = vst [vmem:[#allocation61_spill] sm:$0xff] %v9178_v45  ;;  %v9187_v2 = vld [vmem:[%s10153_s8 + $0x30] sm:$0xff]  ;;  %v6737_v44 = vld [vmem:[%s10153_s8 + $0x288] sm:$0xff] }
 0x71c   :  { %5823 = vmatprep.subr.mxu1 %v9158_v35  ;;  %5973 = vmatpush1.msra.mxu0 %v6736_v47  ;;  %10309 = vst [vmem:[#allocation62_spill] sm:$0xff] %v9187_v2  ;;  %v9196_v35 = vld [vmem:[%s10153_s8 + $0x7f8] sm:$0xff]  ;;  %v6738_v47 = vld [vmem:[%s10153_s8 + $0x280] sm:$0xff] }
 0x71d   :  { %5824 = vmatpush1.msra.mxu1 %v9167_v50  ;;  %5974 = vmatprep.subr.mxu0 %v6737_v44  ;;  %10310 = vst [vmem:[#allocation63_spill] sm:$0xff] %v9196_v35  ;;  %v9205_v50 = vld [vmem:[%s10153_s8 + $0x7f0] sm:$0xff]  ;;  %v6739_v44 = vld [vmem:[%s10153_s8 + $0x248] sm:$0xff] }
 0x71e   :  { %5825 = vmatprep.subr.mxu1 %v9178_v45  ;;  %5975 = vmatpush1.msra.mxu0 %v6738_v47  ;;  %10311 = vst [vmem:[#allocation64_spill] sm:$0xff] %v9205_v50  ;;  %v9214_v45 = vld [vmem:[%s10153_s8 + $0x7b8] sm:$0xff]  ;;  %v6740_v47 = vld [vmem:[%s10153_s8 + $0x240] sm:$0xff] }
 0x71f   :  { %5826 = vmatpush1.msra.mxu1 %v9187_v2  ;;  %5976 = vmatprep.subr.mxu0 %v6739_v44  ;;  %10312 = vst [vmem:[#allocation65_spill] sm:$0xff] %v9214_v45  ;;  %v9223_v2 = vld [vmem:[%s10153_s8 + $0x7b0] sm:$0xff]  ;;  %v9225_v63 = vpop.permute.xlu1 %6716  ;;  %v6741_v44 = vld [vmem:[%s10153_s8 + $0x208] sm:$0xff] }
 0x720   :  { %5827 = vmatprep.subr.mxu1 %v9196_v35  ;;  %5977 = vmatpush1.msra.mxu0 %v6740_v47  ;;  %10313 = vst [vmem:[#allocation66_spill] sm:$0xff] %v9223_v2  ;;  %v9234_v35 = vld [vmem:[%s10153_s8 + $0x778] sm:$0xff]  ;;  %v6742_v47 = vld [vmem:[%s10153_s8 + $0x200] sm:$0xff] }
 0x721   :  { %5828 = vmatpush2.msra.mxu1 %v9205_v50  ;;  %5978 = vmatprep.subr.mxu0 %v6741_v44  ;;  %10314 = vst [vmem:[#allocation67_spill] sm:$0xff] %v9234_v35  ;;  %v9243_v50 = vld [vmem:[%s10153_s8 + $0x770] sm:$0xff]  ;;  %v6743_v44 = vld [vmem:[%s10153_s8 + $0x1c8] sm:$0xff] }
 0x722   :  { %5829 = vmatprep.subr.mxu1 %v9214_v45  ;;  %5979 = vmatpush1.msra.mxu0 %v6742_v47  ;;  %10315 = vst [vmem:[#allocation68_spill] sm:$0xff] %v9243_v50  ;;  %v9253_v45 = vld [vmem:[%s10153_s8 + $0x738] sm:$0xff]  ;;  %v6744_v47 = vld [vmem:[%s10153_s8 + $0x1c0] sm:$0xff] }
 0x723   :  { %5830 = vmatpush2.msra.mxu1 %v9223_v2  ;;  %5980 = vmatprep.subr.mxu0 %v6743_v44  ;;  %10316 = vst [vmem:[#allocation69_spill] sm:$0xff] %v9253_v45  ;;  %v9262_v2 = vld [vmem:[%s10153_s8 + $0x730] sm:$0xff]  ;;  %v6745_v44 = vld [vmem:[%s10153_s8 + $0x188] sm:$0xff] }
 0x724   :  { %5831 = vmatprep.subr.mxu1 %v9234_v35  ;;  %5981 = vmatpush1.msra.mxu0 %v6744_v47  ;;  %10317 = vst [vmem:[#allocation70_spill] sm:$0xff] %v9262_v2  ;;  %v6746_v47 = vld [vmem:[%s10153_s8 + $0x180] sm:$0xff] }
 0x725   :  { %5832 = vmatpush2.msra.mxu1 %v9243_v50  ;;  %5982 = vmatprep.subr.mxu0 %v6745_v44  ;;  %v9280_v50 = vld [vmem:[%s10153_s8 + $0x6f0] sm:$0xff]  ;;  %v6747_v44 = vld [vmem:[%s10153_s8 + $0x148] sm:$0xff] }
 0x726   :  { %5833 = vmatprep.subr.mxu1 %v9253_v45  ;;  %5983 = vmatpush1.msra.mxu0 %v6746_v47  ;;  %10319 = vst [vmem:[#allocation72_spill] sm:$0xff] %v9280_v50  ;;  %v10320_v45 = vunpack.i.l.bf16 %v9225_v63  ;;  %v9295_v47 = vld [vmem:[%s10153_s8 + $0x6b8] sm:$0xff] }
 0x727   :  { %5834 = vmatpush2.msra.mxu1 %v9262_v2  ;;  %5984 = vmatprep.subr.mxu0 %v6747_v44  ;;  %10321 = vst [vmem:[#allocation73_spill] sm:$0xff] %v9295_v47  ;;  %v6748_v2 = vld [vmem:[%s10153_s8 + $0x140] sm:$0xff]  ;;  %v9304_v44 = vld [vmem:[%s10153_s8 + $0x6b0] sm:$0xff] }
 0x728   :  { %v9290_v35 = vsel %vm5956_vm3, %v10320_v45, %v9169_v52  ;;  %5835 = vmatprep.subr.mxu1 %v9271_v51  ;;  %5985 = vmatpush1.msra.mxu0 %v6748_v2  ;;  %10322 = vst [vmem:[#allocation74_spill] sm:$0xff] %v9304_v44  ;;  %v6749_v45 = vld [vmem:[%s10153_s8 + $0x108] sm:$0xff]  ;;  %v9313_v51 = vld [vmem:[%s10153_s8 + $0x678] sm:$0xff]  ;;  %v9320_v2 = vld [vmem:[%s10153_s8 + $0x670] sm:$0xff] }
 0x729   :  { %5836 = vmatpush2.msra.mxu1 %v9280_v50  ;;  %5986 = vmatprep.subr.mxu0 %v6749_v45  ;;  %10323 = vst [vmem:[#allocation75_spill] sm:$0xff] %v9313_v51  ;;  %10324 = vst [vmem:[#allocation76_spill] sm:$0xff] %v9320_v2  ;;  %v6750_v50 = vld [vmem:[%s10153_s8 + $0x100] sm:$0xff]  ;;  %v9329_v45 = vld [vmem:[%s10153_s8 + $0x638] sm:$0xff] }
 0x72a   :  { %6028 = vmatprep.mubr.f32.mxu0 %v9290_v35  ;;  %5837 = vmatprep.subr.mxu1 %v9295_v47  ;;  %10325 = vst [vmem:[#allocation77_spill] sm:$0xff] %v9329_v45  ;;  %v6751_v47 = vld [vmem:[%s10153_s8 + $0xc8] sm:$0xff] }
 0x72b   :  { %5987 = vmatpush1.msra.mxu0 %v6750_v50  ;;  %5838 = vmatpush2.msra.mxu1 %v9304_v44  ;;  %v6752_v50 = vld [vmem:[%s10153_s8 + $0xc0] sm:$0xff]  ;;  %v9347_v44 = vld [vmem:[%s10153_s8 + $0x5f8] sm:$0xff] }
 0x72c   :  { %5988 = vmatprep.subr.mxu0 %v6751_v47  ;;  %5839 = vmatprep.subr.mxu1 %v9313_v51  ;;  %10327 = vst [vmem:[#allocation79_spill] sm:$0xff] %v9347_v44  ;;  %v6753_v47 = vld [vmem:[%s10153_s8 + $0x88] sm:$0xff]  ;;  %v9356_v51 = vld [vmem:[%s10153_s8 + $0x5f0] sm:$0xff] }
 0x72d   :  { %5989 = vmatpush1.msra.mxu0 %v6752_v50  ;;  %5840 = vmatpush2.msra.mxu1 %v9320_v2  ;;  %10328 = vst [vmem:[#allocation80_spill] sm:$0xff] %v9356_v51  ;;  %v6754_v50 = vld [vmem:[%s10153_s8 + $0x80] sm:$0xff]  ;;  %v9365_v2 = vld [vmem:[%s10153_s8 + $0x5b8] sm:$0xff] }
 0x72e   :  { %5990 = vmatprep.subr.mxu0 %v6753_v47  ;;  %5841 = vmatprep.subr.mxu1 %v9329_v45  ;;  %10329 = vst [vmem:[#allocation81_spill] sm:$0xff] %v9365_v2  ;;  %v6755_v47 = vld [vmem:[%s10153_s8 + $0x48] sm:$0xff]  ;;  %v9374_v45 = vld [vmem:[%s10153_s8 + $0x5b0] sm:$0xff] }
 0x72f   :  { %5991 = vmatpush1.msra.mxu0 %v6754_v50  ;;  %5842 = vmatpush2.msra.mxu1 %v9338_v41  ;;  %10330 = vst [vmem:[#allocation82_spill] sm:$0xff] %v9374_v45  ;;  %v6756_v50 = vld [vmem:[%s10153_s8 + $0x40] sm:$0xff]  ;;  %v9383_v41 = vld [vmem:[%s10153_s8 + $0x578] sm:$0xff] }
 0x730   :  { %5992 = vmatprep.subr.mxu0 %v6755_v47  ;;  %5843 = vmatprep.subr.mxu1 %v9347_v44  ;;  %10331 = vst [vmem:[#allocation83_spill] sm:$0xff] %v9383_v41  ;;  %v6757_v47 = vld [vmem:[%s10153_s8 + $0x8] sm:$0xff]  ;;  %v9392_v44 = vld [vmem:[%s10153_s8 + $0x570] sm:$0xff] }
 0x731   :  { %5993 = vmatpush1.msra.mxu0 %v6756_v50  ;;  %5844 = vmatpush2.msra.mxu1 %v9356_v51  ;;  %10332 = vst [vmem:[#allocation84_spill] sm:$0xff] %v9392_v44  ;;  %v6758_v50 = vld [vmem:[%s10153_s8] sm:$0xff]  ;;  %v9401_v51 = vld [vmem:[%s10153_s8 + $0x538] sm:$0xff] }
 0x732   :  { %5994 = vmatprep.subr.mxu0 %v6757_v47  ;;  %5845 = vmatprep.subr.mxu1 %v9365_v2  ;;  %10333 = vst [vmem:[#allocation85_spill] sm:$0xff] %v9401_v51  ;;  %v6759_v47 = vld [vmem:[%s10153_s8 + $0x7c8] sm:$0xff]  ;;  %v9410_v2 = vld [vmem:[%s10153_s8 + $0x530] sm:$0xff] }
 0x733   :  { %5995 = vmatpush1.msra.mxu0 %v6758_v50  ;;  %5846 = vmatpush2.msra.mxu1 %v9374_v45  ;;  %10334 = vst [vmem:[#allocation86_spill] sm:$0xff] %v9410_v2  ;;  %v6760_v50 = vld [vmem:[%s10153_s8 + $0x7c0] sm:$0xff]  ;;  %v9419_v45 = vld [vmem:[%s10153_s8 + $0x4f8] sm:$0xff] }
 0x734   :  { %5996 = vmatprep.subr.mxu0 %v6759_v47  ;;  %5847 = vmatprep.subr.mxu1 %v9383_v41  ;;  %10335 = vst [vmem:[#allocation87_spill] sm:$0xff] %v9419_v45  ;;  %v6761_v47 = vld [vmem:[%s10153_s8 + $0x788] sm:$0xff]  ;;  %v9428_v41 = vld [vmem:[%s10153_s8 + $0x4f0] sm:$0xff] }
 0x735   :  { %5997 = vmatpush2.msra.mxu0 %v6760_v50  ;;  %5848 = vmatpush2.msra.mxu1 %v9392_v44  ;;  %10336 = vst [vmem:[#allocation88_spill] sm:$0xff] %v9428_v41  ;;  %v6762_v50 = vld [vmem:[%s10153_s8 + $0x780] sm:$0xff]  ;;  %v9437_v44 = vld [vmem:[%s10153_s8 + $0x4b8] sm:$0xff] }
 0x736   :  { %5998 = vmatprep.subr.mxu0 %v6761_v47  ;;  %5849 = vmatprep.subr.mxu1 %v9401_v51  ;;  %10337 = vst [vmem:[#allocation89_spill] sm:$0xff] %v9437_v44  ;;  %v6763_v47 = vld [vmem:[%s10153_s8 + $0x748] sm:$0xff]  ;;  %v9446_v51 = vld [vmem:[%s10153_s8 + $0x4b0] sm:$0xff] }
 0x737   :  { %5999 = vmatpush2.msra.mxu0 %v6762_v50  ;;  %5850 = vmatpush2.msra.mxu1 %v9410_v2  ;;  %10338 = vst [vmem:[#allocation90_spill] sm:$0xff] %v9446_v51  ;;  %v6764_v50 = vld [vmem:[%s10153_s8 + $0x740] sm:$0xff]  ;;  %v9455_v2 = vld [vmem:[%s10153_s8 + $0x478] sm:$0xff] }
 0x738   :  { %6000 = vmatprep.subr.mxu0 %v6763_v47  ;;  %5851 = vmatprep.subr.mxu1 %v9419_v45  ;;  %10339 = vst [vmem:[#allocation91_spill] sm:$0xff] %v9455_v2  ;;  %v6765_v47 = vld [vmem:[%s10153_s8 + $0x708] sm:$0xff]  ;;  %v9464_v45 = vld [vmem:[%s10153_s8 + $0x470] sm:$0xff] }
 0x739   :  { %6001 = vmatpush2.msra.mxu0 %v6764_v50  ;;  %5852 = vmatpush2.msra.mxu1 %v9428_v41  ;;  %10340 = vst [vmem:[#allocation92_spill] sm:$0xff] %v9464_v45  ;;  %v6766_v50 = vld [vmem:[%s10153_s8 + $0x700] sm:$0xff]  ;;  %v9473_v41 = vld [vmem:[%s10153_s8 + $0x438] sm:$0xff] }
 0x73a   :  { %6002 = vmatprep.subr.mxu0 %v6765_v47  ;;  %5853 = vmatprep.subr.mxu1 %v9437_v44  ;;  %10341 = vst [vmem:[#allocation93_spill] sm:$0xff] %v9473_v41  ;;  %v6767_v47 = vld [vmem:[%s10153_s8 + $0x6c8] sm:$0xff]  ;;  %v9482_v44 = vld [vmem:[%s10153_s8 + $0x430] sm:$0xff] }
 0x73b   :  { %6003 = vmatpush2.msra.mxu0 %v6766_v50  ;;  %5854 = vmatpush2.msra.mxu1 %v9446_v51  ;;  %10342 = vst [vmem:[#allocation94_spill] sm:$0xff] %v9482_v44  ;;  %v6768_v50 = vld [vmem:[%s10153_s8 + $0x6c0] sm:$0xff]  ;;  %v6769_v51 = vld [vmem:[%s10153_s8 + $0x688] sm:$0xff] }
 0x73c   :  { %6004 = vmatprep.subr.mxu0 %v6767_v47  ;;  %5855 = vmatprep.subr.mxu1 %v9455_v2  ;;  %v6770_v47 = vld [vmem:[%s10153_s8 + $0x680] sm:$0xff]  ;;  %v6850_v2 = vld [vmem:[%s10153_s8 + $0x150] sm:$0xff] }
 0x73d   :  { %6005 = vmatpush2.msra.mxu0 %v6768_v50  ;;  %5856 = vmatpush2.msra.mxu1 %v9464_v45  ;;  %v6771_v50 = vld [vmem:[%s10153_s8 + $0x648] sm:$0xff] }
 0x73e   :  { %6006 = vmatprep.subr.mxu0 %v6769_v51  ;;  %5857 = vmatprep.subr.mxu1 %v9473_v41  ;;  %v6772_v51 = vld [vmem:[%s10153_s8 + $0x640] sm:$0xff]  ;;  %v6773_v41 = vld [vmem:[%s10153_s8 + $0xa08] sm:$0xf] }
 0x73f   :  { %6007 = vmatpush2.msra.mxu0 %v6770_v47  ;;  %5858 = vmatpush2.msra.mxu1 %v9482_v44  ;;  %v6774_v47 = vld [vmem:[%s10153_s8 + $0x608] sm:$0xff]  ;;  %v6719_v44 = vunpack.i.h.bf16 %v9225_v63 }
 0x740   :  { %6008 = vmatprep.subr.mxu0 %v6771_v50  ;;  %5860 = vmatmul.mubr.f32.vlgmr.msra.gmra.mxu1 %v8159_v18  ;;  %v6775_v18 = vld [vmem:[%s10153_s8 + $0xa00] sm:$0xf]  ;;  %v6806_v45 = vld [vmem:[%s10153_s8 + $0x408] sm:$0xff] }
 0x741   :  { %6009 = vmatpush2.msra.mxu0 %v6772_v51  ;;  %6681 = vmatprep.subr.msk.mxu1 %vm2474_vm9, %v6773_v41  ;;  %v6776_v50 = vld [vmem:[%s10153_s8 + $0x600] sm:$0xff]  ;;  %v6777_v41 = vld [vmem:[%s10153_s8 + $0x9c8] sm:$0xff] }
 0x742   :  { %6010 = vmatprep.subr.mxu0 %v6774_v47  ;;  %6682 = vmatpush1.msk.msra.mxu1 %vm2474_vm9, %v6775_v18  ;;  %v6778_v51 = vld [vmem:[%s10153_s8 + $0x5c8] sm:$0xff]  ;;  %v6779_v47 = vld [vmem:[%s10153_s8 + $0x9c0] sm:$0xff] }
 0x743   :  { %6011 = vmatpush2.msra.mxu0 %v6776_v50  ;;  %6051 = vmatprep.subr.mxu1 %v6777_v41  ;;  %v6780_v18 = vld [vmem:[%s10153_s8 + $0x5c0] sm:$0xff]  ;;  %v6781_v50 = vld [vmem:[%s10153_s8 + $0x988] sm:$0xff] }
 0x744   :  { %6012 = vmatprep.subr.mxu0 %v6778_v51  ;;  %6052 = vmatpush1.msra.mxu1 %v6779_v47  ;;  %v6782_v41 = vld [vmem:[%s10153_s8 + $0x588] sm:$0xff]  ;;  %v6783_v51 = vld [vmem:[%s10153_s8 + $0x980] sm:$0xff] }
 0x745   :  { %6013 = vmatpush2.msra.mxu0 %v6780_v18  ;;  %6053 = vmatprep.subr.mxu1 %v6781_v50  ;;  %v6784_v47 = vld [vmem:[%s10153_s8 + $0x580] sm:$0xff]  ;;  %v6785_v18 = vld [vmem:[%s10153_s8 + $0x948] sm:$0xff] }
 0x746   :  { %6014 = vmatprep.subr.mxu0 %v6782_v41  ;;  %6054 = vmatpush1.msra.mxu1 %v6783_v51  ;;  %v6786_v50 = vld [vmem:[%s10153_s8 + $0x548] sm:$0xff]  ;;  %v6787_v41 = vld [vmem:[%s10153_s8 + $0x940] sm:$0xff] }
 0x747   :  { %6015 = vmatpush2.msra.mxu0 %v6784_v47  ;;  %6055 = vmatprep.subr.mxu1 %v6785_v18  ;;  %v6788_v51 = vld [vmem:[%s10153_s8 + $0x540] sm:$0xff]  ;;  %v6789_v47 = vld [vmem:[%s10153_s8 + $0x908] sm:$0xff] }
 0x748   :  { %6016 = vmatprep.subr.mxu0 %v6786_v50  ;;  %6056 = vmatpush1.msra.mxu1 %v6787_v41  ;;  %v6790_v18 = vld [vmem:[%s10153_s8 + $0x508] sm:$0xff]  ;;  %v6791_v50 = vld [vmem:[%s10153_s8 + $0x900] sm:$0xff] }
 0x749   :  { %6017 = vmatpush2.msra.mxu0 %v6788_v51  ;;  %6057 = vmatprep.subr.mxu1 %v6789_v47  ;;  %v6792_v41 = vld [vmem:[%s10153_s8 + $0x500] sm:$0xff]  ;;  %v6793_v51 = vld [vmem:[%s10153_s8 + $0x8c8] sm:$0xff] }
 0x74a   :  { %6018 = vmatprep.subr.mxu0 %v6790_v18  ;;  %6058 = vmatpush1.msra.mxu1 %v6791_v50  ;;  %v6794_v47 = vld [vmem:[%s10153_s8 + $0x4c8] sm:$0xff]  ;;  %v6795_v18 = vld [vmem:[%s10153_s8 + $0x8c0] sm:$0xff] }
 0x74b   :  { %6019 = vmatpush2.msra.mxu0 %v6792_v41  ;;  %6059 = vmatprep.subr.mxu1 %v6793_v51  ;;  %v6796_v50 = vld [vmem:[%s10153_s8 + $0x4c0] sm:$0xff]  ;;  %v6797_v41 = vld [vmem:[%s10153_s8 + $0x888] sm:$0xff] }
 0x74c   :  { %6020 = vmatprep.subr.mxu0 %v6794_v47  ;;  %6060 = vmatpush1.msra.mxu1 %v6795_v18  ;;  %v6798_v51 = vld [vmem:[%s10153_s8 + $0x488] sm:$0xff]  ;;  %v6799_v47 = vld [vmem:[%s10153_s8 + $0x880] sm:$0xff] }
 0x74d   :  { %6021 = vmatpush2.msra.mxu0 %v6796_v50  ;;  %6061 = vmatprep.subr.mxu1 %v6797_v41  ;;  %v6800_v18 = vld [vmem:[%s10153_s8 + $0x480] sm:$0xff]  ;;  %v6801_v50 = vld [vmem:[%s10153_s8 + $0x848] sm:$0xff]  ;;  %v5955_v41 = vpop.permute.xlu0 %5954 }
 0x74e   :  { %6022 = vmatprep.subr.mxu0 %v6798_v51  ;;  %6062 = vmatpush1.msra.mxu1 %v6799_v47  ;;  %v6802_v51 = vld [vmem:[%s10153_s8 + $0x448] sm:$0xff]  ;;  %v6803_v47 = vld [vmem:[%s10153_s8 + $0x840] sm:$0xff] }
 0x74f   :  { %6023 = vmatpush2.msra.mxu0 %v6800_v18  ;;  %6063 = vmatprep.subr.mxu1 %v6801_v50  ;;  %v6804_v18 = vld [vmem:[%s10153_s8 + $0x440] sm:$0xff]  ;;  %v6805_v50 = vld [vmem:[%s10153_s8 + $0x808] sm:$0xff] }
 0x750   :  { %6024 = vmatprep.subr.mxu0 %v6802_v51  ;;  %6064 = vmatpush1.msra.mxu1 %v6803_v47  ;;  %v6807_v51 = vld [vmem:[%s10153_s8 + $0x800] sm:$0xff]  ;;  %v9613_v47 = vsel %vm5956_vm3, %v9169_v52, %v5955_v41  ;;  %v6810_v41 = vld [vmem:[%s10153_s8 + $0x3d0] sm:$0xff] }
 0x751   :  { %6025 = vmatpush2.msra.mxu0 %v6804_v18  ;;  %6065 = vmatprep.subr.mxu1 %v6805_v50  ;;  %10343 = vst [vmem:[#allocation95_spill] sm:$0xff] %v9613_v47  ;;  %v6808_v18 = vld [vmem:[%s10153_s8 + $0x400] sm:$0xff]  ;;  %v10344_v50 = vunpack.i.l.bf16 %v9225_v63  ;;  %v6812_v63 = vld [vmem:[%s10153_s8 + $0x398] sm:$0xff] }
 0x752   :  { %6026 = vmatprep.subr.mxu0 %v6806_v45  ;;  %6066 = vmatpush1.msra.mxu1 %v6807_v51  ;;  %v6809_v45 = vld [vmem:[%s10153_s8 + $0x3d8] sm:$0xff] }
 0x753   :  { %6099 = vmatprep.mubr.f32.mxu1 %v7449_v26  ;;  %6027 = vmatpush2.msra.mxu0 %v6808_v18  ;;  %v9627_v52 = vsel %vm5956_vm3, %v6719_v44, %v10344_v50  ;;  %v6811_v51 = vld [vmem:[%s10153_s8 + $0xa18] sm:$0xf]  ;;  %v6813_v44 = vld [vmem:[%s10153_s8 + $0xa10] sm:$0xf] }
 0x754   :  { %6683 = vmatmul.mubr.msk.f32.vlgmr.msra.gmra.mxu1 %vm5341_vm2, %v9613_v47  ;;  %6106 = vmatprep.subr.mxu1 %v6809_v45  ;;  %v6814_v18 = vld [vmem:[%s10153_s8 + $0x390] sm:$0xff]  ;;  %v6815_v45 = vld [vmem:[%s10153_s8 + $0x9d8] sm:$0xff] }
 0x755   :  { %6029 = vmatmul.mubr.f32.vlgmr.msra.gmra.mxu0 %v9627_v52  ;;  %6107 = vmatpush1.msra.mxu1 %v6810_v41  ;;  %v6816_v50 = vld [vmem:[%s10153_s8 + $0x358] sm:$0xff]  ;;  %v6817_v41 = vld [vmem:[%s10153_s8 + $0x9d0] sm:$0xff] }
 0x756   :  { %6170 = vmatprep.mubr.f32.mxu1 %v9290_v35  ;;  %6684 = vmatprep.subr.msk.mxu0 %vm2474_vm9, %v6811_v51  ;;  %v6818_v51 = vld [vmem:[%s10153_s8 + $0x350] sm:$0xff] }
 0x757   :  { %6108 = vmatprep.subr.mxu1 %v6812_v63  ;;  %6685 = vmatpush1.msk.msra.mxu0 %vm2474_vm9, %v6813_v44  ;;  %v6819_v63 = vld [vmem:[%s10153_s8 + $0x998] sm:$0xff] }
 0x758   :  { %6109 = vmatpush1.msra.mxu1 %v6814_v18  ;;  %6193 = vmatprep.subr.mxu0 %v6815_v45  ;;  %v6820_v44 = vld [vmem:[%s10153_s8 + $0x318] sm:$0xff]  ;;  %v6821_v18 = vld [vmem:[%s10153_s8 + $0x990] sm:$0xff] }
 0x759   :  { %6110 = vmatprep.subr.mxu1 %v6816_v50  ;;  %6194 = vmatpush1.msra.mxu0 %v6817_v41  ;;  %v6822_v45 = vld [vmem:[%s10153_s8 + $0x310] sm:$0xff]  ;;  %v6823_v50 = vld [vmem:[%s10153_s8 + $0x958] sm:$0xff] }
 0x75a   :  { %6111 = vmatpush1.msra.mxu1 %v6818_v51  ;;  %6195 = vmatprep.subr.mxu0 %v6819_v63  ;;  %v6824_v41 = vld [vmem:[%s10153_s8 + $0x2d8] sm:$0xff]  ;;  %v6825_v51 = vld [vmem:[%s10153_s8 + $0x950] sm:$0xff] }
 0x75b   :  { %6112 = vmatprep.subr.mxu1 %v6820_v44  ;;  %6196 = vmatpush1.msra.mxu0 %v6821_v18  ;;  %v6826_v63 = vld [vmem:[%s10153_s8 + $0x2d0] sm:$0xff]  ;;  %v6827_v44 = vld [vmem:[%s10153_s8 + $0x918] sm:$0xff] }
 0x75c   :  { %6113 = vmatpush1.msra.mxu1 %v6822_v45  ;;  %6197 = vmatprep.subr.mxu0 %v6823_v50  ;;  %v6828_v18 = vld [vmem:[%s10153_s8 + $0x298] sm:$0xff]  ;;  %v6829_v45 = vld [vmem:[%s10153_s8 + $0x910] sm:$0xff] }
 0x75d   :  { %6114 = vmatprep.subr.mxu1 %v6824_v41  ;;  %6198 = vmatpush1.msra.mxu0 %v6825_v51  ;;  %v6830_v50 = vld [vmem:[%s10153_s8 + $0x290] sm:$0xff]  ;;  %v6831_v41 = vld [vmem:[%s10153_s8 + $0x8d8] sm:$0xff] }
 0x75e   :  { %6115 = vmatpush1.msra.mxu1 %v6826_v63  ;;  %6199 = vmatprep.subr.mxu0 %v6827_v44  ;;  %v6832_v51 = vld [vmem:[%s10153_s8 + $0x258] sm:$0xff]  ;;  %v6833_v63 = vld [vmem:[%s10153_s8 + $0x8d0] sm:$0xff] }
 0x75f   :  { %6116 = vmatprep.subr.mxu1 %v6828_v18  ;;  %6200 = vmatpush1.msra.mxu0 %v6829_v45  ;;  %v6834_v44 = vld [vmem:[%s10153_s8 + $0x250] sm:$0xff]  ;;  %v6835_v18 = vld [vmem:[%s10153_s8 + $0x898] sm:$0xff] }
 0x760   :  { %6117 = vmatpush1.msra.mxu1 %v6830_v50  ;;  %6201 = vmatprep.subr.mxu0 %v6831_v41  ;;  %v6836_v45 = vld [vmem:[%s10153_s8 + $0x218] sm:$0xff]  ;;  %v6837_v50 = vld [vmem:[%s10153_s8 + $0x890] sm:$0xff] }
 0x761   :  { %6118 = vmatprep.subr.mxu1 %v6832_v51  ;;  %6202 = vmatpush1.msra.mxu0 %v6833_v63  ;;  %v6838_v41 = vld [vmem:[%s10153_s8 + $0x210] sm:$0xff]  ;;  %v6839_v51 = vld [vmem:[%s10153_s8 + $0x858] sm:$0xff] }
 0x762   :  { %6119 = vmatpush1.msra.mxu1 %v6834_v44  ;;  %6203 = vmatprep.subr.mxu0 %v6835_v18  ;;  %v6840_v63 = vld [vmem:[%s10153_s8 + $0x1d8] sm:$0xff]  ;;  %v6841_v44 = vld [vmem:[%s10153_s8 + $0x850] sm:$0xff] }
 0x763   :  { %6120 = vmatprep.subr.mxu1 %v6836_v45  ;;  %6204 = vmatpush1.msra.mxu0 %v6837_v50  ;;  %v6842_v18 = vld [vmem:[%s10153_s8 + $0x1d0] sm:$0xff]  ;;  %v6843_v45 = vld [vmem:[%s10153_s8 + $0x818] sm:$0xff] }
 0x764   :  { %6121 = vmatpush1.msra.mxu1 %v6838_v41  ;;  %6205 = vmatprep.subr.mxu0 %v6839_v51  ;;  %v6844_v50 = vld [vmem:[%s10153_s8 + $0x198] sm:$0xff]  ;;  %v6845_v41 = vld [vmem:[%s10153_s8 + $0x810] sm:$0xff] }
 0x765   :  { %6122 = vmatprep.subr.mxu1 %v6840_v63  ;;  %6206 = vmatpush1.msra.mxu0 %v6841_v44  ;;  %v6846_v63 = vld [vmem:[%s10153_s8 + $0x190] sm:$0xff]  ;;  %v6847_v44 = vld [vmem:[%s10153_s8 + $0x3e8] sm:$0xff] }
 0x766   :  { %6123 = vmatpush1.msra.mxu1 %v6842_v18  ;;  %6207 = vmatprep.subr.mxu0 %v6843_v45 }
 0x767   :  { %6124 = vmatprep.subr.mxu1 %v6844_v50  ;;  %6208 = vmatpush1.msra.mxu0 %v6845_v41  ;;  %v5506_v51 = vpop.f32.mrf.mxu1  ;;  %v6848_v50 = vld [vmem:[%s10153_s8 + $0x158] sm:$0xff]  ;;  %v6849_v41 = vld [vmem:[%s10153_s8 + $0x3e0] sm:$0xff] }
 0x768   :  { %6241 = vmatprep.mubr.f32.mxu0 %v7449_v26  ;;  %6125 = vmatpush1.msra.mxu1 %v6846_v63 }
 0x769   :  { %6686 = vmatmul.mubr.msk.f32.vlgmr.msra.gmra.mxu0 %vm5341_vm2, %v9613_v47  ;;  %6248 = vmatprep.subr.mxu0 %v6847_v44  ;;  %v5435_v18 = vpop.f32.mrf.mxu0  ;;  %v5508_v45 = vpop.f32.mrf.mxu1  ;;  %v6851_v47 = vld [vmem:[%s10153_s8 + $0x3a8] sm:$0xff] }
 0x76a   :  { %6126 = vmatprep.subr.mxu1 %v6848_v50  ;;  %6249 = vmatpush1.msra.mxu0 %v6849_v41  ;;  %v5507_v63 = vadd.f32 %v5506_v51, %v5435_v18  ;;  %v6852_v50 = vld [vmem:[%s10153_s8 + $0x118] sm:$0xff]  ;;  %v6854_v18 = vld [vmem:[%s10153_s8 + $0x110] sm:$0xff] }
 0x76b   :  { %6312 = vmatprep.mubr.f32.mxu0 %v9290_v35  ;;  %6127 = vmatpush1.msra.mxu1 %v6850_v2  ;;  %v5437_v44 = vpop.f32.mrf.mxu0  ;;  %v6853_v2 = vld [vmem:[%s10153_s8 + $0x3a0] sm:$0xff]  ;;  %v6856_v41 = vld [vmem:[%s10153_s8 + $0xd8] sm:$0xff] }
 0x76c   :  { %6250 = vmatprep.subr.mxu0 %v6851_v47  ;;  %6128 = vmatprep.subr.mxu1 %v6852_v50  ;;  %5937 = vst [vmem:[%s10155_s9] sm:$0xff] %v5507_v63  ;;  %v5509_v51 = vadd.f32 %v5508_v45, %v5437_v44  ;;  %v6855_v47 = vld [vmem:[%s10153_s8 + $0x368] sm:$0xff]  ;;  %v6857_v45 = vld [vmem:[%s10153_s8 + $0x360] sm:$0xff]  ;;  %v6858_v63 = vld [vmem:[%s10153_s8 + $0xd0] sm:$0xff] }
 0x76d   :  { %6251 = vmatpush1.msra.mxu0 %v6853_v2  ;;  %6129 = vmatpush1.msra.mxu1 %v6854_v18  ;;  %v6859_v44 = vld [vmem:[%s10153_s8 + $0x328] sm:$0xff]  ;;  %v6860_v50 = vld [vmem:[%s10153_s8 + $0x98] sm:$0xff]  ;;  %v6862_v2 = vld [vmem:[%s10153_s8 + $0x90] sm:$0xff] }
 0x76e   :  { %6252 = vmatprep.subr.mxu0 %v6855_v47  ;;  %6130 = vmatprep.subr.mxu1 %v6856_v41  ;;  %5938 = vst [vmem:[%s10155_s9 + $0x8] sm:$0xff] %v5509_v51  ;;  %v6861_v51 = vld [vmem:[%s10153_s8 + $0x320] sm:$0xff]  ;;  %v6863_v18 = vld [vmem:[%s10153_s8 + $0x2e8] sm:$0xff]  ;;  %v6864_v47 = vld [vmem:[%s10153_s8 + $0x58] sm:$0xff] }
 0x76f   :  { %6253 = vmatpush1.msra.mxu0 %v6857_v45  ;;  %6131 = vmatpush1.msra.mxu1 %v6858_v63  ;;  %v6865_v41 = vld [vmem:[%s10153_s8 + $0x2e0] sm:$0xff]  ;;  %v6866_v45 = vld [vmem:[%s10153_s8 + $0x50] sm:$0xff]  ;;  %v6867_v63 = vld [vmem:[%s10153_s8 + $0x2a8] sm:$0xff] }
 0x770   :  { %6254 = vmatprep.subr.mxu0 %v6859_v44  ;;  %6132 = vmatprep.subr.mxu1 %v6860_v50  ;;  %v6868_v44 = vld [vmem:[%s10153_s8 + $0x18] sm:$0xff]  ;;  %v6869_v50 = vld [vmem:[%s10153_s8 + $0x2a0] sm:$0xff] }
 0x771   :  { %6255 = vmatpush1.msra.mxu0 %v6861_v51  ;;  %6133 = vmatpush1.msra.mxu1 %v6862_v2  ;;  %v6870_v51 = vld [vmem:[%s10153_s8 + $0x10] sm:$0xff]  ;;  %v6871_v2 = vld [vmem:[%s10153_s8 + $0x268] sm:$0xff] }
 0x772   :  { %6256 = vmatprep.subr.mxu0 %v6863_v18  ;;  %6134 = vmatprep.subr.mxu1 %v6864_v47  ;;  %v6872_v18 = vld [vmem:[%s10153_s8 + $0x7d8] sm:$0xff]  ;;  %v6873_v47 = vld [vmem:[%s10153_s8 + $0x260] sm:$0xff] }
 0x773   :  { %6257 = vmatpush1.msra.mxu0 %v6865_v41  ;;  %6135 = vmatpush1.msra.mxu1 %v6866_v45  ;;  %v6874_v41 = vld [vmem:[%s10153_s8 + $0x7d0] sm:$0xff]  ;;  %v6875_v45 = vld [vmem:[%s10153_s8 + $0x228] sm:$0xff] }
 0x774   :  { %6258 = vmatprep.subr.mxu0 %v6867_v63  ;;  %6136 = vmatprep.subr.mxu1 %v6868_v44  ;;  %v6876_v63 = vld [vmem:[%s10153_s8 + $0x798] sm:$0xff]  ;;  %v6877_v44 = vld [vmem:[%s10153_s8 + $0x220] sm:$0xff] }
 0x775   :  { %6259 = vmatpush1.msra.mxu0 %v6869_v50  ;;  %6137 = vmatpush1.msra.mxu1 %v6870_v51  ;;  %v6878_v50 = vld [vmem:[%s10153_s8 + $0x790] sm:$0xff]  ;;  %v6879_v51 = vld [vmem:[%s10153_s8 + $0x1e8] sm:$0xff] }
 0x776   :  { %6260 = vmatprep.subr.mxu0 %v6871_v2  ;;  %6138 = vmatprep.subr.mxu1 %v6872_v18  ;;  %v6880_v2 = vld [vmem:[%s10153_s8 + $0x758] sm:$0xff]  ;;  %v6881_v18 = vld [vmem:[%s10153_s8 + $0x1e0] sm:$0xff] }
 0x777   :  { %6261 = vmatpush1.msra.mxu0 %v6873_v47  ;;  %6139 = vmatpush2.msra.mxu1 %v6874_v41  ;;  %v6882_v47 = vld [vmem:[%s10153_s8 + $0x750] sm:$0xff]  ;;  %v6883_v41 = vld [vmem:[%s10153_s8 + $0x1a8] sm:$0xff] }
 0x778   :  { %6262 = vmatprep.subr.mxu0 %v6875_v45  ;;  %6140 = vmatprep.subr.mxu1 %v6876_v63  ;;  %v6884_v45 = vld [vmem:[%s10153_s8 + $0x718] sm:$0xff]  ;;  %v6885_v63 = vld [vmem:[%s10153_s8 + $0x1a0] sm:$0xff] }
 0x779   :  { %6263 = vmatpush1.msra.mxu0 %v6877_v44  ;;  %6141 = vmatpush2.msra.mxu1 %v6878_v50  ;;  %v6886_v44 = vld [vmem:[%s10153_s8 + $0x710] sm:$0xff]  ;;  %v6887_v50 = vld [vmem:[%s10153_s8 + $0x168] sm:$0xff] }
 0x77a   :  { %6264 = vmatprep.subr.mxu0 %v6879_v51  ;;  %6142 = vmatprep.subr.mxu1 %v6880_v2  ;;  %v6888_v51 = vld [vmem:[%s10153_s8 + $0x6d8] sm:$0xff]  ;;  %v6889_v2 = vld [vmem:[%s10153_s8 + $0x160] sm:$0xff] }
 0x77b   :  { %6265 = vmatpush1.msra.mxu0 %v6881_v18  ;;  %6143 = vmatpush2.msra.mxu1 %v6882_v47  ;;  %v6890_v18 = vld [vmem:[%s10153_s8 + $0x6d0] sm:$0xff]  ;;  %v6891_v47 = vld [vmem:[%s10153_s8 + $0x128] sm:$0xff] }
 0x77c   :  { %6266 = vmatprep.subr.mxu0 %v6883_v41  ;;  %6144 = vmatprep.subr.mxu1 %v6884_v45  ;;  %v6892_v41 = vld [vmem:[%s10153_s8 + $0x698] sm:$0xff]  ;;  %v6893_v45 = vld [vmem:[%s10153_s8 + $0x120] sm:$0xff] }
 0x77d   :  { %6267 = vmatpush1.msra.mxu0 %v6885_v63  ;;  %6145 = vmatpush2.msra.mxu1 %v6886_v44  ;;  %v6894_v63 = vld [vmem:[%s10153_s8 + $0x690] sm:$0xff]  ;;  %v6895_v44 = vld [vmem:[%s10153_s8 + $0xe8] sm:$0xff] }
 0x77e   :  { %6268 = vmatprep.subr.mxu0 %v6887_v50  ;;  %6146 = vmatprep.subr.mxu1 %v6888_v51  ;;  %v6896_v50 = vld [vmem:[%s10153_s8 + $0x658] sm:$0xff]  ;;  %v6897_v51 = vld [vmem:[%s10153_s8 + $0xe0] sm:$0xff] }
 0x77f   :  { %6269 = vmatpush1.msra.mxu0 %v6889_v2  ;;  %6147 = vmatpush2.msra.mxu1 %v6890_v18  ;;  %v6898_v2 = vld [vmem:[%s10153_s8 + $0x650] sm:$0xff]  ;;  %v6899_v18 = vld [vmem:[%s10153_s8 + $0xa8] sm:$0xff] }
 0x780   :  { %6270 = vmatprep.subr.mxu0 %v6891_v47  ;;  %6148 = vmatprep.subr.mxu1 %v6892_v41  ;;  %v6900_v47 = vld [vmem:[%s10153_s8 + $0x618] sm:$0xff]  ;;  %v6901_v41 = vld [vmem:[%s10153_s8 + $0xa0] sm:$0xff] }
 0x781   :  { %6271 = vmatpush1.msra.mxu0 %v6893_v45  ;;  %6149 = vmatpush2.msra.mxu1 %v6894_v63  ;;  %v6902_v45 = vld [vmem:[%s10153_s8 + $0x610] sm:$0xff]  ;;  %v6903_v63 = vld [vmem:[%s10153_s8 + $0x68] sm:$0xff] }
 0x782   :  { %6272 = vmatprep.subr.mxu0 %v6895_v44  ;;  %6150 = vmatprep.subr.mxu1 %v6896_v50  ;;  %v6904_v44 = vld [vmem:[%s10153_s8 + $0x5d8] sm:$0xff]  ;;  %v6905_v50 = vld [vmem:[%s10153_s8 + $0x60] sm:$0xff] }
 0x783   :  { %6273 = vmatpush1.msra.mxu0 %v6897_v51  ;;  %6151 = vmatpush2.msra.mxu1 %v6898_v2  ;;  %v6906_v51 = vld [vmem:[%s10153_s8 + $0x5d0] sm:$0xff]  ;;  %v6907_v2 = vld [vmem:[%s10153_s8 + $0x28] sm:$0xff] }
 0x784   :  { %6274 = vmatprep.subr.mxu0 %v6899_v18  ;;  %6152 = vmatprep.subr.mxu1 %v6900_v47  ;;  %v6908_v18 = vld [vmem:[%s10153_s8 + $0x598] sm:$0xff]  ;;  %v6909_v47 = vld [vmem:[%s10153_s8 + $0x20] sm:$0xff] }
 0x785   :  { %6275 = vmatpush1.msra.mxu0 %v6901_v41  ;;  %6153 = vmatpush2.msra.mxu1 %v6902_v45  ;;  %v6910_v41 = vld [vmem:[%s10153_s8 + $0x590] sm:$0xff]  ;;  %v10392_v45 = vld [vmem:[#allocation49_spill] sm:$0xff] }
 0x786   :  { %6276 = vmatprep.subr.mxu0 %v6903_v63  ;;  %6154 = vmatprep.subr.mxu1 %v6904_v44  ;;  %v10393_v63 = vld [vmem:[#allocation50_spill] sm:$0xff] }
 0x787   :  { %6277 = vmatpush1.msra.mxu0 %v6905_v50  ;;  %6155 = vmatpush2.msra.mxu1 %v6906_v51  ;;  %v10394_v50 = vld [vmem:[#allocation51_spill] sm:$0xff] }
 0x788   :  { %6278 = vmatprep.subr.mxu0 %v6907_v2  ;;  %6156 = vmatprep.subr.mxu1 %v6908_v18  ;;  %v10395_v2 = vld [vmem:[#allocation52_spill] sm:$0xff] }
 0x789   :  { %6279 = vmatpush1.msra.mxu0 %v6909_v47  ;;  %6157 = vmatpush2.msra.mxu1 %v6910_v41  ;;  %v10396_v41 = vld [vmem:[#allocation53_spill] sm:$0xff] }
 0x78a   :  { %6280 = vmatprep.subr.mxu0 %v8478_v46  ;;  %6158 = vmatprep.subr.mxu1 %v8483_v54  ;;  %v10345_v46 = vld [vmem:[#allocation3_spill] sm:$0xff]  ;;  %v10346_v54 = vld [vmem:[#allocation4_spill] sm:$0xff] }
 0x78b   :  { %6281 = vmatpush2.msra.mxu0 %v8488_v57  ;;  %6159 = vmatpush2.msra.mxu1 %v8493_v53  ;;  %v10347_v57 = vld [vmem:[#allocation5_spill] sm:$0xff]  ;;  %v10348_v53 = vld [vmem:[#allocation6_spill] sm:$0xff] }
 0x78c   :  { %6282 = vmatprep.subr.mxu0 %v8498_v14  ;;  %6160 = vmatprep.subr.mxu1 %v8503_v6  ;;  %v10349_v14 = vld [vmem:[#allocation7_spill] sm:$0xff]  ;;  %v10350_v6 = vld [vmem:[#allocation8_spill] sm:$0xff] }
 0x78d   :  { %6283 = vmatpush2.msra.mxu0 %v8510_v60  ;;  %6161 = vmatpush2.msra.mxu1 %v8515_v5  ;;  %v10351_v60 = vld [vmem:[#allocation9_spill] sm:$0xff]  ;;  %v5648_v5 = vpop.f32.mrf.mxu0 }
 0x78e   :  { %6284 = vmatprep.subr.mxu0 %v8522_v55  ;;  %6162 = vmatprep.subr.mxu1 %v8527_v22  ;;  %v10352_v55 = vld [vmem:[#allocation10_spill] sm:$0xff]  ;;  %v10353_v22 = vld [vmem:[#allocation11_spill] sm:$0xff] }
 0x78f   :  { %6285 = vmatpush2.msra.mxu0 %v8534_v48  ;;  %6163 = vmatpush2.msra.mxu1 %v8539_v23  ;;  %v10354_v48 = vld [vmem:[#allocation12_spill] sm:$0xff]  ;;  %v10355_v23 = vld [vmem:[#allocation95_spill] sm:$0xff] }
 0x790   :  { %6286 = vmatprep.subr.mxu0 %v8546_v0  ;;  %6164 = vmatprep.subr.mxu1 %v8551_v10  ;;  %v10356_v0 = vld [vmem:[#allocation13_spill] sm:$0xff] }
 0x791   :  { %6287 = vmatpush2.msra.mxu0 %v8558_v58  ;;  %6165 = vmatpush2.msra.mxu1 %v8563_v25  ;;  %v10357_v58 = vld [vmem:[#allocation14_spill] sm:$0xff] }
 0x792   :  { %6288 = vmatprep.subr.mxu0 %v8570_v19  ;;  %6166 = vmatprep.subr.mxu1 %v8575_v59  ;;  %v5650_v19 = vpop.f32.mrf.mxu0  ;;  %v10358_v59 = vld [vmem:[#allocation15_spill] sm:$0xff] }
 0x793   :  { %6289 = vmatpush2.msra.mxu0 %v8582_v17  ;;  %6167 = vmatpush2.msra.mxu1 %v8587_v4  ;;  %v10359_v4 = vld [vmem:[#allocation16_spill] sm:$0xff] }
 0x794   :  { %6290 = vmatprep.subr.mxu0 %v8594_v33  ;;  %6168 = vmatprep.subr.mxu1 %v8599_v37  ;;  %v10360_v33 = vld [vmem:[#allocation17_spill] sm:$0xff] }
 0x795   :  { %6291 = vmatpush2.msra.mxu0 %v8606_v56  ;;  %6169 = vmatpush2.msra.mxu1 %v8611_v13  ;;  %v10361_v56 = vld [vmem:[#allocation18_spill] sm:$0xff]  ;;  %v10362_v13 = vld [vmem:[#allocation19_spill] sm:$0xff] }
 0x796   :  { %6292 = vmatprep.subr.mxu0 %v8618_v49  ;;  %6171 = vmatmul.mubr.f32.vlgmr.msra.gmra.mxu1 %v9627_v52  ;;  %v10363_v49 = vld [vmem:[#allocation20_spill] sm:$0xff] }
 0x797   :  { %6293 = vmatpush2.msra.mxu0 %v8625_v1  ;;  %6687 = vmatprep.subr.msk.mxu1 %vm2474_vm9, %v8630_v20  ;;  %v10364_v1 = vld [vmem:[#allocation21_spill] sm:$0xff]  ;;  %v10365_v20 = vld [vmem:[#allocation22_spill] sm:$0xff] }
 0x798   :  { %6294 = vmatprep.subr.mxu0 %v8637_v61  ;;  %6688 = vmatpush1.msk.msra.mxu1 %vm2474_vm9, %v8642_v3  ;;  %v10366_v61 = vld [vmem:[#allocation23_spill] sm:$0xff]  ;;  %v10367_v3 = vld [vmem:[#allocation24_spill] sm:$0xff] }
 0x799   :  { %6295 = vmatpush2.msra.mxu0 %v8649_v21  ;;  %6335 = vmatprep.subr.mxu1 %v8654_v27  ;;  %v10368_v21 = vld [vmem:[#allocation25_spill] sm:$0xff]  ;;  %v10369_v27 = vld [vmem:[#allocation26_spill] sm:$0xff] }
 0x79a   :  { %6296 = vmatprep.subr.mxu0 %v8662_v16  ;;  %6336 = vmatpush1.msra.mxu1 %v8667_v62  ;;  %v10370_v16 = vld [vmem:[#allocation27_spill] sm:$0xff]  ;;  %v10371_v62 = vld [vmem:[#allocation28_spill] sm:$0xff] }
 0x79b   :  { %6297 = vmatpush2.msra.mxu0 %v8675_v15  ;;  %6337 = vmatprep.subr.mxu1 %v8680_v7  ;;  %v10372_v15 = vld [vmem:[#allocation29_spill] sm:$0xff]  ;;  %v10373_v7 = vld [vmem:[#allocation30_spill] sm:$0xff] }
 0x79c   :  { %6298 = vmatprep.subr.mxu0 %v8687_v8  ;;  %6338 = vmatpush1.msra.mxu1 %v8692_v24  ;;  %v10374_v8 = vld [vmem:[#allocation31_spill] sm:$0xff]  ;;  %v10375_v24 = vld [vmem:[#allocation32_spill] sm:$0xff] }
 0x79d   :  { %6299 = vmatpush2.msra.mxu0 %v8699_v11  ;;  %6339 = vmatprep.subr.mxu1 %v8704_v28  ;;  %v10376_v11 = vld [vmem:[#allocation33_spill] sm:$0xff]  ;;  %v10377_v28 = vld [vmem:[#allocation34_spill] sm:$0xff] }
 0x79e   :  { %6300 = vmatprep.subr.mxu0 %v8711_v29  ;;  %6340 = vmatpush1.msra.mxu1 %v8716_v30  ;;  %v10378_v29 = vld [vmem:[#allocation35_spill] sm:$0xff]  ;;  %v10379_v30 = vld [vmem:[#allocation36_spill] sm:$0xff] }
 0x79f   :  { %6301 = vmatpush2.msra.mxu0 %v8723_v31  ;;  %6341 = vmatprep.subr.mxu1 %v8728_v36  ;;  %v10380_v31 = vld [vmem:[#allocation37_spill] sm:$0xff]  ;;  %v10381_v36 = vld [vmem:[#allocation38_spill] sm:$0xff] }
 0x7a0   :  { %6302 = vmatprep.subr.mxu0 %v8735_v12  ;;  %6342 = vmatpush1.msra.mxu1 %v8740_v38  ;;  %v10382_v12 = vld [vmem:[#allocation39_spill] sm:$0xff]  ;;  %v10383_v38 = vld [vmem:[#allocation40_spill] sm:$0xff] }
 0x7a1   :  { %6303 = vmatpush2.msra.mxu0 %v8747_v40  ;;  %6343 = vmatprep.subr.mxu1 %v8752_v9  ;;  %v10384_v40 = vld [vmem:[#allocation41_spill] sm:$0xff]  ;;  %v10385_v9 = vld [vmem:[#allocation42_spill] sm:$0xff] }
 0x7a2   :  { %6304 = vmatprep.subr.mxu0 %v8759_v32  ;;  %6344 = vmatpush1.msra.mxu1 %v8764_v34  ;;  %v10386_v32 = vld [vmem:[#allocation43_spill] sm:$0xff]  ;;  %v10387_v34 = vld [vmem:[#allocation44_spill] sm:$0xff] }
 0x7a3   :  { %6305 = vmatpush2.msra.mxu0 %v8771_v43  ;;  %6345 = vmatprep.subr.mxu1 %v8776_v42  ;;  %v10388_v43 = vld [vmem:[#allocation45_spill] sm:$0xff]  ;;  %v10389_v42 = vld [vmem:[#allocation46_spill] sm:$0xff] }
 0x7a4   :  { %6306 = vmatprep.subr.mxu0 %v8783_v39  ;;  %6346 = vmatpush1.msra.mxu1 %v10345_v46  ;;  %v10390_v39 = vld [vmem:[#allocation47_spill] sm:$0xff] }
 0x7a5   :  { %6307 = vmatpush2.msra.mxu0 %v10346_v54  ;;  %6347 = vmatprep.subr.mxu1 %v10347_v57  ;;  %v10397_v54 = vld [vmem:[#allocation54_spill] sm:$0xff]  ;;  %v10398_v57 = vld [vmem:[#allocation55_spill] sm:$0xff] }
 0x7a6   :  { %6308 = vmatprep.subr.mxu0 %v10348_v53  ;;  %6348 = vmatpush1.msra.mxu1 %v10349_v14  ;;  %v10399_v53 = vld [vmem:[#allocation56_spill] sm:$0xff]  ;;  %v10400_v14 = vld [vmem:[#allocation57_spill] sm:$0xff] }
 0x7a7   :  { %6309 = vmatpush2.msra.mxu0 %v10350_v6  ;;  %6349 = vmatprep.subr.mxu1 %v10351_v60  ;;  %v10401_v6 = vld [vmem:[#allocation58_spill] sm:$0xff]  ;;  %v10402_v60 = vld [vmem:[#allocation59_spill] sm:$0xff] }
 0x7a8   :  { %6310 = vmatprep.subr.mxu0 %v10352_v55  ;;  %6350 = vmatpush1.msra.mxu1 %v10353_v22  ;;  %v10404_v55 = vld [vmem:[#allocation61_spill] sm:$0xff]  ;;  %v10405_v22 = vld [vmem:[#allocation62_spill] sm:$0xff] }
 0x7a9   :  { %6383 = vmatprep.mubr.f32.mxu1 %v7449_v26  ;;  %6311 = vmatpush2.msra.mxu0 %v10354_v48  ;;  %v10406_v48 = vld [vmem:[#allocation63_spill] sm:$0xff] }
 0x7aa   :  { %6689 = vmatmul.mubr.msk.f32.vlgmr.msra.gmra.mxu1 %vm5341_vm2, %v10355_v23  ;;  %6390 = vmatprep.subr.mxu1 %v10356_v0  ;;  %v5577_v10 = vpop.f32.mrf.mxu1  ;;  %v10408_v0 = vld [vmem:[#allocation65_spill] sm:$0xff] }
 0x7ab   :  { %6313 = vmatmul.mubr.f32.vlgmr.msra.gmra.mxu0 %v9627_v52  ;;  %6391 = vmatpush1.msra.mxu1 %v10357_v58  ;;  %v5649_v25 = vadd.f32 %v5648_v5, %v5577_v10  ;;  %v10403_v5 = vld [vmem:[#allocation60_spill] sm:$0xff]  ;;  %v10409_v10 = vld [vmem:[#allocation66_spill] sm:$0xff]  ;;  %v10410_v58 = vld [vmem:[#allocation67_spill] sm:$0xff] }
 0x7ac   :  { %6454 = vmatprep.mubr.f32.mxu1 %v9290_v35  ;;  %6690 = vmatprep.subr.msk.mxu0 %vm2474_vm9, %v10358_v59  ;;  %v5579_v17 = vpop.f32.mrf.mxu1  ;;  %v10391_v35 = vld [vmem:[#allocation48_spill] sm:$0xff]  ;;  %v10413_v59 = vld [vmem:[#allocation70_spill] sm:$0xff] }
 0x7ad   :  { %6392 = vmatprep.subr.mxu1 %v10359_v4  ;;  %6691 = vmatpush1.msk.msra.mxu0 %vm2474_vm9, %v10360_v33  ;;  %5939 = vst [vmem:[%s10155_s9 + $0x10] sm:$0xff] %v5649_v25  ;;  %v5651_v37 = vadd.f32 %v5650_v19, %v5579_v17  ;;  %v10411_v25 = vld [vmem:[#allocation68_spill] sm:$0xff]  ;;  %v10412_v19 = vld [vmem:[#allocation69_spill] sm:$0xff]  ;;  %v10414_v17 = vld [vmem:[#allocation71_spill] sm:$0xff] }
 0x7ae   :  { %6393 = vmatpush1.msra.mxu1 %v10361_v56  ;;  %6477 = vmatprep.subr.mxu0 %v10362_v13  ;;  %v10415_v4 = vld [vmem:[#allocation72_spill] sm:$0xff]  ;;  %v10416_v33 = vld [vmem:[#allocation73_spill] sm:$0xff]  ;;  %v10418_v56 = vld [vmem:[#allocation75_spill] sm:$0xff] }
 0x7af   :  { %6394 = vmatprep.subr.mxu1 %v10363_v49  ;;  %6478 = vmatpush1.msra.mxu0 %v10364_v1  ;;  %5940 = vst [vmem:[%s10155_s9 + $0x18] sm:$0xff] %v5651_v37  ;;  %v10417_v37 = vld [vmem:[#allocation74_spill] sm:$0xff]  ;;  %v10419_v13 = vld [vmem:[#allocation76_spill] sm:$0xff]  ;;  %v10420_v49 = vld [vmem:[#allocation77_spill] sm:$0xff] }
 0x7b0   :  { %6395 = vmatpush1.msra.mxu1 %v10365_v20  ;;  %6479 = vmatprep.subr.mxu0 %v10366_v61  ;;  %v10421_v1 = vld [vmem:[#allocation78_spill] sm:$0xff]  ;;  %v10422_v20 = vld [vmem:[#allocation79_spill] sm:$0xff]  ;;  %v10423_v61 = vld [vmem:[#allocation80_spill] sm:$0xff] }
 0x7b1   :  { %6396 = vmatprep.subr.mxu1 %v10367_v3  ;;  %6480 = vmatpush1.msra.mxu0 %v10368_v21  ;;  %v10424_v3 = vld [vmem:[#allocation81_spill] sm:$0xff]  ;;  %v10425_v21 = vld [vmem:[#allocation82_spill] sm:$0xff] }
 0x7b2   :  { %6397 = vmatpush1.msra.mxu1 %v10369_v27  ;;  %6481 = vmatprep.subr.mxu0 %v10370_v16  ;;  %v10426_v27 = vld [vmem:[#allocation83_spill] sm:$0xff]  ;;  %v10427_v16 = vld [vmem:[#allocation84_spill] sm:$0xff] }
 0x7b3   :  { %6398 = vmatprep.subr.mxu1 %v10371_v62  ;;  %6482 = vmatpush1.msra.mxu0 %v10372_v15  ;;  %v10428_v62 = vld [vmem:[#allocation85_spill] sm:$0xff]  ;;  %v10429_v15 = vld [vmem:[#allocation86_spill] sm:$0xff] }
 0x7b4   :  { %6399 = vmatpush1.msra.mxu1 %v10373_v7  ;;  %6483 = vmatprep.subr.mxu0 %v10374_v8  ;;  %v10430_v7 = vld [vmem:[#allocation87_spill] sm:$0xff]  ;;  %v10431_v8 = vld [vmem:[#allocation88_spill] sm:$0xff] }
 0x7b5   :  { %6400 = vmatprep.subr.mxu1 %v10375_v24  ;;  %6484 = vmatpush1.msra.mxu0 %v10376_v11  ;;  %v10432_v24 = vld [vmem:[#allocation89_spill] sm:$0xff]  ;;  %v10433_v11 = vld [vmem:[#allocation90_spill] sm:$0xff] }
 0x7b6   :  { %6401 = vmatpush1.msra.mxu1 %v10377_v28  ;;  %6485 = vmatprep.subr.mxu0 %v10378_v29  ;;  %v10434_v28 = vld [vmem:[#allocation91_spill] sm:$0xff]  ;;  %v10435_v29 = vld [vmem:[#allocation92_spill] sm:$0xff] }
 0x7b7   :  { %6402 = vmatprep.subr.mxu1 %v10379_v30  ;;  %6486 = vmatpush1.msra.mxu0 %v10380_v31  ;;  %v10436_v30 = vld [vmem:[#allocation93_spill] sm:$0xff]  ;;  %v10437_v31 = vld [vmem:[#allocation94_spill] sm:$0xff] }
 0x7b8   :  { %6403 = vmatpush1.msra.mxu1 %v10381_v36  ;;  %6487 = vmatprep.subr.mxu0 %v10382_v12 }
 0x7b9   :  { %6404 = vmatprep.subr.mxu1 %v10383_v38  ;;  %6488 = vmatpush1.msra.mxu0 %v10384_v40 }
 0x7ba   :  { %6405 = vmatpush1.msra.mxu1 %v10385_v9  ;;  %6489 = vmatprep.subr.mxu0 %v10386_v32 }
 0x7bb   :  { %6406 = vmatprep.subr.mxu1 %v10387_v34  ;;  %6490 = vmatpush1.msra.mxu0 %v10388_v43 }
 0x7bc   :  { %6407 = vmatpush1.msra.mxu1 %v10389_v42  ;;  %6491 = vmatprep.subr.mxu0 %v10390_v39 }
 0x7bd   :  { %6408 = vmatprep.subr.mxu1 %v10391_v35  ;;  %6492 = vmatpush1.msra.mxu0 %v10392_v45 }
 0x7be   :  { %6525 = vmatprep.mubr.f32.mxu0 %v7449_v26  ;;  %6409 = vmatpush1.msra.mxu1 %v10393_v63  ;;  %v5790_v44 = vpop.f32.mrf.mxu1 }
 0x7bf   :  { %6692 = vmatmul.mubr.msk.f32.vlgmr.msra.gmra.mxu0 %vm5341_vm2, %v10355_v23  ;;  %6410 = vmatprep.subr.mxu1 %v10394_v50  ;;  %v5719_v51 = vpop.f32.mrf.mxu0  ;;  %v10407_v23 = vld [vmem:[#allocation64_spill] sm:$0xff] }
 0x7c0   :  { %6411 = vmatpush1.msra.mxu1 %v10395_v2  ;;  %v5791_v18 = vadd.f32 %v5790_v44, %v5719_v51  ;;  %v5792_v47 = vpop.f32.mrf.mxu1 }
 0x7c1   :  { %6412 = vmatprep.subr.mxu1 %v10396_v41  ;;  %v5721_v46 = vpop.f32.mrf.mxu0 }
 0x7c2   :  { %6413 = vmatpush1.msra.mxu1 %v10397_v54  ;;  %5941 = vst [vmem:[%s10155_s9 + $0x20] sm:$0xff] %v5791_v18  ;;  %v5793_v26 = vadd.f32 %v5792_v47, %v5721_v46 }
 0x7c3   :  { %6414 = vmatprep.subr.mxu1 %v10398_v57 }
 0x7c4   :  { %6415 = vmatpush1.msra.mxu1 %v10399_v53  ;;  %5942 = vst [vmem:[%s10155_s9 + $0x28] sm:$0xff] %v5793_v26 }
 0x7c5   :  { %6416 = vmatprep.subr.mxu1 %v10400_v14 }
 0x7c6   :  { %6417 = vmatpush1.msra.mxu1 %v10401_v6 }
 0x7c7   :  { %6418 = vmatprep.subr.mxu1 %v10402_v60 }
 0x7c8   :  { %6419 = vmatpush1.msra.mxu1 %v10403_v5 }
 0x7c9   :  { %6420 = vmatprep.subr.mxu1 %v10404_v55 }
 0x7ca   :  { %6421 = vmatpush1.msra.mxu1 %v10405_v22 }
 0x7cb   :  { %6422 = vmatprep.subr.mxu1 %v10406_v48 }
 0x7cc   :  { %6423 = vmatpush2.msra.mxu1 %v10407_v23 }
 0x7cd   :  { %6424 = vmatprep.subr.mxu1 %v10408_v0 }
 0x7ce   :  { %6425 = vmatpush2.msra.mxu1 %v10409_v10 }
 0x7cf   :  { %6426 = vmatprep.subr.mxu1 %v10410_v58 }
 0x7d0   :  { %6427 = vmatpush2.msra.mxu1 %v10411_v25 }
 0x7d1   :  { %6428 = vmatprep.subr.mxu1 %v10412_v19 }
 0x7d2   :  { %6429 = vmatpush2.msra.mxu1 %v10413_v59 }
 0x7d3   :  { %6430 = vmatprep.subr.mxu1 %v10414_v17  ;;  %v5932_v36 = vpop.f32.mrf.mxu0 }
 0x7d4   :  { %6431 = vmatpush2.msra.mxu1 %v10415_v4 }
 0x7d5   :  { %6432 = vmatprep.subr.mxu1 %v10416_v33  ;;  %v5934_v40 = vpop.f32.mrf.mxu0 }
 0x7d6   :  { %6433 = vmatpush2.msra.mxu1 %v10417_v37 }
 0x7d7   :  { %6434 = vmatprep.subr.mxu1 %v10418_v56 }
 0x7d8   :  { %6435 = vmatpush2.msra.mxu1 %v10419_v13 }
 0x7d9   :  { %6436 = vmatprep.subr.mxu1 %v10420_v49 }
 0x7da   :  { %6437 = vmatpush2.msra.mxu1 %v10421_v1 }
 0x7db   :  { %6438 = vmatprep.subr.mxu1 %v10422_v20 }
 0x7dc   :  { %6439 = vmatpush2.msra.mxu1 %v10423_v61 }
 0x7dd   :  { %6440 = vmatprep.subr.mxu1 %v10424_v3 }
 0x7de   :  { %6441 = vmatpush2.msra.mxu1 %v10425_v21 }
 0x7df   :  { %6442 = vmatprep.subr.mxu1 %v10426_v27 }
 0x7e0   :  { %6443 = vmatpush2.msra.mxu1 %v10427_v16 }
 0x7e1   :  { %6444 = vmatprep.subr.mxu1 %v10428_v62 }
 0x7e2   :  { %6445 = vmatpush2.msra.mxu1 %v10429_v15 }
 0x7e3   :  { %6446 = vmatprep.subr.mxu1 %v10430_v7 }
 0x7e4   :  { %6447 = vmatpush2.msra.mxu1 %v10431_v8 }
 0x7e5   :  { %6448 = vmatprep.subr.mxu1 %v10432_v24 }
 0x7e6   :  { %6449 = vmatpush2.msra.mxu1 %v10433_v11 }
 0x7e7   :  { %6450 = vmatprep.subr.mxu1 %v10434_v28 }
 0x7e8   :  { %6451 = vmatpush2.msra.mxu1 %v10435_v29 }
 0x7e9   :  { %6452 = vmatprep.subr.mxu1 %v10436_v30 }
 0x7ea   :  { %6453 = vmatpush2.msra.mxu1 %v10437_v31 }
 0x7eb   :  { %6455 = vmatmul.mubr.f32.vlgmr.msra.gmra.mxu1 %v9627_v52 }
 0x800   :  { %v5861_v12 = vpop.f32.mrf.mxu1 }
 0x801   :  { %v5933_v38 = vadd.f32 %v5932_v36, %v5861_v12 }
 0x802   :  { %v5863_v9 = vpop.f32.mrf.mxu1 }
 0x803   :  { %5943 = vst [vmem:[%s10155_s9 + $0x30] sm:$0xff] %v5933_v38  ;;  %v5935_v32 = vadd.f32 %v5934_v40, %v5863_v9 }
 0x805   :  { %5944 = vst [vmem:[%s10155_s9 + $0x38] sm:$0xff] %v5935_v32 }
 0x814   :  { %v6101_v34 = vpop.f32.mrf.mxu1 }
 0x815   :  { %v6030_v43 = vpop.f32.mrf.mxu0 }
 0x816   :  { %v6102_v42 = vadd.f32 %v6101_v34, %v6030_v43  ;;  %v6103_v39 = vpop.f32.mrf.mxu1 }
 0x817   :  { %v6032_v35 = vpop.f32.mrf.mxu0 }
 0x818   :  { %6693 = vst [vmem:[%s10155_s9 + $0x40] sm:$0xff] %v6102_v42  ;;  %v6104_v52 = vadd.f32 %v6103_v39, %v6032_v35 }
 0x81a   :  { %6694 = vst [vmem:[%s10155_s9 + $0x48] sm:$0xff] %v6104_v52 }
 0x829   :  { %v6243_v45 = vpop.f32.mrf.mxu0 }
 0x82b   :  { %v6245_v50 = vpop.f32.mrf.mxu0 }
 0x856   :  { %v6172_v63 = vpop.f32.mrf.mxu1 }
 0x857   :  { %v6244_v44 = vadd.f32 %v6243_v45, %v6172_v63 }
 0x858   :  { %v6174_v51 = vpop.f32.mrf.mxu1 }
 0x859   :  { %6695 = vst [vmem:[%s10155_s9 + $0x50] sm:$0xff] %v6244_v44  ;;  %v6246_v2 = vadd.f32 %v6245_v50, %v6174_v51 }
 0x85b   :  { %6696 = vst [vmem:[%s10155_s9 + $0x58] sm:$0xff] %v6246_v2 }
 0x86a   :  { %v6385_v18 = vpop.f32.mrf.mxu1 }
 0x86b   :  { %v6314_v47 = vpop.f32.mrf.mxu0 }
 0x86c   :  { %v6386_v41 = vadd.f32 %v6385_v18, %v6314_v47  ;;  %v6387_v46 = vpop.f32.mrf.mxu1 }
 0x86d   :  { %v6316_v54 = vpop.f32.mrf.mxu0 }
 0x86e   :  { %6697 = vst [vmem:[%s10155_s9 + $0x60] sm:$0xff] %v6386_v41  ;;  %v6388_v26 = vadd.f32 %v6387_v46, %v6316_v54 }
 0x870   :  { %6698 = vst [vmem:[%s10155_s9 + $0x68] sm:$0xff] %v6388_v26 }
 0x87f   :  { %v6527_v57 = vpop.f32.mrf.mxu0 }
 0x881   :  { %v6529_v6 = vpop.f32.mrf.mxu0 }
 0x8ab   :  { %v6456_v53 = vpop.f32.mrf.mxu1 }
 0x8ac   :  { %v6528_v14 = vadd.f32 %v6527_v57, %v6456_v53 }
 0x8ad   :  { %v6458_v60 = vpop.f32.mrf.mxu1 }
 0x8ae   :  { %6699 = vst [vmem:[%s10155_s9 + $0x70] sm:$0xff] %v6528_v14  ;;  %v6530_v5 = vadd.f32 %v6529_v6, %v6458_v60 }
 0x8b0   :  { %6700 = vst [vmem:[%s10155_s9 + $0x78] sm:$0xff] %v6530_v5 }

</bundles_post_ra>
